<compile_context>
chip_gen: v7x
topology: tpu7x:2x2x1
jax: 0.10.0
libtpu: 0.0.40
codegen_flags: <defaults>
</compile_context>

<pallas_src>
import functools

import jax
import jax.numpy as jnp
from jax.experimental import pallas as pl
from jax.experimental.pallas import tpu as pltpu

BN_EPS = 1e-5
LANES = 128


def _round_up(x, m):
    return (x + m - 1) // m * m


def _pad_axis(x, target, axis, value=0.0):
    cur = x.shape[axis]
    if cur == target:
        return x
    pads = [(0, 0)] * x.ndim
    pads[axis] = (0, target - cur)
    return jnp.pad(x, pads, constant_values=value)


# --------------------------- Pallas kernels ----------------------------------

def _mm_kernel(p_ref, w_ref, b_ref, o_ref, *, relu):
    # (tm, K) @ (K, tn) on the MXU, bf16 operands, f32 accumulation.
    acc = jnp.dot(p_ref[...], w_ref[...], preferred_element_type=jnp.float32)
    acc = acc + b_ref[...]
    if relu:
        acc = jnp.maximum(acc, 0.0)
    o_ref[...] = acc.astype(o_ref.dtype)


def _mm_res_kernel(p_ref, w_ref, b_ref, r_ref, o_ref, *, relu):
    acc = jnp.dot(p_ref[...], w_ref[...], preferred_element_type=jnp.float32)
    acc = acc + b_ref[...] + r_ref[...].astype(jnp.float32)
    if relu:
        acc = jnp.maximum(acc, 0.0)
    o_ref[...] = acc.astype(o_ref.dtype)


def _maxpool_kernel(x_ref, o_ref, *, oh, ow, c):
    # x_ref block: (1, 2*oh+2, ow+1, 2*c)  — W columns paired onto lanes.
    x = x_ref[0]
    # stride-2 max along W: window cols (2q, 2q+1, 2q+2)
    j0 = x[:, :ow, :c]
    j1 = x[:, :ow, c:]
    j2 = x[:, 1:ow + 1, :c]
    cm = jnp.maximum(jnp.maximum(j0, j1), j2)          # (2*oh+2, ow, c)
    # stride-2 max along H: window rows (2p, 2p+1, 2p+2)
    cmr = cm.reshape(oh + 1, 2, ow, c)                 # leading-dim-only reshape
    i0 = cmr[:oh, 0]
    i1 = cmr[:oh, 1]
    i2 = cmr[1:oh + 1, 0]
    o_ref[0] = jnp.maximum(jnp.maximum(i0, i1), i2)


# ----------------------------- kernel wrappers --------------------------------

def matmul_bn_act(patches, wmat, bias, residual=None, relu=True,
                  out_dtype=jnp.bfloat16):
    """Fused (M,K)@(K,Np) + BN bias [+ residual] [+ ReLU] Pallas call."""
    M, K = patches.shape
    Np = wmat.shape[1]
    assert Np % LANES == 0

    # Adaptive row tile: no padding waste at tiny M, >=2 row tiles for larger M
    # (v7x has 2 TensorCores — both grid axes are marked "parallel").
    if M >= 1024:
        tm = 512
    elif M >= 512:
        tm = 256
    else:
        tm = _round_up(M, 16)
    tn = LANES

    Mp = _round_up(M, tm)
    p = _pad_axis(patches, Mp, 0)
    grid = (Mp // tm, Np // tn)

    bias2d = bias.reshape(1, Np).astype(jnp.float32)

    bytes_accessed = (Mp * K + K * Np + Mp * Np) * 2 + Np * 4
    if residual is not None:
        bytes_accessed += Mp * Np * 2
    cost = pl.CostEstimate(flops=2 * Mp * K * Np, transcendentals=0,
                           bytes_accessed=bytes_accessed)

    p_spec = pl.BlockSpec((tm, K), lambda i, j: (i, 0))
    w_spec = pl.BlockSpec((K, tn), lambda i, j: (0, j))
    b_spec = pl.BlockSpec((1, tn), lambda i, j: (0, j))
    o_spec = pl.BlockSpec((tm, tn), lambda i, j: (i, j))

    common = dict(
        out_shape=jax.ShapeDtypeStruct((Mp, Np), out_dtype),
        compiler_params=pltpu.CompilerParams(
            dimension_semantics=("parallel", "parallel")),
        cost_estimate=cost,
    )

    if residual is None:
        out = pl.pallas_call(
            functools.partial(_mm_kernel, relu=relu),
            grid_spec=pltpu.PrefetchScalarGridSpec(
                num_scalar_prefetch=0, grid=grid,
                in_specs=[p_spec, w_spec, b_spec], out_specs=o_spec),
            **common,
        )(p, wmat, bias2d)
    else:
        r = _pad_axis(_pad_axis(residual.astype(out_dtype), Np, 1), Mp, 0)
        r_spec = pl.BlockSpec((tm, tn), lambda i, j: (i, j))
        out = pl.pallas_call(
            functools.partial(_mm_res_kernel, relu=relu),
            grid_spec=pltpu.PrefetchScalarGridSpec(
                num_scalar_prefetch=0, grid=grid,
                in_specs=[p_spec, w_spec, b_spec, r_spec], out_specs=o_spec),
            **common,
        )(p, wmat, bias2d, r)

    return out[:M] if Mp != M else out


def maxpool_3x3_s2(x):
    """3x3 / stride 2 / pad 1 max pool.  One Pallas kernel per batch element,
    reading the activation exactly once (no 9x shifted HBM stack)."""
    N, H, W, C = x.shape
    assert H % 2 == 0 and W % 2 == 0 and C % LANES == 0
    oh, ow = H // 2, W // 2
    xp = jnp.pad(x, ((0, 0), (1, 1), (1, 1), (0, 0)),
                 constant_values=-jnp.inf)
    # Free (contiguous) reshape: pair adjacent W columns onto the lane axis so
    # the kernel only needs static, lane-aligned slices.
    xr = xp.reshape(N, H + 2, (W + 2) // 2, 2 * C)
    return pl.pallas_call(
        functools.partial(_maxpool_kernel, oh=oh, ow=ow, c=C),
        out_shape=jax.ShapeDtypeStruct((N, oh, ow, C), x.dtype),
        grid_spec=pltpu.PrefetchScalarGridSpec(
            num_scalar_prefetch=0, grid=(N,),
            in_specs=[pl.BlockSpec((1, H + 2, (W + 2) // 2, 2 * C),
                                   lambda n: (n, 0, 0, 0))],
            out_specs=pl.BlockSpec((1, oh, ow, C), lambda n: (n, 0, 0, 0))),
        compiler_params=pltpu.CompilerParams(
            dimension_semantics=("parallel",)),
    )(xr)


# ------------------------------- glue ------------------------------------------

def im2col(x, kh, kw, stride, pad):
    """x: NHWC (bf16) -> (N*OH*OW, KH*KW*C) patches (PyTorch conv ordering)."""
    if pad:
        x = jnp.pad(x, ((0, 0), (pad, pad), (pad, pad), (0, 0)))
    N, H, W, C = x.shape
    oh = (H - kh) // stride + 1
    ow = (W - kw) // stride + 1
    if kh == 1 and kw == 1 and stride == 1:
        return x.reshape(N * H * W, C), (N, H, W)      # no copy needed
    # TODO(synk): 3x3 patches are still materialized in HBM (at bf16); full
    # in-kernel im2col fusion (kh*kw as an 'arbitrary' grid axis) not done.
    cols = []
    for i in range(kh):
        for j in range(kw):
            cols.append(x[:, i:i + (oh - 1) * stride + 1:stride,
                            j:j + (ow - 1) * stride + 1:stride, :])
    p = jnp.stack(cols, axis=3)                         # (N, oh, ow, kh*kw, C)
    return p.reshape(N * oh * ow, kh * kw * C), (N, oh, ow)


def conv_bn(x, params, stride, pad, relu, residual=None):
    """Conv2d + BatchNorm (folded, running stats) [+ residual] [+ ReLU]."""
    # TODO(synk): PyTorch default training-mode BN uses per-batch statistics;
    # here BN is folded with running stats, i.e. eval/inference semantics.
    w = params["w"]                                     # (Cout, Cin, KH, KW)
    Cout, Cin, KH, KW = w.shape
    C_act = x.shape[-1]                                 # may carry lane padding
    scale = params["gamma"] / jnp.sqrt(params["var"] + BN_EPS)
    bias = params["beta"] - params["mean"] * scale

    if C_act > Cin:                                     # zero rows for padded channels
        w = jnp.pad(w, ((0, 0), (0, C_act - Cin), (0, 0), (0, 0)))
    wmat = (w * scale[:, None, None, None]).transpose(2, 3, 1, 0)
    wmat = wmat.reshape(KH * KW * C_act, Cout)

    Cout_p = _round_up(Cout, LANES)                     # lane-dense output
    wmat = _pad_axis(wmat, Cout_p, 1).astype(jnp.bfloat16)
    bias = _pad_axis(bias, Cout_p, 0)

    patches, (N, oh, ow) = im2col(x, KH, KW, stride, pad)
    M = N * oh * ow
    res2d = None
    if residual is not None:
        res2d = residual.reshape(M, residual.shape[-1])
    out = matmul_bn_act(patches, wmat, bias, res2d, relu)
    return out.reshape(N, oh, ow, Cout_p)


def bottleneck(x, blk, stride):
    identity = x
    # TODO(synk): conv1 and downsample of stride-1 first blocks could share one
    # matmul (concatenated weight columns); kept separate for simplicity.
    out = conv_bn(x, blk["conv1"], stride=1, pad=0, relu=True)
    out = conv_bn(out, blk["conv2"], stride=stride, pad=1, relu=True)
    if "downsample" in blk:
        identity = conv_bn(x, blk["downsample"], stride=stride, pad=0, relu=False)
    # conv3 + BN + residual add + ReLU all fused in one Pallas kernel.
    out = conv_bn(out, blk["conv3"], stride=1, pad=0, relu=True, residual=identity)
    return out


# --------------------------- parameters --------------------------------------

def init_conv_bn(key, cout, cin, kh, kw):
    wkey, mkey = jax.random.split(key)
    fan_in = cin * kh * kw
    return {
        "w": jax.random.normal(wkey, (cout, cin, kh, kw), jnp.float32)
             * (2.0 / fan_in) ** 0.5,
        "gamma": jnp.ones((cout,), jnp.float32),
        "beta": jnp.zeros((cout,), jnp.float32),
        "mean": jax.random.normal(mkey, (cout,), jnp.float32) * 0.1,
        "var": jnp.ones((cout,), jnp.float32),
    }


def build_params(key):
    keys = iter(jax.random.split(key, 64))

    def make_layer(inplanes, planes, blocks):
        layer = []
        for b in range(blocks):
            inc = inplanes if b == 0 else planes * 4
            blk = {
                "conv1": init_conv_bn(next(keys), planes, inc, 1, 1),
                "conv2": init_conv_bn(next(keys), planes, planes, 3, 3),
                "conv3": init_conv_bn(next(keys), planes * 4, planes, 1, 1),
            }
            if b == 0:  # stride != 1 or inplanes != planes * expansion
                blk["downsample"] = init_conv_bn(next(keys), planes * 4, inc, 1, 1)
            layer.append(blk)
        return layer

    return {
        "conv1": init_conv_bn(next(keys), 64, 3, 7, 7),
        "layer1": make_layer(64, 64, 3),    # stride 1
        "layer2": make_layer(256, 128, 4),  # stride 2 on first block
    }


# ------------------------------ forward ---------------------------------------

def dino_forward(params, x_nchw):
    x = jnp.transpose(x_nchw, (0, 2, 3, 1)).astype(jnp.bfloat16)   # NHWC, bf16
    # stem: conv1 7x7/2 + bn + relu (output padded 64 -> 128 lanes)
    x = conv_bn(x, params["conv1"], stride=2, pad=3, relu=True)
    # maxpool 3x3 / stride 2 / pad 1
    x = maxpool_3x3_s2(x)
    # layer1 (stride 1) and layer2 (stride 2 on first block)
    for blk in params["layer1"]:
        x = bottleneck(x, blk, stride=1)
    for b, blk in enumerate(params["layer2"]):
        x = bottleneck(x, blk, stride=2 if b == 0 else 1)
    return jnp.transpose(x, (0, 3, 1, 2)).astype(jnp.float32)      # back to NCHW


if __name__ == "__main__":
    key = jax.random.PRNGKey(0)
    pkey, xkey = jax.random.split(key)
    params = build_params(pkey)
    x = jax.random.normal(xkey, (2, 3, 32, 32), jnp.float32)       # NCHW input
    fwd = jax.jit(functools.partial(dino_forward, params))
    out = fwd(x)
    jax.block_until_ready(out)
    assert out.shape == (2, 512, 4, 4), out.shape
    assert jnp.isfinite(out).all()
    print("KERNEL_OK")
</pallas_src>

<mosaic_0001>
module attributes {stable_mosaic.version = 11 : i64} {
  func.func @_mm_kernel(%arg0: i32, %arg1: i32, %arg2: memref<256x147xbf16, #tpu.memory_space<vmem>>, %arg3: memref<147x128xbf16, #tpu.memory_space<vmem>>, %arg4: memref<1x128xf32, #tpu.memory_space<vmem>>, %arg5: memref<256x128xbf16, #tpu.memory_space<vmem>>) attributes {dimension_semantics = [#tpu.dimension_semantics<parallel>, #tpu.dimension_semantics<parallel>], iteration_bounds = array<i64: 2, 1>, scalar_prefetch = 0 : i64, scratch_operands = 0 : i64, tpu.core_type = #tpu.core_type<tc>, window_params = [{transform_indices = @transform_0, window_bounds = array<i64: 256, 147>}, {transform_indices = @transform_1, window_bounds = array<i64: 147, 128>}, {transform_indices = @transform_2, window_bounds = array<i64: 1, 128>}, {transform_indices = @transform_3, window_bounds = array<i64: 256, 128>}]} {
    %c0 = arith.constant 0 : index
    %c0_0 = arith.constant 0 : index
    %0 = vector.load %arg2[%c0, %c0_0] : memref<256x147xbf16, #tpu.memory_space<vmem>>, vector<256x147xbf16>
    %c0_1 = arith.constant 0 : index
    %c0_2 = arith.constant 0 : index
    %1 = vector.load %arg3[%c0_1, %c0_2] : memref<147x128xbf16, #tpu.memory_space<vmem>>, vector<147x128xbf16>
    %cst = arith.constant dense<0.000000e+00> : vector<256x128xf32>
    %2 = tpu.matmul %0, %1, %cst {dimension_numbers = #tpu.dot_dimension_numbers<[1], [0], [0], [1], [0, 0, 1, 1], [], []>} : vector<256x147xbf16>, vector<147x128xbf16>, vector<256x128xf32> -> vector<256x128xf32>
    %c0_3 = arith.constant 0 : index
    %c0_4 = arith.constant 0 : index
    %3 = vector.load %arg4[%c0_3, %c0_4] : memref<1x128xf32, #tpu.memory_space<vmem>>, vector<1x128xf32>
    %4 = vector.broadcast %3 : vector<1x128xf32> to vector<256x128xf32>
    %5 = arith.addf %2, %4 : vector<256x128xf32>
    %cst_5 = arith.constant 0.000000e+00 : f32
    %6 = vector.broadcast %cst_5 : f32 to vector<256x128xf32>
    %7 = arith.maximumf %5, %6 : vector<256x128xf32>
    %8 = arith.truncf %7 : vector<256x128xf32> to vector<256x128xbf16>
    %c0_6 = arith.constant 0 : index
    %c0_7 = arith.constant 0 : index
    %9 = vector.load %arg5[%c0_6, %c0_7] : memref<256x128xbf16, #tpu.memory_space<vmem>>, vector<256x128xbf16>
    tpu.vector_store %arg5[%c0_6, %c0_7], %8 {strides = array<i32>} : memref<256x128xbf16, #tpu.memory_space<vmem>>, vector<256x128xbf16>,
    return
  }
  func.func @transform_0(%arg0: i32, %arg1: i32) -> (i32, i32) {
    %c0_i32 = arith.constant 0 : i32
    %c0_i32_0 = arith.constant 0 : i32
    return %arg0, %c0_i32 : i32, i32
  }
  func.func @transform_1(%arg0: i32, %arg1: i32) -> (i32, i32) {
    %c0_i32 = arith.constant 0 : i32
    %c0_i32_0 = arith.constant 0 : i32
    return %c0_i32, %arg1 : i32, i32
  }
  func.func @transform_2(%arg0: i32, %arg1: i32) -> (i32, i32) {
    %c0_i32 = arith.constant 0 : i32
    %c0_i32_0 = arith.constant 0 : i32
    return %c0_i32, %arg1 : i32, i32
  }
  func.func @transform_3(%arg0: i32, %arg1: i32) -> (i32, i32) {
    %c0_i32 = arith.constant 0 : i32
    return %arg0, %arg1 : i32, i32
  }
}

module attributes {stable_mosaic.version = 11 : i64} {
  func.func @_maxpool_kernel(%arg0: i32, %arg1: memref<1x18x9x256xbf16, #tpu.memory_space<vmem>>, %arg2: memref<1x8x8x128xbf16, #tpu.memory_space<vmem>>) attributes {dimension_semantics = [#tpu.dimension_semantics<parallel>], iteration_bounds = array<i64: 2>, scalar_prefetch = 0 : i64, scratch_operands = 0 : i64, tpu.core_type = #tpu.core_type<tc>, window_params = [{transform_indices = @transform_0, window_bounds = array<i64: 1, 18, 9, 256>}, {transform_indices = @transform_1, window_bounds = array<i64: 1, 8, 8, 128>}]} {
    %c0 = arith.constant 0 : index
    %c0_0 = arith.constant 0 : index
    %c0_1 = arith.constant 0 : index
    %c0_2 = arith.constant 0 : index
    %0 = vector.load %arg1[%c0, %c0_0, %c0_1, %c0_2] : memref<1x18x9x256xbf16, #tpu.memory_space<vmem>>, vector<1x18x9x256xbf16>
    %1 = vector.shape_cast %0 : vector<1x18x9x256xbf16> to vector<18x9x256xbf16>
    %2 = vector.extract_strided_slice %1 {offsets = [0, 0, 0], sizes = [18, 8, 128], strides = [1, 1, 1]} : vector<18x9x256xbf16> to vector<18x8x128xbf16>
    %3 = vector.extract_strided_slice %1 {offsets = [0, 0, 128], sizes = [18, 8, 128], strides = [1, 1, 1]} : vector<18x9x256xbf16> to vector<18x8x128xbf16>
    %4 = vector.extract_strided_slice %1 {offsets = [0, 1, 0], sizes = [18, 8, 128], strides = [1, 1, 1]} : vector<18x9x256xbf16> to vector<18x8x128xbf16>
    %5 = arith.maximumf %2, %3 : vector<18x8x128xbf16>
    %6 = arith.maximumf %5, %4 : vector<18x8x128xbf16>
    %7 = vector.shape_cast %6 : vector<18x8x128xbf16> to vector<9x2x8x128xbf16>
    %8 = vector.extract_strided_slice %7 {offsets = [0, 0, 0, 0], sizes = [8, 1, 8, 128], strides = [1, 1, 1, 1]} : vector<9x2x8x128xbf16> to vector<8x1x8x128xbf16>
    %9 = vector.shape_cast %8 : vector<8x1x8x128xbf16> to vector<8x8x128xbf16>
    %10 = vector.extract_strided_slice %7 {offsets = [0, 1, 0, 0], sizes = [8, 1, 8, 128], strides = [1, 1, 1, 1]} : vector<9x2x8x128xbf16> to vector<8x1x8x128xbf16>
    %11 = vector.shape_cast %10 : vector<8x1x8x128xbf16> to vector<8x8x128xbf16>
    %12 = vector.extract_strided_slice %7 {offsets = [1, 0, 0, 0], sizes = [8, 1, 8, 128], strides = [1, 1, 1, 1]} : vector<9x2x8x128xbf16> to vector<8x1x8x128xbf16>
    %13 = vector.shape_cast %12 : vector<8x1x8x128xbf16> to vector<8x8x128xbf16>
    %14 = arith.maximumf %9, %11 : vector<8x8x128xbf16>
    %15 = arith.maximumf %14, %13 : vector<8x8x128xbf16>
    %c0_3 = arith.constant 0 : index
    %c0_4 = arith.constant 0 : index
    %c0_5 = arith.constant 0 : index
    %c0_6 = arith.constant 0 : index
    %16 = vector.load %arg2[%c0_3, %c0_4, %c0_5, %c0_6] : memref<1x8x8x128xbf16, #tpu.memory_space<vmem>>, vector<1x8x8x128xbf16>
    %17 = vector.shape_cast %16 : vector<1x8x8x128xbf16> to vector<8x8x128xbf16>
    %18 = vector.shape_cast %15 : vector<8x8x128xbf16> to vector<1x8x8x128xbf16>
    tpu.vector_store %arg2[%c0_3, %c0_4, %c0_5, %c0_6], %18 {strides = array<i32>} : memref<1x8x8x128xbf16, #tpu.memory_space<vmem>>, vector<1x8x8x128xbf16>,
    return
  }
  func.func @transform_0(%arg0: i32) -> (i32, i32, i32, i32) {
    %c0_i32 = arith.constant 0 : i32
    %c0_i32_0 = arith.constant 0 : i32
    %c0_i32_1 = arith.constant 0 : i32
    %c0_i32_2 = arith.constant 0 : i32
    return %arg0, %c0_i32, %c0_i32_0, %c0_i32_1 : i32, i32, i32, i32
  }
  func.func @transform_1(%arg0: i32) -> (i32, i32, i32, i32) {
    %c0_i32 = arith.constant 0 : i32
    %c0_i32_0 = arith.constant 0 : i32
    %c0_i32_1 = arith.constant 0 : i32
    %c0_i32_2 = arith.constant 0 : i32
    return %arg0, %c0_i32, %c0_i32_0, %c0_i32_1 : i32, i32, i32, i32
  }
}

module attributes {stable_mosaic.version = 11 : i64} {
  func.func @_mm_kernel(%arg0: i32, %arg1: i32, %arg2: memref<128x128xbf16, #tpu.memory_space<vmem>>, %arg3: memref<128x128xbf16, #tpu.memory_space<vmem>>, %arg4: memref<1x128xf32, #tpu.memory_space<vmem>>, %arg5: memref<128x128xbf16, #tpu.memory_space<vmem>>) attributes {dimension_semantics = [#tpu.dimension_semantics<parallel>, #tpu.dimension_semantics<parallel>], iteration_bounds = array<i64: 1, 1>, scalar_prefetch = 0 : i64, scratch_operands = 0 : i64, tpu.core_type = #tpu.core_type<tc>, window_params = [{transform_indices = @transform_0, window_bounds = array<i64: 128, 128>}, {transform_indices = @transform_1, window_bounds = array<i64: 128, 128>}, {transform_indices = @transform_2, window_bounds = array<i64: 1, 128>}, {transform_indices = @transform_3, window_bounds = array<i64: 128, 128>}]} {
    %c0 = arith.constant 0 : index
    %c0_0 = arith.constant 0 : index
    %0 = vector.load %arg2[%c0, %c0_0] : memref<128x128xbf16, #tpu.memory_space<vmem>>, vector<128x128xbf16>
    %c0_1 = arith.constant 0 : index
    %c0_2 = arith.constant 0 : index
    %1 = vector.load %arg3[%c0_1, %c0_2] : memref<128x128xbf16, #tpu.memory_space<vmem>>, vector<128x128xbf16>
    %cst = arith.constant dense<0.000000e+00> : vector<128x128xf32>
    %2 = tpu.matmul %0, %1, %cst {dimension_numbers = #tpu.dot_dimension_numbers<[1], [0], [0], [1], [0, 0, 1, 1], [], []>} : vector<128x128xbf16>, vector<128x128xbf16>, vector<128x128xf32> -> vector<128x128xf32>
    %c0_3 = arith.constant 0 : index
    %c0_4 = arith.constant 0 : index
    %3 = vector.load %arg4[%c0_3, %c0_4] : memref<1x128xf32, #tpu.memory_space<vmem>>, vector<1x128xf32>
    %4 = vector.broadcast %3 : vector<1x128xf32> to vector<128x128xf32>
    %5 = arith.addf %2, %4 : vector<128x128xf32>
    %cst_5 = arith.constant 0.000000e+00 : f32
    %6 = vector.broadcast %cst_5 : f32 to vector<128x128xf32>
    %7 = arith.maximumf %5, %6 : vector<128x128xf32>
    %8 = arith.truncf %7 : vector<128x128xf32> to vector<128x128xbf16>
    %c0_6 = arith.constant 0 : index
    %c0_7 = arith.constant 0 : index
    %9 = vector.load %arg5[%c0_6, %c0_7] : memref<128x128xbf16, #tpu.memory_space<vmem>>, vector<128x128xbf16>
    tpu.vector_store %arg5[%c0_6, %c0_7], %8 {strides = array<i32>} : memref<128x128xbf16, #tpu.memory_space<vmem>>, vector<128x128xbf16>,
    return
  }
  func.func @transform_0(%arg0: i32, %arg1: i32) -> (i32, i32) {
    %c0_i32 = arith.constant 0 : i32
    %c0_i32_0 = arith.constant 0 : i32
    return %arg0, %c0_i32 : i32, i32
  }
  func.func @transform_1(%arg0: i32, %arg1: i32) -> (i32, i32) {
    %c0_i32 = arith.constant 0 : i32
    %c0_i32_0 = arith.constant 0 : i32
    return %c0_i32, %arg1 : i32, i32
  }
  func.func @transform_2(%arg0: i32, %arg1: i32) -> (i32, i32) {
    %c0_i32 = arith.constant 0 : i32
    %c0_i32_0 = arith.constant 0 : i32
    return %c0_i32, %arg1 : i32, i32
  }
  func.func @transform_3(%arg0: i32, %arg1: i32) -> (i32, i32) {
    %c0_i32 = arith.constant 0 : i32
    return %arg0, %arg1 : i32, i32
  }
}

module attributes {stable_mosaic.version = 11 : i64} {
  func.func @_mm_kernel(%arg0: i32, %arg1: i32, %arg2: memref<128x1152xbf16, #tpu.memory_space<vmem>>, %arg3: memref<1152x128xbf16, #tpu.memory_space<vmem>>, %arg4: memref<1x128xf32, #tpu.memory_space<vmem>>, %arg5: memref<128x128xbf16, #tpu.memory_space<vmem>>) attributes {dimension_semantics = [#tpu.dimension_semantics<parallel>, #tpu.dimension_semantics<parallel>], iteration_bounds = array<i64: 1, 1>, scalar_prefetch = 0 : i64, scratch_operands = 0 : i64, tpu.core_type = #tpu.core_type<tc>, window_params = [{transform_indices = @transform_0, window_bounds = array<i64: 128, 1152>}, {transform_indices = @transform_1, window_bounds = array<i64: 1152, 128>}, {transform_indices = @transform_2, window_bounds = array<i64: 1, 128>}, {transform_indices = @transform_3, window_bounds = array<i64: 128, 128>}]} {
    %c0 = arith.constant 0 : index
    %c0_0 = arith.constant 0 : index
    %0 = vector.load %arg2[%c0, %c0_0] : memref<128x1152xbf16, #tpu.memory_space<vmem>>, vector<128x1152xbf16>
    %c0_1 = arith.constant 0 : index
    %c0_2 = arith.constant 0 : index
    %1 = vector.load %arg3[%c0_1, %c0_2] : memref<1152x128xbf16, #tpu.memory_space<vmem>>, vector<1152x128xbf16>
    %cst = arith.constant dense<0.000000e+00> : vector<128x128xf32>
    %2 = tpu.matmul %0, %1, %cst {dimension_numbers = #tpu.dot_dimension_numbers<[1], [0], [0], [1], [0, 0, 1, 1], [], []>} : vector<128x1152xbf16>, vector<1152x128xbf16>, vector<128x128xf32> -> vector<128x128xf32>
    %c0_3 = arith.constant 0 : index
    %c0_4 = arith.constant 0 : index
    %3 = vector.load %arg4[%c0_3, %c0_4] : memref<1x128xf32, #tpu.memory_space<vmem>>, vector<1x128xf32>
    %4 = vector.broadcast %3 : vector<1x128xf32> to vector<128x128xf32>
    %5 = arith.addf %2, %4 : vector<128x128xf32>
    %cst_5 = arith.constant 0.000000e+00 : f32
    %6 = vector.broadcast %cst_5 : f32 to vector<128x128xf32>
    %7 = arith.maximumf %5, %6 : vector<128x128xf32>
    %8 = arith.truncf %7 : vector<128x128xf32> to vector<128x128xbf16>
    %c0_6 = arith.constant 0 : index
    %c0_7 = arith.constant 0 : index
    %9 = vector.load %arg5[%c0_6, %c0_7] : memref<128x128xbf16, #tpu.memory_space<vmem>>, vector<128x128xbf16>
    tpu.vector_store %arg5[%c0_6, %c0_7], %8 {strides = array<i32>} : memref<128x128xbf16, #tpu.memory_space<vmem>>, vector<128x128xbf16>,
    return
  }
  func.func @transform_0(%arg0: i32, %arg1: i32) -> (i32, i32) {
    %c0_i32 = arith.constant 0 : i32
    %c0_i32_0 = arith.constant 0 : i32
    return %arg0, %c0_i32 : i32, i32
  }
  func.func @transform_1(%arg0: i32, %arg1: i32) -> (i32, i32) {
    %c0_i32 = arith.constant 0 : i32
    %c0_i32_0 = arith.constant 0 : i32
    return %c0_i32, %arg1 : i32, i32
  }
  func.func @transform_2(%arg0: i32, %arg1: i32) -> (i32, i32) {
    %c0_i32 = arith.constant 0 : i32
    %c0_i32_0 = arith.constant 0 : i32
    return %c0_i32, %arg1 : i32, i32
  }
  func.func @transform_3(%arg0: i32, %arg1: i32) -> (i32, i32) {
    %c0_i32 = arith.constant 0 : i32
    return %arg0, %arg1 : i32, i32
  }
}

module attributes {stable_mosaic.version = 11 : i64} {
  func.func @_mm_res_kernel(%arg0: i32, %arg1: i32, %arg2: memref<128x128xbf16, #tpu.memory_space<vmem>>, %arg3: memref<128x128xbf16, #tpu.memory_space<vmem>>, %arg4: memref<1x128xf32, #tpu.memory_space<vmem>>, %arg5: memref<128x128xbf16, #tpu.memory_space<vmem>>, %arg6: memref<128x128xbf16, #tpu.memory_space<vmem>>) attributes {dimension_semantics = [#tpu.dimension_semantics<parallel>, #tpu.dimension_semantics<parallel>], iteration_bounds = array<i64: 1, 2>, scalar_prefetch = 0 : i64, scratch_operands = 0 : i64, tpu.core_type = #tpu.core_type<tc>, window_params = [{transform_indices = @transform_0, window_bounds = array<i64: 128, 128>}, {transform_indices = @transform_1, window_bounds = array<i64: 128, 128>}, {transform_indices = @transform_2, window_bounds = array<i64: 1, 128>}, {transform_indices = @transform_3, window_bounds = array<i64: 128, 128>}, {transform_indices = @transform_4, window_bounds = array<i64: 128, 128>}]} {
    %c0 = arith.constant 0 : index
    %c0_0 = arith.constant 0 : index
    %0 = vector.load %arg2[%c0, %c0_0] : memref<128x128xbf16, #tpu.memory_space<vmem>>, vector<128x128xbf16>
    %c0_1 = arith.constant 0 : index
    %c0_2 = arith.constant 0 : index
    %1 = vector.load %arg3[%c0_1, %c0_2] : memref<128x128xbf16, #tpu.memory_space<vmem>>, vector<128x128xbf16>
    %cst = arith.constant dense<0.000000e+00> : vector<128x128xf32>
    %2 = tpu.matmul %0, %1, %cst {dimension_numbers = #tpu.dot_dimension_numbers<[1], [0], [0], [1], [0, 0, 1, 1], [], []>} : vector<128x128xbf16>, vector<128x128xbf16>, vector<128x128xf32> -> vector<128x128xf32>
    %c0_3 = arith.constant 0 : index
    %c0_4 = arith.constant 0 : index
    %3 = vector.load %arg4[%c0_3, %c0_4] : memref<1x128xf32, #tpu.memory_space<vmem>>, vector<1x128xf32>
    %4 = vector.broadcast %3 : vector<1x128xf32> to vector<128x128xf32>
    %5 = arith.addf %2, %4 : vector<128x128xf32>
    %c0_5 = arith.constant 0 : index
    %c0_6 = arith.constant 0 : index
    %6 = vector.load %arg5[%c0_5, %c0_6] : memref<128x128xbf16, #tpu.memory_space<vmem>>, vector<128x128xbf16>
    %7 = arith.extf %6 : vector<128x128xbf16> to vector<128x128xf32>
    %8 = arith.addf %5, %7 : vector<128x128xf32>
    %cst_7 = arith.constant 0.000000e+00 : f32
    %9 = vector.broadcast %cst_7 : f32 to vector<128x128xf32>
    %10 = arith.maximumf %8, %9 : vector<128x128xf32>
    %11 = arith.truncf %10 : vector<128x128xf32> to vector<128x128xbf16>
    %c0_8 = arith.constant 0 : index
    %c0_9 = arith.constant 0 : index
    %12 = vector.load %arg6[%c0_8, %c0_9] : memref<128x128xbf16, #tpu.memory_space<vmem>>, vector<128x128xbf16>
    tpu.vector_store %arg6[%c0_8, %c0_9], %11 {strides = array<i32>} : memref<128x128xbf16, #tpu.memory_space<vmem>>, vector<128x128xbf16>,
    return
  }
  func.func @transform_0(%arg0: i32, %arg1: i32) -> (i32, i32) {
    %c0_i32 = arith.constant 0 : i32
    %c0_i32_0 = arith.constant 0 : i32
    return %arg0, %c0_i32 : i32, i32
  }
  func.func @transform_1(%arg0: i32, %arg1: i32) -> (i32, i32) {
    %c0_i32 = arith.constant 0 : i32
    %c0_i32_0 = arith.constant 0 : i32
    return %c0_i32, %arg1 : i32, i32
  }
  func.func @transform_2(%arg0: i32, %arg1: i32) -> (i32, i32) {
    %c0_i32 = arith.constant 0 : i32
    %c0_i32_0 = arith.constant 0 : i32
    return %c0_i32, %arg1 : i32, i32
  }
  func.func @transform_3(%arg0: i32, %arg1: i32) -> (i32, i32) {
    %c0_i32 = arith.constant 0 : i32
    return %arg0, %arg1 : i32, i32
  }
  func.func @transform_4(%arg0: i32, %arg1: i32) -> (i32, i32) {
    %c0_i32 = arith.constant 0 : i32
    return %arg0, %arg1 : i32, i32
  }
}

module attributes {stable_mosaic.version = 11 : i64} {
  func.func @_mm_kernel(%arg0: i32, %arg1: i32, %arg2: memref<128x128xbf16, #tpu.memory_space<vmem>>, %arg3: memref<128x128xbf16, #tpu.memory_space<vmem>>, %arg4: memref<1x128xf32, #tpu.memory_space<vmem>>, %arg5: memref<128x128xbf16, #tpu.memory_space<vmem>>) attributes {dimension_semantics = [#tpu.dimension_semantics<parallel>, #tpu.dimension_semantics<parallel>], iteration_bounds = array<i64: 1, 2>, scalar_prefetch = 0 : i64, scratch_operands = 0 : i64, tpu.core_type = #tpu.core_type<tc>, window_params = [{transform_indices = @transform_0, window_bounds = array<i64: 128, 128>}, {transform_indices = @transform_1, window_bounds = array<i64: 128, 128>}, {transform_indices = @transform_2, window_bounds = array<i64: 1, 128>}, {transform_indices = @transform_3, window_bounds = array<i64: 128, 128>}]} {
    %c0 = arith.constant 0 : index
    %c0_0 = arith.constant 0 : index
    %0 = vector.load %arg2[%c0, %c0_0] : memref<128x128xbf16, #tpu.memory_space<vmem>>, vector<128x128xbf16>
    %c0_1 = arith.constant 0 : index
    %c0_2 = arith.constant 0 : index
    %1 = vector.load %arg3[%c0_1, %c0_2] : memref<128x128xbf16, #tpu.memory_space<vmem>>, vector<128x128xbf16>
    %cst = arith.constant dense<0.000000e+00> : vector<128x128xf32>
    %2 = tpu.matmul %0, %1, %cst {dimension_numbers = #tpu.dot_dimension_numbers<[1], [0], [0], [1], [0, 0, 1, 1], [], []>} : vector<128x128xbf16>, vector<128x128xbf16>, vector<128x128xf32> -> vector<128x128xf32>
    %c0_3 = arith.constant 0 : index
    %c0_4 = arith.constant 0 : index
    %3 = vector.load %arg4[%c0_3, %c0_4] : memref<1x128xf32, #tpu.memory_space<vmem>>, vector<1x128xf32>
    %4 = vector.broadcast %3 : vector<1x128xf32> to vector<128x128xf32>
    %5 = arith.addf %2, %4 : vector<128x128xf32>
    %6 = arith.truncf %5 : vector<128x128xf32> to vector<128x128xbf16>
    %c0_5 = arith.constant 0 : index
    %c0_6 = arith.constant 0 : index
    %7 = vector.load %arg5[%c0_5, %c0_6] : memref<128x128xbf16, #tpu.memory_space<vmem>>, vector<128x128xbf16>
    tpu.vector_store %arg5[%c0_5, %c0_6], %6 {strides = array<i32>} : memref<128x128xbf16, #tpu.memory_space<vmem>>, vector<128x128xbf16>,
    return
  }
  func.func @transform_0(%arg0: i32, %arg1: i32) -> (i32, i32) {
    %c0_i32 = arith.constant 0 : i32
    %c0_i32_0 = arith.constant 0 : i32
    return %arg0, %c0_i32 : i32, i32
  }
  func.func @transform_1(%arg0: i32, %arg1: i32) -> (i32, i32) {
    %c0_i32 = arith.constant 0 : i32
    %c0_i32_0 = arith.constant 0 : i32
    return %c0_i32, %arg1 : i32, i32
  }
  func.func @transform_2(%arg0: i32, %arg1: i32) -> (i32, i32) {
    %c0_i32 = arith.constant 0 : i32
    %c0_i32_0 = arith.constant 0 : i32
    return %c0_i32, %arg1 : i32, i32
  }
  func.func @transform_3(%arg0: i32, %arg1: i32) -> (i32, i32) {
    %c0_i32 = arith.constant 0 : i32
    return %arg0, %arg1 : i32, i32
  }
}

module attributes {stable_mosaic.version = 11 : i64} {
  func.func @_mm_kernel(%arg0: i32, %arg1: i32, %arg2: memref<128x256xbf16, #tpu.memory_space<vmem>>, %arg3: memref<256x128xbf16, #tpu.memory_space<vmem>>, %arg4: memref<1x128xf32, #tpu.memory_space<vmem>>, %arg5: memref<128x128xbf16, #tpu.memory_space<vmem>>) attributes {dimension_semantics = [#tpu.dimension_semantics<parallel>, #tpu.dimension_semantics<parallel>], iteration_bounds = array<i64: 1, 1>, scalar_prefetch = 0 : i64, scratch_operands = 0 : i64, tpu.core_type = #tpu.core_type<tc>, window_params = [{transform_indices = @transform_0, window_bounds = array<i64: 128, 256>}, {transform_indices = @transform_1, window_bounds = array<i64: 256, 128>}, {transform_indices = @transform_2, window_bounds = array<i64: 1, 128>}, {transform_indices = @transform_3, window_bounds = array<i64: 128, 128>}]} {
    %c0 = arith.constant 0 : index
    %c0_0 = arith.constant 0 : index
    %0 = vector.load %arg2[%c0, %c0_0] : memref<128x256xbf16, #tpu.memory_space<vmem>>, vector<128x256xbf16>
    %c0_1 = arith.constant 0 : index
    %c0_2 = arith.constant 0 : index
    %1 = vector.load %arg3[%c0_1, %c0_2] : memref<256x128xbf16, #tpu.memory_space<vmem>>, vector<256x128xbf16>
    %cst = arith.constant dense<0.000000e+00> : vector<128x128xf32>
    %2 = tpu.matmul %0, %1, %cst {dimension_numbers = #tpu.dot_dimension_numbers<[1], [0], [0], [1], [0, 0, 1, 1], [], []>} : vector<128x256xbf16>, vector<256x128xbf16>, vector<128x128xf32> -> vector<128x128xf32>
    %c0_3 = arith.constant 0 : index
    %c0_4 = arith.constant 0 : index
    %3 = vector.load %arg4[%c0_3, %c0_4] : memref<1x128xf32, #tpu.memory_space<vmem>>, vector<1x128xf32>
    %4 = vector.broadcast %3 : vector<1x128xf32> to vector<128x128xf32>
    %5 = arith.addf %2, %4 : vector<128x128xf32>
    %cst_5 = arith.constant 0.000000e+00 : f32
    %6 = vector.broadcast %cst_5 : f32 to vector<128x128xf32>
    %7 = arith.maximumf %5, %6 : vector<128x128xf32>
    %8 = arith.truncf %7 : vector<128x128xf32> to vector<128x128xbf16>
    %c0_6 = arith.constant 0 : index
    %c0_7 = arith.constant 0 : index
    %9 = vector.load %arg5[%c0_6, %c0_7] : memref<128x128xbf16, #tpu.memory_space<vmem>>, vector<128x128xbf16>
    tpu.vector_store %arg5[%c0_6, %c0_7], %8 {strides = array<i32>} : memref<128x128xbf16, #tpu.memory_space<vmem>>, vector<128x128xbf16>,
    return
  }
  func.func @transform_0(%arg0: i32, %arg1: i32) -> (i32, i32) {
    %c0_i32 = arith.constant 0 : i32
    %c0_i32_0 = arith.constant 0 : i32
    return %arg0, %c0_i32 : i32, i32
  }
  func.func @transform_1(%arg0: i32, %arg1: i32) -> (i32, i32) {
    %c0_i32 = arith.constant 0 : i32
    %c0_i32_0 = arith.constant 0 : i32
    return %c0_i32, %arg1 : i32, i32
  }
  func.func @transform_2(%arg0: i32, %arg1: i32) -> (i32, i32) {
    %c0_i32 = arith.constant 0 : i32
    %c0_i32_0 = arith.constant 0 : i32
    return %c0_i32, %arg1 : i32, i32
  }
  func.func @transform_3(%arg0: i32, %arg1: i32) -> (i32, i32) {
    %c0_i32 = arith.constant 0 : i32
    return %arg0, %arg1 : i32, i32
  }
}

module attributes {stable_mosaic.version = 11 : i64} {
  func.func @_mm_kernel(%arg0: i32, %arg1: i32, %arg2: memref<32x1152xbf16, #tpu.memory_space<vmem>>, %arg3: memref<1152x128xbf16, #tpu.memory_space<vmem>>, %arg4: memref<1x128xf32, #tpu.memory_space<vmem>>, %arg5: memref<32x128xbf16, #tpu.memory_space<vmem>>) attributes {dimension_semantics = [#tpu.dimension_semantics<parallel>, #tpu.dimension_semantics<parallel>], iteration_bounds = array<i64: 1, 1>, scalar_prefetch = 0 : i64, scratch_operands = 0 : i64, tpu.core_type = #tpu.core_type<tc>, window_params = [{transform_indices = @transform_0, window_bounds = array<i64: 32, 1152>}, {transform_indices = @transform_1, window_bounds = array<i64: 1152, 128>}, {transform_indices = @transform_2, window_bounds = array<i64: 1, 128>}, {transform_indices = @transform_3, window_bounds = array<i64: 32, 128>}]} {
    %c0 = arith.constant 0 : index
    %c0_0 = arith.constant 0 : index
    %0 = vector.load %arg2[%c0, %c0_0] : memref<32x1152xbf16, #tpu.memory_space<vmem>>, vector<32x1152xbf16>
    %c0_1 = arith.constant 0 : index
    %c0_2 = arith.constant 0 : index
    %1 = vector.load %arg3[%c0_1, %c0_2] : memref<1152x128xbf16, #tpu.memory_space<vmem>>, vector<1152x128xbf16>
    %cst = arith.constant dense<0.000000e+00> : vector<32x128xf32>
    %2 = tpu.matmul %0, %1, %cst {dimension_numbers = #tpu.dot_dimension_numbers<[1], [0], [0], [1], [0, 0, 1, 1], [], []>} : vector<32x1152xbf16>, vector<1152x128xbf16>, vector<32x128xf32> -> vector<32x128xf32>
    %c0_3 = arith.constant 0 : index
    %c0_4 = arith.constant 0 : index
    %3 = vector.load %arg4[%c0_3, %c0_4] : memref<1x128xf32, #tpu.memory_space<vmem>>, vector<1x128xf32>
    %4 = vector.broadcast %3 : vector<1x128xf32> to vector<32x128xf32>
    %5 = arith.addf %2, %4 : vector<32x128xf32>
    %cst_5 = arith.constant 0.000000e+00 : f32
    %6 = vector.broadcast %cst_5 : f32 to vector<32x128xf32>
    %7 = arith.maximumf %5, %6 : vector<32x128xf32>
    %8 = arith.truncf %7 : vector<32x128xf32> to vector<32x128xbf16>
    %c0_6 = arith.constant 0 : index
    %c0_7 = arith.constant 0 : index
    %9 = vector.load %arg5[%c0_6, %c0_7] : memref<32x128xbf16, #tpu.memory_space<vmem>>, vector<32x128xbf16>
    tpu.vector_store %arg5[%c0_6, %c0_7], %8 {strides = array<i32>} : memref<32x128xbf16, #tpu.memory_space<vmem>>, vector<32x128xbf16>,
    return
  }
  func.func @transform_0(%arg0: i32, %arg1: i32) -> (i32, i32) {
    %c0_i32 = arith.constant 0 : i32
    %c0_i32_0 = arith.constant 0 : i32
    return %arg0, %c0_i32 : i32, i32
  }
  func.func @transform_1(%arg0: i32, %arg1: i32) -> (i32, i32) {
    %c0_i32 = arith.constant 0 : i32
    %c0_i32_0 = arith.constant 0 : i32
    return %c0_i32, %arg1 : i32, i32
  }
  func.func @transform_2(%arg0: i32, %arg1: i32) -> (i32, i32) {
    %c0_i32 = arith.constant 0 : i32
    %c0_i32_0 = arith.constant 0 : i32
    return %c0_i32, %arg1 : i32, i32
  }
  func.func @transform_3(%arg0: i32, %arg1: i32) -> (i32, i32) {
    %c0_i32 = arith.constant 0 : i32
    return %arg0, %arg1 : i32, i32
  }
}

module attributes {stable_mosaic.version = 11 : i64} {
  func.func @_mm_kernel(%arg0: i32, %arg1: i32, %arg2: memref<32x256xbf16, #tpu.memory_space<vmem>>, %arg3: memref<256x128xbf16, #tpu.memory_space<vmem>>, %arg4: memref<1x128xf32, #tpu.memory_space<vmem>>, %arg5: memref<32x128xbf16, #tpu.memory_space<vmem>>) attributes {dimension_semantics = [#tpu.dimension_semantics<parallel>, #tpu.dimension_semantics<parallel>], iteration_bounds = array<i64: 1, 4>, scalar_prefetch = 0 : i64, scratch_operands = 0 : i64, tpu.core_type = #tpu.core_type<tc>, window_params = [{transform_indices = @transform_0, window_bounds = array<i64: 32, 256>}, {transform_indices = @transform_1, window_bounds = array<i64: 256, 128>}, {transform_indices = @transform_2, window_bounds = array<i64: 1, 128>}, {transform_indices = @transform_3, window_bounds = array<i64: 32, 128>}]} {
    %c0 = arith.constant 0 : index
    %c0_0 = arith.constant 0 : index
    %0 = vector.load %arg2[%c0, %c0_0] : memref<32x256xbf16, #tpu.memory_space<vmem>>, vector<32x256xbf16>
    %c0_1 = arith.constant 0 : index
    %c0_2 = arith.constant 0 : index
    %1 = vector.load %arg3[%c0_1, %c0_2] : memref<256x128xbf16, #tpu.memory_space<vmem>>, vector<256x128xbf16>
    %cst = arith.constant dense<0.000000e+00> : vector<32x128xf32>
    %2 = tpu.matmul %0, %1, %cst {dimension_numbers = #tpu.dot_dimension_numbers<[1], [0], [0], [1], [0, 0, 1, 1], [], []>} : vector<32x256xbf16>, vector<256x128xbf16>, vector<32x128xf32> -> vector<32x128xf32>
    %c0_3 = arith.constant 0 : index
    %c0_4 = arith.constant 0 : index
    %3 = vector.load %arg4[%c0_3, %c0_4] : memref<1x128xf32, #tpu.memory_space<vmem>>, vector<1x128xf32>
    %4 = vector.broadcast %3 : vector<1x128xf32> to vector<32x128xf32>
    %5 = arith.addf %2, %4 : vector<32x128xf32>
    %6 = arith.truncf %5 : vector<32x128xf32> to vector<32x128xbf16>
    %c0_5 = arith.constant 0 : index
    %c0_6 = arith.constant 0 : index
    %7 = vector.load %arg5[%c0_5, %c0_6] : memref<32x128xbf16, #tpu.memory_space<vmem>>, vector<32x128xbf16>
    tpu.vector_store %arg5[%c0_5, %c0_6], %6 {strides = array<i32>} : memref<32x128xbf16, #tpu.memory_space<vmem>>, vector<32x128xbf16>,
    return
  }
  func.func @transform_0(%arg0: i32, %arg1: i32) -> (i32, i32) {
    %c0_i32 = arith.constant 0 : i32
    %c0_i32_0 = arith.constant 0 : i32
    return %arg0, %c0_i32 : i32, i32
  }
  func.func @transform_1(%arg0: i32, %arg1: i32) -> (i32, i32) {
    %c0_i32 = arith.constant 0 : i32
    %c0_i32_0 = arith.constant 0 : i32
    return %c0_i32, %arg1 : i32, i32
  }
  func.func @transform_2(%arg0: i32, %arg1: i32) -> (i32, i32) {
    %c0_i32 = arith.constant 0 : i32
    %c0_i32_0 = arith.constant 0 : i32
    return %c0_i32, %arg1 : i32, i32
  }
  func.func @transform_3(%arg0: i32, %arg1: i32) -> (i32, i32) {
    %c0_i32 = arith.constant 0 : i32
    return %arg0, %arg1 : i32, i32
  }
}

module attributes {stable_mosaic.version = 11 : i64} {
  func.func @_mm_res_kernel(%arg0: i32, %arg1: i32, %arg2: memref<32x128xbf16, #tpu.memory_space<vmem>>, %arg3: memref<128x128xbf16, #tpu.memory_space<vmem>>, %arg4: memref<1x128xf32, #tpu.memory_space<vmem>>, %arg5: memref<32x128xbf16, #tpu.memory_space<vmem>>, %arg6: memref<32x128xbf16, #tpu.memory_space<vmem>>) attributes {dimension_semantics = [#tpu.dimension_semantics<parallel>, #tpu.dimension_semantics<parallel>], iteration_bounds = array<i64: 1, 4>, scalar_prefetch = 0 : i64, scratch_operands = 0 : i64, tpu.core_type = #tpu.core_type<tc>, window_params = [{transform_indices = @transform_0, window_bounds = array<i64: 32, 128>}, {transform_indices = @transform_1, window_bounds = array<i64: 128, 128>}, {transform_indices = @transform_2, window_bounds = array<i64: 1, 128>}, {transform_indices = @transform_3, window_bounds = array<i64: 32, 128>}, {transform_indices = @transform_4, window_bounds = array<i64: 32, 128>}]} {
    %c0 = arith.constant 0 : index
    %c0_0 = arith.constant 0 : index
    %0 = vector.load %arg2[%c0, %c0_0] : memref<32x128xbf16, #tpu.memory_space<vmem>>, vector<32x128xbf16>
    %c0_1 = arith.constant 0 : index
    %c0_2 = arith.constant 0 : index
    %1 = vector.load %arg3[%c0_1, %c0_2] : memref<128x128xbf16, #tpu.memory_space<vmem>>, vector<128x128xbf16>
    %cst = arith.constant dense<0.000000e+00> : vector<32x128xf32>
    %2 = tpu.matmul %0, %1, %cst {dimension_numbers = #tpu.dot_dimension_numbers<[1], [0], [0], [1], [0, 0, 1, 1], [], []>} : vector<32x128xbf16>, vector<128x128xbf16>, vector<32x128xf32> -> vector<32x128xf32>
    %c0_3 = arith.constant 0 : index
    %c0_4 = arith.constant 0 : index
    %3 = vector.load %arg4[%c0_3, %c0_4] : memref<1x128xf32, #tpu.memory_space<vmem>>, vector<1x128xf32>
    %4 = vector.broadcast %3 : vector<1x128xf32> to vector<32x128xf32>
    %5 = arith.addf %2, %4 : vector<32x128xf32>
    %c0_5 = arith.constant 0 : index
    %c0_6 = arith.constant 0 : index
    %6 = vector.load %arg5[%c0_5, %c0_6] : memref<32x128xbf16, #tpu.memory_space<vmem>>, vector<32x128xbf16>
    %7 = arith.extf %6 : vector<32x128xbf16> to vector<32x128xf32>
    %8 = arith.addf %5, %7 : vector<32x128xf32>
    %cst_7 = arith.constant 0.000000e+00 : f32
    %9 = vector.broadcast %cst_7 : f32 to vector<32x128xf32>
    %10 = arith.maximumf %8, %9 : vector<32x128xf32>
    %11 = arith.truncf %10 : vector<32x128xf32> to vector<32x128xbf16>
    %c0_8 = arith.constant 0 : index
    %c0_9 = arith.constant 0 : index
    %12 = vector.load %arg6[%c0_8, %c0_9] : memref<32x128xbf16, #tpu.memory_space<vmem>>, vector<32x128xbf16>
    tpu.vector_store %arg6[%c0_8, %c0_9], %11 {strides = array<i32>} : memref<32x128xbf16, #tpu.memory_space<vmem>>, vector<32x128xbf16>,
    return
  }
  func.func @transform_0(%arg0: i32, %arg1: i32) -> (i32, i32) {
    %c0_i32 = arith.constant 0 : i32
    %c0_i32_0 = arith.constant 0 : i32
    return %arg0, %c0_i32 : i32, i32
  }
  func.func @transform_1(%arg0: i32, %arg1: i32) -> (i32, i32) {
    %c0_i32 = arith.constant 0 : i32
    %c0_i32_0 = arith.constant 0 : i32
    return %c0_i32, %arg1 : i32, i32
  }
  func.func @transform_2(%arg0: i32, %arg1: i32) -> (i32, i32) {
    %c0_i32 = arith.constant 0 : i32
    %c0_i32_0 = arith.constant 0 : i32
    return %c0_i32, %arg1 : i32, i32
  }
  func.func @transform_3(%arg0: i32, %arg1: i32) -> (i32, i32) {
    %c0_i32 = arith.constant 0 : i32
    return %arg0, %arg1 : i32, i32
  }
  func.func @transform_4(%arg0: i32, %arg1: i32) -> (i32, i32) {
    %c0_i32 = arith.constant 0 : i32
    return %arg0, %arg1 : i32, i32
  }
}

module attributes {stable_mosaic.version = 11 : i64} {
  func.func @_mm_kernel(%arg0: i32, %arg1: i32, %arg2: memref<32x512xbf16, #tpu.memory_space<vmem>>, %arg3: memref<512x128xbf16, #tpu.memory_space<vmem>>, %arg4: memref<1x128xf32, #tpu.memory_space<vmem>>, %arg5: memref<32x128xbf16, #tpu.memory_space<vmem>>) attributes {dimension_semantics = [#tpu.dimension_semantics<parallel>, #tpu.dimension_semantics<parallel>], iteration_bounds = array<i64: 1, 1>, scalar_prefetch = 0 : i64, scratch_operands = 0 : i64, tpu.core_type = #tpu.core_type<tc>, window_params = [{transform_indices = @transform_0, window_bounds = array<i64: 32, 512>}, {transform_indices = @transform_1, window_bounds = array<i64: 512, 128>}, {transform_indices = @transform_2, window_bounds = array<i64: 1, 128>}, {transform_indices = @transform_3, window_bounds = array<i64: 32, 128>}]} {
    %c0 = arith.constant 0 : index
    %c0_0 = arith.constant 0 : index
    %0 = vector.load %arg2[%c0, %c0_0] : memref<32x512xbf16, #tpu.memory_space<vmem>>, vector<32x512xbf16>
    %c0_1 = arith.constant 0 : index
    %c0_2 = arith.constant 0 : index
    %1 = vector.load %arg3[%c0_1, %c0_2] : memref<512x128xbf16, #tpu.memory_space<vmem>>, vector<512x128xbf16>
    %cst = arith.constant dense<0.000000e+00> : vector<32x128xf32>
    %2 = tpu.matmul %0, %1, %cst {dimension_numbers = #tpu.dot_dimension_numbers<[1], [0], [0], [1], [0, 0, 1, 1], [], []>} : vector<32x512xbf16>, vector<512x128xbf16>, vector<32x128xf32> -> vector<32x128xf32>
    %c0_3 = arith.constant 0 : index
    %c0_4 = arith.constant 0 : index
    %3 = vector.load %arg4[%c0_3, %c0_4] : memref<1x128xf32, #tpu.memory_space<vmem>>, vector<1x128xf32>
    %4 = vector.broadcast %3 : vector<1x128xf32> to vector<32x128xf32>
    %5 = arith.addf %2, %4 : vector<32x128xf32>
    %cst_5 = arith.constant 0.000000e+00 : f32
    %6 = vector.broadcast %cst_5 : f32 to vector<32x128xf32>
    %7 = arith.maximumf %5, %6 : vector<32x128xf32>
    %8 = arith.truncf %7 : vector<32x128xf32> to vector<32x128xbf16>
    %c0_6 = arith.constant 0 : index
    %c0_7 = arith.constant 0 : index
    %9 = vector.load %arg5[%c0_6, %c0_7] : memref<32x128xbf16, #tpu.memory_space<vmem>>, vector<32x128xbf16>
    tpu.vector_store %arg5[%c0_6, %c0_7], %8 {strides = array<i32>} : memref<32x128xbf16, #tpu.memory_space<vmem>>, vector<32x128xbf16>,
    return
  }
  func.func @transform_0(%arg0: i32, %arg1: i32) -> (i32, i32) {
    %c0_i32 = arith.constant 0 : i32
    %c0_i32_0 = arith.constant 0 : i32
    return %arg0, %c0_i32 : i32, i32
  }
  func.func @transform_1(%arg0: i32, %arg1: i32) -> (i32, i32) {
    %c0_i32 = arith.constant 0 : i32
    %c0_i32_0 = arith.constant 0 : i32
    return %c0_i32, %arg1 : i32, i32
  }
  func.func @transform_2(%arg0: i32, %arg1: i32) -> (i32, i32) {
    %c0_i32 = arith.constant 0 : i32
    %c0_i32_0 = arith.constant 0 : i32
    return %c0_i32, %arg1 : i32, i32
  }
  func.func @transform_3(%arg0: i32, %arg1: i32) -> (i32, i32) {
    %c0_i32 = arith.constant 0 : i32
    return %arg0, %arg1 : i32, i32
  }
}

</mosaic_0001>

<bundles_post_ra>
// kernel: dino_forward.26
= control target key start
LH: loop header
LB: loop body
LE: loop exit
PB: predicated region body
PF: predicated region fallthrough
CT: control target
= control target key end

     0   :  { %s638_s6 = smov 0   ;;  %s993_s0 = inlined_call_operand.vmem [shape: bf16[2,18,9,256], index: 0, kind: input, shape index: {}]   ;;  %s994_s1 = inlined_call_operand.vmem [shape: bf16[2,8,8,128], index: 1, kind: output, shape index: {}]  }
   0x1 LB: > { %s573_s7 = sadd.s32 4294967295, %s626_s6   ;;  %p577_p0 = scmp.ge.s32.totalorder %s626_s6, 1  ;;  %s626_s6 = sphi %s638_s6, %s11_s6  }
   0x2   : > { %p87_p1 = scmp.lt.s32.totalorder %s626_s6, 3 }
   0x4   : > { %p88_p2 = pnand %p577_p0, %p87_p1 }
   0x6   : > { %91 = sbr.rel (%p88_p2) target bundleno = 80 (0x50), region = 24 }
   0xd   : > { %p107_p3 = scmp.lt.s32.totalorder %s573_s7, 1  ;;  %vm219_vm0 = vsmask.f32 3328  ;;  %vm220_vm1 = vsmask.f32 7440 }
   0xe   : > { %vm785_vm2 = vmor %vm219_vm0, %vm220_vm1 }
   0xf   : > { %s1015_s7 = smov (!%p107_p3, %s573_s7), 1 }
  0x10   : > { %s611_s8 = smul.u32 288, %s1015_s7  ;;  %s583_s12 = sshll.u32 %s1015_s7, 5 }
  0x11   : > { %s116_s15 = scalar_lea.vmem %s994_s1, %s583_s12 }
  0x12   : > { %s652_s11 = scalar_lea.vmem %s993_s0, %s611_s8 }
  0x13   : > { %v117_v0 = vld [vmem:[%s652_s11] sm:$0xff]  ;;  %v656_v1 = vld [vmem:[%s652_s11 + $0x10] sm:$0xff]  ;;  %v118_v32 = vld [vmem:[%s652_s11 + $0x8] sm:$0x11] }
  0x14   : > { %v659_v2 = vld [vmem:[%s652_s11 + $0x20] sm:$0xff]  ;;  %v662_v3 = vld [vmem:[%s652_s11 + $0x30] sm:$0xff]  ;;  %v168_v4 = vrot.slane %v117_v0, 4  ;;  %v169_v5 = vrot.slane %v656_v1, 4  ;;  %v120_v45 = vld [vmem:[%s652_s11 + $0x18] sm:$0x11] }
  0x15   : > { %v666_v6 = vld [vmem:[%s652_s11 + $0x40] sm:$0xff]  ;;  %v669_v7 = vld [vmem:[%s652_s11 + $0x50] sm:$0xff]  ;;  %v170_v8 = vrot.slane %v659_v2, 4  ;;  %v171_v9 = vrot.slane %v662_v3, 4  ;;  %v223_v49 = vshrl.u32 %v117_v0, 16  ;;  %v226_v53 = vshll.u32 %v117_v0, 16 }
  0x16   : > { %v674_v10 = vld [vmem:[%s652_s11 + $0x60] sm:$0xff]  ;;  %v172_v11 = vrot.slane %v666_v6, 4  ;;  %v173_v12 = vrot.slane %v669_v7, 4  ;;  %v679_v13 = vld [vmem:[%s652_s11 + $0x70] sm:$0xff]  ;;  %v690_v19 = vmax.bf16 %v168_v4, %v117_v0  ;;  %v693_v20 = vmax.bf16 %v169_v5, %v656_v1  ;;  %v122_v50 = vld [vmem:[%s652_s11 + $0x28] sm:$0x11] }
  0x17   : > { %v682_v14 = vld [vmem:[%s652_s11 + $0x80] sm:$0xff]  ;;  %v174_v15 = vrot.slane %v674_v10, 4  ;;  %v686_v16 = vld [vmem:[%s652_s11 + $0x90] sm:$0xff]  ;;  %v175_v17 = vrot.slane %v679_v13, 4  ;;  %v703_v24 = vmax.bf16 %v170_v8, %v659_v2  ;;  %v706_v25 = vmax.bf16 %v171_v9, %v662_v3  ;;  %v124_v63 = vld [vmem:[%s652_s11 + $0x38] sm:$0x11] }
  0x18   : > { %v176_v18 = vrot.slane %v682_v14, 4  ;;  %v696_v21 = vld [vmem:[%s652_s11 + $0xa0] sm:$0xff]  ;;  %v699_v22 = vld [vmem:[%s652_s11 + $0xb0] sm:$0xff]  ;;  %v177_v23 = vrot.slane %v686_v16, 4  ;;  %v709_v26 = vmax.bf16 %v172_v11, %v666_v6  ;;  %v717_v30 = vmax.bf16 %v173_v12, %v669_v7 }
  0x19   : > { %v712_v27 = vld [vmem:[%s652_s11 + $0xc0] sm:$0xff]  ;;  %v178_v28 = vrot.slane %v696_v21, 4  ;;  %v179_v29 = vrot.slane %v699_v22, 4  ;;  %v720_v31 = vmax.bf16 %v174_v15, %v674_v10  ;;  %v724_v33 = vld [vmem:[%s652_s11 + $0xd0] sm:$0xff]  ;;  %v731_v36 = vmax.bf16 %v175_v17, %v679_v13  ;;  %v126_v17 = vld [vmem:[%s652_s11 + $0x48] sm:$0x11] }
  0x1a   : > { %v727_v34 = vld [vmem:[%s652_s11 + $0xe0] sm:$0xff]  ;;  %v180_v35 = vrot.slane %v712_v27, 4  ;;  %v734_v37 = vmax.bf16 %v176_v18, %v682_v14  ;;  %v737_v38 = vmax.bf16 %v177_v23, %v686_v16  ;;  %v740_v39 = vld [vmem:[%s652_s11 + $0xf0] sm:$0xff]  ;;  %v181_v41 = vrot.slane %v724_v33, 4 }
  0x1b   : > { %v743_v40 = vld [vmem:[%s652_s11 + $0x100] sm:$0xff]  ;;  %v182_v42 = vrot.slane %v727_v34, 4  ;;  %v748_v43 = vmax.bf16 %v178_v28, %v696_v21  ;;  %v751_v44 = vmax.bf16 %v179_v29, %v699_v22  ;;  %v183_v46 = vrot.slane %v740_v39, 4 }
  0x1c   : > { %v184_v47 = vrot.slane %v743_v40, 4  ;;  %v757_v48 = vmax.bf16 %v180_v35, %v712_v27  ;;  %v761_v51 = vmax.bf16 %v181_v41, %v724_v33  ;;  %v232_v54 = vshll.u32 %v118_v32, 16 }
  0x1d   : > { %v764_v52 = vmax.bf16 %v182_v42, %v727_v34  ;;  %v767_v55 = vmax.bf16 %v183_v46, %v740_v39  ;;  %v225_v57 = vrot.slane %v223_v49, 4  ;;  %v237_v58 = vshrl.u32 %v656_v1, 16  ;;  %v128_v49 = vld [vmem:[%s652_s11 + $0x58] sm:$0x11] }
  0x1e   : > { %995 = vst [vmem:[#allocation2_spill] sm:$0xff] %v761_v51  ;;  %v770_v56 = vmax.bf16 %v184_v47, %v743_v40  ;;  %v228_v59 = vrot.slane %v226_v53, 5  ;;  %v773_v60 = vrot.slane %v232_v54, 5  ;;  %v240_v61 = vshll.u32 %v656_v1, 16 }
  0x1f   : > { %996 = vst [vmem:[#allocation3_spill] sm:$0xff] %v764_v52  ;;  %997 = vst [vmem:[#allocation4_spill] sm:$0xff] %v767_v55  ;;  %v246_v62 = vshll.u32 %v120_v45, 16  ;;  %v239_v4 = vrot.slane %v237_v58, 4  ;;  %v251_v0 = vshrl.u32 %v659_v2, 16  ;;  %v254_v5 = vshll.u32 %v659_v2, 16 }
  0x20   : > { %998 = vst [vmem:[#allocation5_spill] sm:$0xff] %v770_v56  ;;  %v260_v8 = vshll.u32 %v122_v50, 16  ;;  %v229_v9 = vor.u32 %v228_v59, %v225_v57  ;;  %v242_v11 = vrot.slane %v240_v61, 5  ;;  %v265_v15 = vshrl.u32 %v662_v3, 16 }
  0x21   : > { %v779_v12 = vrot.slane %v246_v62, 5  ;;  %v253_v18 = vrot.slane %v251_v0, 4  ;;  %v256_v23 = vrot.slane %v254_v5, 5  ;;  %v268_v2 = vshll.u32 %v662_v3, 16  ;;  %v130_v62 = vld [vmem:[%s652_s11 + $0x68] sm:$0x11] }
  0x22   : > { %v789_v28 = vrot.slane %v260_v8, 5  ;;  %v792_v29 = vrot.slane %v229_v9, 4  ;;  %v243_v32 = vor.u32 %v242_v11, %v239_v4  ;;  %v267_v35 = vrot.slane %v265_v15, 4  ;;  %v132_v15 = vld [vmem:[%s652_s11 + $0x78] sm:$0x11] }
  0x23   : > { %v274_v41 = vshll.u32 %v124_v63, 16  ;;  %v257_v42 = vor.u32 %v256_v23, %v253_v18  ;;  %v270_v45 = vrot.slane %v268_v2, 5  ;;  %v279_v46 = vshrl.u32 %v666_v6, 16  ;;  %v142_v5 = vld [vmem:[%s652_s11 + $0xc8] sm:$0x11] }
  0x24   : > { %v282_v47 = vshll.u32 %v666_v6, 16  ;;  %v801_v53 = vrot.slane %v243_v32, 4  ;;  %v288_v54 = vshll.u32 %v126_v17, 16  ;;  %v293_v4 = vshrl.u32 %v669_v7, 16 }
  0x25   : > { %v803_v3 = vrot.slane %v274_v41, 5  ;;  %v805_v57 = vrot.slane %v257_v42, 4  ;;  %v271_v58 = vor.u32 %v270_v45, %v267_v35  ;;  %v281_v59 = vrot.slane %v279_v46, 4  ;;  %v134_v42 = vld [vmem:[%s652_s11 + $0x88] sm:$0x11] }
  0x26   : > { %v284_v61 = vrot.slane %v282_v47, 5  ;;  %v812_v63 = vrot.slane %v288_v54, 5  ;;  %v296_v0 = vshll.u32 %v669_v7, 16  ;;  %v302_v11 = vshll.u32 %v128_v49, 16 }
  0x27   : > { %v820_v8 = vrot.slane %v271_v58, 4  ;;  %v295_v17 = vrot.slane %v293_v4, 4  ;;  %v307_v23 = vshrl.u32 %v674_v10, 16  ;;  %v310_v2 = vshll.u32 %v674_v10, 16 }
  0x28   : > { %v285_v9 = vor.u32 %v284_v61, %v281_v59  ;;  %v298_v18 = vrot.slane %v296_v0, 5  ;;  %v831_v35 = vrot.slane %v302_v11, 5  ;;  %v316_v41 = vshll.u32 %v130_v62, 16 }
  0x29   : > { %v309_v46 = vrot.slane %v307_v23, 4  ;;  %v312_v47 = vrot.slane %v310_v2, 5  ;;  %v321_v49 = vshrl.u32 %v679_v13, 16  ;;  %v324_v58 = vshll.u32 %v679_v13, 16 }
  0x2a   : > { %v829_v32 = vrot.slane %v285_v9, 4  ;;  %v299_v45 = vor.u32 %v298_v18, %v295_v17  ;;  %v839_v54 = vrot.slane %v316_v41, 5  ;;  %v330_v59 = vshll.u32 %v132_v15, 16  ;;  %v136_v9 = vld [vmem:[%s652_s11 + $0x98] sm:$0x11] }
  0x2b   : > { %v313_v62 = vor.u32 %v312_v47, %v309_v46  ;;  %v323_v4 = vrot.slane %v321_v49, 4  ;;  %v335_v0 = vshrl.u32 %v682_v14, 16  ;;  %v326_v11 = vrot.slane %v324_v58, 5 }
  0x2c   : > { %v842_v61 = vrot.slane %v299_v45, 4  ;;  %v846_v17 = vrot.slane %v330_v59, 5  ;;  %v338_v18 = vshll.u32 %v682_v14, 16  ;;  %v344_v23 = vshll.u32 %v134_v42, 16  ;;  %v138_v45 = vld [vmem:[%s652_s11 + $0xa8] sm:$0x11] }
  0x2d   : > { %v853_v15 = vrot.slane %v313_v62, 4  ;;  %v337_v2 = vrot.slane %v335_v0, 4  ;;  %v349_v41 = vshrl.u32 %v686_v16, 16  ;;  %v327_v46 = vor.u32 %v326_v11, %v323_v4  ;;  %v140_v0 = vld [vmem:[%s652_s11 + $0xb8] sm:$0x11] }
  0x2e   : > { %v340_v47 = vrot.slane %v338_v18, 5  ;;  %v857_v49 = vrot.slane %v344_v23, 5  ;;  %v352_v58 = vshll.u32 %v686_v16, 16  ;;  %v358_v59 = vshll.u32 %v136_v9, 16  ;;  %v144_v9 = vld [vmem:[%s652_s11 + $0xd8] sm:$0x11] }
  0x2f   : > { %v351_v42 = vrot.slane %v349_v41, 4  ;;  %v363_v62 = vshrl.u32 %v696_v21, 16  ;;  %v866_v13 = vrot.slane %v327_v46, 4  ;;  %v366_v11 = vshll.u32 %v696_v21, 16 }
  0x30   : > { %v341_v10 = vor.u32 %v340_v47, %v337_v2  ;;  %v354_v4 = vrot.slane %v352_v58, 5  ;;  %v869_v18 = vrot.slane %v358_v59, 5  ;;  %v372_v16 = vshll.u32 %v138_v45, 16 }
  0x31   : > { %v365_v23 = vrot.slane %v363_v62, 4  ;;  %v377_v7 = vshrl.u32 %v699_v22, 16  ;;  %v368_v2 = vrot.slane %v366_v11, 5  ;;  %v380_v58 = vshll.u32 %v699_v22, 16 }
  0x32   : > { %v877_v41 = vrot.slane %v341_v10, 4  ;;  %v355_v46 = vor.u32 %v354_v4, %v351_v42  ;;  %v879_v47 = vrot.slane %v372_v16, 5  ;;  %v386_v59 = vshll.u32 %v140_v0, 16 }
  0x33   : > { %v379_v21 = vrot.slane %v377_v7, 4  ;;  %v369_v14 = vor.u32 %v368_v2, %v365_v23  ;;  %v391_v10 = vshrl.u32 %v712_v27, 16  ;;  %v382_v42 = vrot.slane %v380_v58, 5  ;;  %v146_v23 = vld [vmem:[%s652_s11 + $0xe8] sm:$0x11] }
  0x34   : > { %v886_v62 = vrot.slane %v355_v46, 4  ;;  %v890_v4 = vrot.slane %v386_v59, 5  ;;  %v394_v7 = vshll.u32 %v712_v27, 16  ;;  %v400_v11 = vshll.u32 %v142_v5, 16 }
  0x35   : > { %v370_v0 = vrot.slane %v369_v14, 4  ;;  %v393_v16 = vrot.slane %v391_v10, 4  ;;  %v405_v46 = vshrl.u32 %v724_v33, 16  ;;  %v383_v2 = vor.u32 %v382_v42, %v379_v21 }
  0x36   : > { %v361_v22 = vsel %vm785_vm2, %v886_v62, %v869_v18  ;;  %v396_v45 = vrot.slane %v394_v7, 5  ;;  %v402_v58 = vrot.slane %v400_v11, 5  ;;  %v408_v59 = vshll.u32 %v724_v33, 16  ;;  %v148_v18 = vld [vmem:[%s652_s11 + $0xf8] sm:$0x11] }
  0x37   : > { %v375_v27 = vsel %vm785_vm2, %v370_v0, %v879_v47  ;;  %v407_v5 = vrot.slane %v405_v46, 4  ;;  %v414_v6 = vshll.u32 %v144_v9, 16  ;;  %v419_v50 = vshrl.u32 %v727_v34, 16  ;;  %v150_v33 = vld [vmem:[%s652_s11 + $0x108] sm:$0x11] }
  0x38   : > { %v384_v14 = vrot.slane %v383_v2, 4  ;;  %v397_v62 = vor.u32 %v396_v45, %v393_v16  ;;  %v410_v10 = vrot.slane %v408_v59, 5  ;;  %v422_v56 = vshll.u32 %v727_v34, 16 }
  0x39   : > { %v416_v21 = vrot.slane %v414_v6, 5  ;;  %v421_v42 = vrot.slane %v419_v50, 4  ;;  %v428_v7 = vshll.u32 %v146_v23, 16  ;;  %v433_v11 = vshrl.u32 %v740_v39, 16 }
  0x3a   : > { %v389_v47 = vsel %vm785_vm2, %v384_v14, %v890_v4  ;;  %v398_v0 = vrot.slane %v397_v62, 4  ;;  %v411_v9 = vor.u32 %v410_v10, %v407_v5  ;;  %v424_v46 = vrot.slane %v422_v56, 5 }
  0x3b   : > { %v430_v55 = vrot.slane %v428_v7, 5  ;;  %v435_v52 = vrot.slane %v433_v11, 4  ;;  %v436_v45 = vshll.u32 %v740_v39, 16  ;;  %v442_v16 = vshll.u32 %v148_v18, 16 }
  0x3c   : > { %v403_v34 = vsel %vm785_vm2, %v398_v0, %v402_v58  ;;  %v412_v50 = vrot.slane %v411_v9, 4  ;;  %v425_v6 = vor.u32 %v424_v46, %v421_v42  ;;  %v447_v23 = vshrl.u32 %v743_v40, 16 }
  0x3d   : > { %v438_v2 = vrot.slane %v436_v45, 5  ;;  %v444_v59 = vrot.slane %v442_v16, 5  ;;  %v450_v51 = vshll.u32 %v743_v40, 16  ;;  %v456_v4 = vshll.u32 %v150_v33, 16 }
  0x3e   : > { %v417_v56 = vsel %vm785_vm2, %v412_v50, %v416_v21  ;;  %v426_v5 = vrot.slane %v425_v6, 4  ;;  %v449_v14 = vrot.slane %v447_v23, 4  ;;  %v1001_v39 = vsel %vm785_vm2, %v792_v29, %v773_v60 }
  0x3f   : > { %v477_v58 = vmax.bf16 %v1001_v39, %v690_v19  ;;  %v439_v18 = vor.u32 %v438_v2, %v435_v52  ;;  %v452_v62 = vrot.slane %v450_v51, 5  ;;  %v458_v10 = vrot.slane %v456_v4, 5 }
  0x40   : > { %v1002_v40 = vsel %vm785_vm2, %v801_v53, %v779_v12  ;;  %v431_v21 = vsel %vm785_vm2, %v426_v5, %v430_v55  ;;  %v1003_v60 = vsel %vm785_vm2, %v805_v57, %v789_v28  ;;  %v1004_v51 = vsel %vm785_vm2, %v820_v8, %v803_v3 }
  0x41   : > { %v478_v42 = vmax.bf16 %v1002_v40, %v693_v20  ;;  %v479_v19 = vmax.bf16 %v1003_v60, %v703_v24  ;;  %v480_v52 = vmax.bf16 %v1004_v51, %v706_v25  ;;  %v1005_v20 = vsel %vm785_vm2, %v829_v32, %v812_v63 }
  0x42   : > { %v481_v55 = vmax.bf16 %v1005_v20, %v709_v26  ;;  %v440_v12 = vrot.slane %v439_v18, 4  ;;  %v453_v29 = vor.u32 %v452_v62, %v449_v14  ;;  %v1006_v24 = vsel %vm785_vm2, %v842_v61, %v831_v35 }
  0x43   : > { %v482_v28 = vmax.bf16 %v1006_v24, %v717_v30  ;;  %v1007_v25 = vsel %vm785_vm2, %v853_v15, %v839_v54  ;;  %v1008_v26 = vsel %vm785_vm2, %v866_v13, %v846_v17  ;;  %v1009_v30 = vsel %vm785_vm2, %v877_v41, %v857_v49  ;;  %v1011_v17 = vld [vmem:[#allocation3_spill] sm:$0xff]  ;;  %v1012_v15 = vld [vmem:[#allocation4_spill] sm:$0xff] }
  0x44   : > { %v483_v53 = vmax.bf16 %v1007_v25, %v720_v31  ;;  %v484_v3 = vmax.bf16 %v1008_v26, %v731_v36  ;;  %v485_v57 = vmax.bf16 %v1009_v30, %v734_v37  ;;  %v486_v63 = vmax.bf16 %v361_v22, %v737_v38  ;;  %v1010_v36 = vld [vmem:[#allocation2_spill] sm:$0xff]  ;;  %v1013_v22 = vld [vmem:[#allocation5_spill] sm:$0xff] }
  0x45   : > { %v487_v8 = vmax.bf16 %v375_v27, %v748_v43  ;;  %v445_v31 = vsel %vm785_vm2, %v440_v12, %v444_v59  ;;  %v454_v32 = vrot.slane %v453_v29, 4  ;;  %v488_v35 = vmax.bf16 %v389_v47, %v751_v44 }
  0x46   : > { %v489_v54 = vmax.bf16 %v403_v34, %v757_v48  ;;  %v490_v61 = vmax.bf16 %v417_v56, %v1010_v36  ;;  %v491_v13 = vmax.bf16 %v431_v21, %v1011_v17  ;;  %v492_v7 = vmax.bf16 %v445_v31, %v1012_v15 }
  0x47   : > { %v494_v49 = vmax.bf16 %v478_v42, %v477_v58  ;;  %v459_v37 = vsel %vm785_vm2, %v454_v32, %v458_v10  ;;  %v495_v38 = vmax.bf16 %v480_v52, %v479_v19  ;;  %v496_v43 = vmax.bf16 %v482_v28, %v481_v55 }
  0x48   : > { %v497_v41 = vmax.bf16 %v484_v3, %v483_v53  ;;  %v493_v27 = vmax.bf16 %v459_v37, %v1013_v22  ;;  %v498_v11 = vmax.bf16 %v486_v63, %v485_v57  ;;  %v499_v44 = vmax.bf16 %v488_v35, %v487_v8 }
  0x49   : > { %v500_v33 = vmax.bf16 %v490_v61, %v489_v54  ;;  %v501_v48 = vmax.bf16 %v492_v7, %v491_v13  ;;  %v502_v47 = vmax.bf16 %v494_v49, %v479_v19  ;;  %v503_v0 = vmax.bf16 %v495_v38, %v481_v55 }
  0x4a   : > { %v504_v9 = vmax.bf16 %v496_v43, %v483_v53  ;;  %v505_v46 = vmax.bf16 %v497_v41, %v485_v57  ;;  %v506_v45 = vmax.bf16 %v498_v11, %v487_v8  ;;  %v507_v1 = vmax.bf16 %v499_v44, %v489_v54 }
  0x4b   : > { %v508_v16 = vmax.bf16 %v500_v33, %v491_v13  ;;  %v509_v34 = vmax.bf16 %v501_v48, %v493_v27  ;;  %v604_v50 = vcombine.low %v502_v47, %v503_v0 }
  0x4c   : > { %v605_v6 = vcombine.low %v504_v9, %v505_v46  ;;  %v607_v23 = vcombine.low %v506_v45, %v507_v1 }
  0x4d   : > { %588 = vst [vmem:[%s116_s15] sm:$0xff] %v604_v50   ;;  %v609_v2 = vcombine.low %v508_v16, %v509_v34 }
  0x4e   : > { %606 = vst [vmem:[%s116_s15 + $0x8] sm:$0xff] %v605_v6   ;;  %608 = vst [vmem:[%s116_s15 + $0x10] sm:$0xff] %v607_v23  }
  0x4f   : > { %610 = vst [vmem:[%s116_s15 + $0x18] sm:$0xff] %v609_v2  }
  0x50 PF: > { %s11_s6 = sadd.s32 1, %s626_s6  }
  0x51   : > { %p8_p4 = scmp.ge.s32.totalorder %s11_s6, 4  }
  0x53   :  { %10 = sbr.rel (!%p8_p4) target bundleno = 1 (0x1), region = 54 }

// kernel: dino_forward.25
= control target key start
LH: loop header
LB: loop body
LE: loop exit
PB: predicated region body
PF: predicated region fallthrough
CT: control target
= control target key end

     0   :  { %s1382_s12 = smov 0   ;;  %s1384_s13 = smov 0   ;;  %s1554_s0 = inlined_call_operand.vmem [shape: bf16[512,147], index: 0, kind: input, shape index: {}]   ;;  %s1555_s1 = inlined_call_operand.vmem [shape: bf16[147,128], index: 1, kind: input, shape index: {}]   ;;  %s1556_s2 = inlined_call_operand.vmem [shape: f32[1,128], index: 2, kind: input, shape index: {}]   ;;  %s1557_s3 = inlined_call_operand.vmem [shape: bf16[512,128], index: 3, kind: output, shape index: {}]  }
   0x1   :  { %s1386_s14 = smov 0  }
   0x2 LB: > { %s25_s15 = sadd.s32 1, %s1354_s13  ;;  %p1005_p0 = scmp.ge.s32.totalorder %s1358_s14, 1  ;;  %s1358_s14 = sphi %s1386_s14, %s13_s14   ;;  %s1354_s13 = sphi %s1384_s13, %s1559_s13   ;;  %s1350_s12 = sphi %s1382_s12, %s1558_s12  }
   0x3   : > { %p27_p1 = scmp.ge.s32.totalorder %s25_s15, 2  ;;  %p170_p2 = scmp.lt.s32.totalorder %s1358_s14, 3 }
   0x5   : > { %s1561_s15 = smov (%p27_p1, %s25_s15), 0  ;;  %p171_p3 = pnand %p1005_p0, %p170_p2 }
   0x6   : > { %v1278_v0 = vld [vmem:[%s1555_s1] sm:$0xff] (!%p171_p3)   ;;  %v1360_v1 = vmov (!%p171_p3), 0   ;;  %v1279_v2 = vld [vmem:[%s1555_s1 + $0x8] sm:$0xff] (!%p171_p3)   ;;  %v1280_v3 = vld [vmem:[%s1555_s1 + $0x10] sm:$0xff] (!%p171_p3)   ;;  %s1006_s22 = sshll.u32 (!%p171_p3), %s1350_s12, 5  ;;  %vm488_vm0 = vcmask (!%p171_p3), 154624  }
   0x7   : > { %174 = sbr.rel (%p171_p3) target bundleno = 324 (0x144), region = 32  ;;  %544 = vmatprep.subr.bf16.mxu0 (!%p171_p3), %v1360_v1  ;;  %1232 = vmatprep.subr.bf16.mxu1 (!%p171_p3), %v1360_v1  ;;  %p206_p4 = scmp.lt.s32.totalorder (!%p171_p3), %s1006_s22, 63  ;;  %v1281_v4 = vld [vmem:[%s1555_s1 + $0x18] sm:$0xff] (!%p171_p3)   ;;  %v1282_v5 = vld [vmem:[%s1555_s1 + $0x20] sm:$0xff] (!%p171_p3)   ;;  %v1283_v8 = vld [vmem:[%s1555_s1 + $0x28] sm:$0xff] (!%p171_p3)   ;;  %vm537_vm1 = vcmask (!%p171_p3), 1040384  }
   0x8   : > { %545 = vmatpush1.bf16.msra.mxu0 (!%p171_p3), %v1278_v0  ;;  %1242 = vmatpush1.bf16.msra.mxu1 (!%p171_p3), %v1278_v0  ;;  %v1284_v9 = vld [vmem:[%s1555_s1 + $0x30] sm:$0xff] (!%p171_p3)   ;;  %v1285_v10 = vld [vmem:[%s1555_s1 + $0x38] sm:$0xff] (!%p171_p3)   ;;  %vm538_vm2 = vcmask (!%p171_p3), 1041408   ;;  %v1361_v11 = vmov (!%p171_p3), 65535   ;;  %v1286_v13 = vld [vmem:[%s1555_s1 + $0x40] sm:$0xff] (!%p171_p3)  }
   0x9   : > { %546 = vmatprep.subr.bf16.mxu0 (!%p171_p3), %v1360_v1  ;;  %1233 = vmatprep.subr.bf16.mxu1 (!%p171_p3), %v1360_v1  ;;  %v539_v12 = vsel (!%p171_p3), %vm537_vm1, 4294967295, %v1361_v11  ;;  %v1287_v14 = vld [vmem:[%s1555_s1 + $0x48] ss:$0 sps:$4 sm:$0x33] (!%p171_p3)   ;;  %v1489_v47 = vld [vmem:[%s1556_s2] ss:$0 sm:$0xff] (!%p171_p3) }
   0xa   : > { %v540_v15 = vsel (!%p171_p3), %vm538_vm2, %v539_v12, 0 }
   0xb   : > { %v542_v16 = vand.u32 (!%p171_p3), %v1287_v14, %v540_v15 }
   0xc   : > { %547 = vmatpush1.bf16.msra.mxu0 (!%p171_p3), %v1279_v2  ;;  %1243 = vmatpush1.bf16.msra.mxu1 (!%p171_p3), %v1279_v2 }
   0xd   : > { %548 = vmatprep.subr.bf16.mxu0 (!%p171_p3), %v1360_v1  ;;  %1234 = vmatprep.subr.bf16.mxu1 (!%p171_p3), %v1360_v1 }
   0xe   : > { %s1563_s22 = smov (!%p206_p4, %s1006_s22), 63 }
   0xf   : > { %s1104_s25 = sshll.u32 %s1563_s22, 3  ;;  %s1010_s19 = sshll.u32 %s1563_s22, 2 }
  0x10   : > { %549 = vmatpush1.bf16.msra.mxu0 %v1280_v3  ;;  %1244 = vmatpush1.bf16.msra.mxu1 %v1280_v3  ;;  %s1418_s28 = scalar_lea.vmem %s1554_s0, %s1104_s25  ;;  %s1499_s23 = scalar_lea.vmem %s1557_s3, %s1010_s19 }
  0x11   : > { %550 = vmatprep.subr.bf16.mxu0 %v1360_v1  ;;  %1235 = vmatprep.subr.bf16.mxu1 %v1360_v1  ;;  %v1290_v6 = vld [vmem:[%s1418_s28 + $0x4] ss:$8 sps:$4 sm:$0xff]   ;;  %v1288_v17 = vld [vmem:[%s1418_s28] ss:$8 sps:$4 sm:$0xff]   ;;  %v1294_v19 = vld [vmem:[%s1418_s28 + $0x14] ss:$8 sps:$4 sm:$0xff]  }
  0x12   : > { %v1293_v7 = vld [vmem:[%s1418_s28 + $0x84] ss:$8 sps:$4 sm:$0xff]   ;;  %1054 = vmatprep.mubr.msk.bf16.mxu0 %vm488_vm0, %v1290_v6  ;;  %v1291_v18 = vld [vmem:[%s1418_s28 + $0x80] ss:$8 sps:$4 sm:$0xff]   ;;  %v1296_v20 = vld [vmem:[%s1418_s28 + $0x94] ss:$8 sps:$4 sm:$0xff]  }
  0x13   : > { %1062 = vmatprep.mubr.msk.bf16.mxu1 %vm488_vm0, %v1293_v7  ;;  %v1298_v21 = vld [vmem:[%s1418_s28 + $0x10] ss:$8 sps:$4 sm:$0xff]   ;;  %v1300_v23 = vld [vmem:[%s1418_s28 + $0x24] ss:$8 sps:$4 sm:$0xff]   ;;  %v1304_v25 = vld [vmem:[%s1418_s28 + $0x20] ss:$8 sps:$4 sm:$0xff]  }
  0x14   : > { %551 = vmatpush1.bf16.msra.mxu0 %v1281_v4  ;;  %1245 = vmatpush1.bf16.msra.mxu1 %v1281_v4  ;;  %v1299_v22 = vld [vmem:[%s1418_s28 + $0x90] ss:$8 sps:$4 sm:$0xff]   ;;  %v1302_v24 = vld [vmem:[%s1418_s28 + $0xa4] ss:$8 sps:$4 sm:$0xff]   ;;  %v1305_v26 = vld [vmem:[%s1418_s28 + $0xa0] ss:$8 sps:$4 sm:$0xff]  }
  0x15   : > { %552 = vmatprep.subr.bf16.mxu0 %v1360_v1  ;;  %1236 = vmatprep.subr.bf16.mxu1 %v1360_v1  ;;  %v1306_v27 = vld [vmem:[%s1418_s28 + $0x34] ss:$8 sps:$4 sm:$0xff]   ;;  %v1310_v29 = vld [vmem:[%s1418_s28 + $0x30] ss:$8 sps:$4 sm:$0xff]   ;;  %v1312_v31 = vld [vmem:[%s1418_s28 + $0x44] ss:$8 sps:$4 sm:$0xff]  }
  0x16   : > { %v1308_v28 = vld [vmem:[%s1418_s28 + $0xb4] ss:$8 sps:$4 sm:$0xff]   ;;  %v1311_v30 = vld [vmem:[%s1418_s28 + $0xb0] ss:$8 sps:$4 sm:$0xff]   ;;  %v1314_v32 = vld [vmem:[%s1418_s28 + $0xc4] ss:$8 sps:$4 sm:$0xff]  }
  0x17   : > { %v1316_v33 = vld [vmem:[%s1418_s28 + $0x40] ss:$8 sps:$4 sm:$0xff]   ;;  %v1318_v35 = vld [vmem:[%s1418_s28 + $0x54] ss:$8 sps:$4 sm:$0xff]   ;;  %v1322_v37 = vld [vmem:[%s1418_s28 + $0x50] ss:$8 sps:$4 sm:$0xff]  }
  0x18   : > { %553 = vmatpush1.bf16.msra.mxu0 %v1282_v5  ;;  %1246 = vmatpush1.bf16.msra.mxu1 %v1282_v5  ;;  %v1317_v34 = vld [vmem:[%s1418_s28 + $0xc0] ss:$8 sps:$4 sm:$0xff]   ;;  %v1320_v36 = vld [vmem:[%s1418_s28 + $0xd4] ss:$8 sps:$4 sm:$0xff]   ;;  %v1323_v38 = vld [vmem:[%s1418_s28 + $0xd0] ss:$8 sps:$4 sm:$0xff]  }
  0x19   : > { %554 = vmatprep.subr.bf16.mxu0 %v1360_v1  ;;  %1237 = vmatprep.subr.bf16.mxu1 %v1360_v1  ;;  %v1324_v39 = vld [vmem:[%s1418_s28 + $0x64] ss:$8 sps:$4 sm:$0xff]   ;;  %v1328_v41 = vld [vmem:[%s1418_s28 + $0x60] ss:$8 sps:$4 sm:$0xff]   ;;  %v1330_v43 = vld [vmem:[%s1418_s28 + $0x74] ss:$8 sps:$4 sm:$0xff]  }
  0x1a   : > { %v1326_v40 = vld [vmem:[%s1418_s28 + $0xe4] ss:$8 sps:$4 sm:$0xff]   ;;  %v1329_v42 = vld [vmem:[%s1418_s28 + $0xe0] ss:$8 sps:$4 sm:$0xff]   ;;  %v1332_v44 = vld [vmem:[%s1418_s28 + $0xf4] ss:$8 sps:$4 sm:$0xff]  }
  0x1b   : > { %v1334_v45 = vld [vmem:[%s1418_s28 + $0x70] ss:$8 sps:$4 sm:$0xff]  }
  0x1c   : > { %555 = vmatpush1.bf16.msra.mxu0 %v1283_v8  ;;  %1247 = vmatpush1.bf16.msra.mxu1 %v1283_v8  ;;  %v1335_v46 = vld [vmem:[%s1418_s28 + $0xf0] ss:$8 sps:$4 sm:$0xff]  }
  0x1d   : > { %556 = vmatprep.subr.bf16.mxu0 %v1360_v1  ;;  %1238 = vmatprep.subr.bf16.mxu1 %v1360_v1 }
  0x20   : > { %557 = vmatpush1.bf16.msra.mxu0 %v1284_v9  ;;  %1248 = vmatpush1.bf16.msra.mxu1 %v1284_v9 }
  0x21   : > { %558 = vmatprep.subr.bf16.mxu0 %v1360_v1  ;;  %1239 = vmatprep.subr.bf16.mxu1 %v1360_v1 }
  0x24   : > { %559 = vmatpush1.bf16.msra.mxu0 %v1285_v10  ;;  %1249 = vmatpush1.bf16.msra.mxu1 %v1285_v10 }
  0x25   : > { %560 = vmatprep.subr.bf16.mxu0 %v1360_v1  ;;  %1240 = vmatprep.subr.bf16.mxu1 %v1360_v1 }
  0x28   : > { %561 = vmatpush1.bf16.msra.mxu0 %v1286_v13  ;;  %1250 = vmatpush1.bf16.msra.mxu1 %v1286_v13 }
  0x29   : > { %562 = vmatprep.subr.bf16.mxu0 %v1360_v1  ;;  %1241 = vmatprep.subr.bf16.mxu1 %v1360_v1 }
  0x2c   : > { %563 = vmatpush1.bf16.msra.mxu0 %v542_v16  ;;  %1251 = vmatpush1.bf16.msra.mxu1 %v542_v16 }
  0x2f   : > { %577 = vmatmul.mubr.bf16.vlgmr.msra.gmra.mrb[0].mxu0 %v1288_v17  ;;  %641 = vmatmul.mubr.bf16.vlgmr.msra.gmra.mrb[0].mxu1 %v1291_v18 }
  0x30   : > { %1055 = vmatprep.mubr.msk.bf16.mxu0 %vm488_vm0, %v1294_v19  ;;  %1063 = vmatprep.mubr.msk.bf16.mxu1 %vm488_vm0, %v1296_v20 }
  0x37   : > { %585 = vmatmul.mubr.bf16.gmra.mrb[4].mxu0 %v1298_v21  ;;  %649 = vmatmul.mubr.bf16.gmra.mrb[4].mxu1 %v1299_v22 }
  0x38   : > { %1056 = vmatprep.mubr.msk.bf16.mxu0 %vm488_vm0, %v1300_v23  ;;  %1064 = vmatprep.mubr.msk.bf16.mxu1 %vm488_vm0, %v1302_v24 }
  0x3f   : > { %593 = vmatmul.mubr.bf16.gmra.mrb[8].mxu0 %v1304_v25  ;;  %657 = vmatmul.mubr.bf16.gmra.mrb[8].mxu1 %v1305_v26 }
  0x40   : > { %1057 = vmatprep.mubr.msk.bf16.mxu0 %vm488_vm0, %v1306_v27  ;;  %1065 = vmatprep.mubr.msk.bf16.mxu1 %vm488_vm0, %v1308_v28 }
  0x47   : > { %601 = vmatmul.mubr.bf16.gmra.mrb[12].mxu0 %v1310_v29  ;;  %665 = vmatmul.mubr.bf16.gmra.mrb[12].mxu1 %v1311_v30 }
  0x48   : > { %1058 = vmatprep.mubr.msk.bf16.mxu0 %vm488_vm0, %v1312_v31  ;;  %1066 = vmatprep.mubr.msk.bf16.mxu1 %vm488_vm0, %v1314_v32 }
  0x4f   : > { %609 = vmatmul.mubr.bf16.gmra.mrb[16].mxu0 %v1316_v33  ;;  %673 = vmatmul.mubr.bf16.gmra.mrb[16].mxu1 %v1317_v34 }
  0x50   : > { %1059 = vmatprep.mubr.msk.bf16.mxu0 %vm488_vm0, %v1318_v35  ;;  %1067 = vmatprep.mubr.msk.bf16.mxu1 %vm488_vm0, %v1320_v36 }
  0x57   : > { %617 = vmatmul.mubr.bf16.gmra.mrb[20].mxu0 %v1322_v37  ;;  %681 = vmatmul.mubr.bf16.gmra.mrb[20].mxu1 %v1323_v38 }
  0x58   : > { %1060 = vmatprep.mubr.msk.bf16.mxu0 %vm488_vm0, %v1324_v39  ;;  %1068 = vmatprep.mubr.msk.bf16.mxu1 %vm488_vm0, %v1326_v40 }
  0x5f   : > { %625 = vmatmul.mubr.bf16.gmra.mrb[24].mxu0 %v1328_v41  ;;  %689 = vmatmul.mubr.bf16.gmra.mrb[24].mxu1 %v1329_v42 }
  0x60   : > { %1061 = vmatprep.mubr.msk.bf16.mxu0 %vm488_vm0, %v1330_v43  ;;  %1069 = vmatprep.mubr.msk.bf16.mxu1 %vm488_vm0, %v1332_v44 }
  0x67   : > { %633 = vmatmul.mubr.bf16.gmra.mrb[28].mxu0 %v1334_v45  ;;  %697 = vmatmul.mubr.bf16.gmra.mrb[28].mxu1 %v1335_v46 }
 0x102   : > { %v578_v48 = vpop.f32.mrb[0].mxu0  ;;  %v642_v49 = vpop.f32.mrb[0].mxu1 }
 0x103   : > { %v579_v50 = vadd.f32 %v1489_v47, %v578_v48  ;;  %v643_v51 = vadd.f32 %v1489_v47, %v642_v49  ;;  %v580_v52 = vpop.f32.mrb[1].mxu0  ;;  %v644_v53 = vpop.f32.mrb[1].mxu1 }
 0x104   : > { %v581_v54 = vpop.f32.mrb[2].mxu0  ;;  %v645_v55 = vpop.f32.mrb[2].mxu1 }
 0x105   : > { %v582_v56 = vadd.f32 %v1489_v47, %v581_v54  ;;  %v646_v57 = vadd.f32 %v1489_v47, %v645_v55  ;;  %v583_v58 = vpop.f32.mrb[3].mxu0  ;;  %v647_v59 = vpop.f32.mrb[3].mxu1  ;;  %v705_v60 = vmax.f32 %v579_v50, 0.0  ;;  %v721_v61 = vmax.f32 %v643_v51, 0.0 }
 0x107   : > { %v706_v62 = vmax.f32 %v582_v56, 0.0  ;;  %v722_v63 = vmax.f32 %v646_v57, 0.0 }
 0x109   : > { %v1140_v0 = vpack.c.bf16 %v706_v62, %v705_v60  ;;  %v1180_v1 = vpack.c.bf16 %v722_v63, %v721_v61 }
 0x10a   : > { %v586_v2 = vpop.f32.mrb[4].mxu0  ;;  %v650_v3 = vpop.f32.mrb[4].mxu1 }
 0x10b   : > { %1141 = vst [vmem:[%s1499_s23] sm:$0xff] %v1140_v0   ;;  %1224 = vst [vmem:[%s1499_s23 + $0x40] sm:$0xff] %v1180_v1   ;;  %v587_v4 = vadd.f32 %v1489_v47, %v586_v2  ;;  %v651_v5 = vadd.f32 %v1489_v47, %v650_v3  ;;  %v588_v6 = vpop.f32.mrb[5].mxu0  ;;  %v652_v7 = vpop.f32.mrb[5].mxu1 }
 0x10c   : > { %v589_v8 = vpop.f32.mrb[6].mxu0  ;;  %v653_v9 = vpop.f32.mrb[6].mxu1 }
 0x10d   : > { %v590_v10 = vadd.f32 %v1489_v47, %v589_v8  ;;  %v654_v11 = vadd.f32 %v1489_v47, %v653_v9  ;;  %v591_v12 = vpop.f32.mrb[7].mxu0  ;;  %v655_v13 = vpop.f32.mrb[7].mxu1  ;;  %v707_v14 = vmax.f32 %v587_v4, 0.0  ;;  %v723_v15 = vmax.f32 %v651_v5, 0.0 }
 0x10f   : > { %v708_v16 = vmax.f32 %v590_v10, 0.0  ;;  %v724_v17 = vmax.f32 %v654_v11, 0.0 }
 0x111   : > { %v1145_v18 = vpack.c.bf16 %v708_v16, %v707_v14  ;;  %v1185_v19 = vpack.c.bf16 %v724_v17, %v723_v15 }
 0x112   : > { %v594_v20 = vpop.f32.mrb[8].mxu0  ;;  %v658_v21 = vpop.f32.mrb[8].mxu1 }
 0x113   : > { %1217 = vst [vmem:[%s1499_s23 + $0x8] sm:$0xff] %v1145_v18   ;;  %1225 = vst [vmem:[%s1499_s23 + $0x48] sm:$0xff] %v1185_v19   ;;  %v595_v22 = vadd.f32 %v1489_v47, %v594_v20  ;;  %v659_v23 = vadd.f32 %v1489_v47, %v658_v21  ;;  %v596_v24 = vpop.f32.mrb[9].mxu0  ;;  %v660_v25 = vpop.f32.mrb[9].mxu1 }
 0x114   : > { %v597_v26 = vpop.f32.mrb[10].mxu0  ;;  %v661_v27 = vpop.f32.mrb[10].mxu1 }
 0x115   : > { %v598_v28 = vadd.f32 %v1489_v47, %v597_v26  ;;  %v662_v29 = vadd.f32 %v1489_v47, %v661_v27  ;;  %v599_v30 = vpop.f32.mrb[11].mxu0  ;;  %v663_v31 = vpop.f32.mrb[11].mxu1  ;;  %v709_v32 = vmax.f32 %v595_v22, 0.0  ;;  %v725_v33 = vmax.f32 %v659_v23, 0.0 }
 0x117   : > { %v710_v34 = vmax.f32 %v598_v28, 0.0  ;;  %v726_v35 = vmax.f32 %v662_v29, 0.0 }
 0x119   : > { %v1150_v36 = vpack.c.bf16 %v710_v34, %v709_v32  ;;  %v1190_v37 = vpack.c.bf16 %v726_v35, %v725_v33 }
 0x11a   : > { %v602_v38 = vpop.f32.mrb[12].mxu0  ;;  %v666_v39 = vpop.f32.mrb[12].mxu1 }
 0x11b   : > { %1218 = vst [vmem:[%s1499_s23 + $0x10] sm:$0xff] %v1150_v36   ;;  %1226 = vst [vmem:[%s1499_s23 + $0x50] sm:$0xff] %v1190_v37   ;;  %v603_v40 = vadd.f32 %v1489_v47, %v602_v38  ;;  %v667_v41 = vadd.f32 %v1489_v47, %v666_v39  ;;  %v604_v42 = vpop.f32.mrb[13].mxu0  ;;  %v668_v43 = vpop.f32.mrb[13].mxu1 }
 0x11c   : > { %v605_v44 = vpop.f32.mrb[14].mxu0  ;;  %v669_v45 = vpop.f32.mrb[14].mxu1 }
 0x11d   : > { %v606_v46 = vadd.f32 %v1489_v47, %v605_v44  ;;  %v670_v48 = vadd.f32 %v1489_v47, %v669_v45  ;;  %v607_v49 = vpop.f32.mrb[15].mxu0  ;;  %v671_v50 = vpop.f32.mrb[15].mxu1  ;;  %v711_v51 = vmax.f32 %v603_v40, 0.0  ;;  %v727_v52 = vmax.f32 %v667_v41, 0.0 }
 0x11f   : > { %v712_v53 = vmax.f32 %v606_v46, 0.0  ;;  %v728_v54 = vmax.f32 %v670_v48, 0.0 }
 0x121   : > { %v1155_v55 = vpack.c.bf16 %v712_v53, %v711_v51  ;;  %v1195_v56 = vpack.c.bf16 %v728_v54, %v727_v52 }
 0x122   : > { %v610_v57 = vpop.f32.mrb[16].mxu0  ;;  %v674_v58 = vpop.f32.mrb[16].mxu1 }
 0x123   : > { %1219 = vst [vmem:[%s1499_s23 + $0x18] sm:$0xff] %v1155_v55   ;;  %1227 = vst [vmem:[%s1499_s23 + $0x58] sm:$0xff] %v1195_v56   ;;  %v611_v59 = vadd.f32 %v1489_v47, %v610_v57  ;;  %v675_v60 = vadd.f32 %v1489_v47, %v674_v58  ;;  %v612_v61 = vpop.f32.mrb[17].mxu0  ;;  %v676_v62 = vpop.f32.mrb[17].mxu1 }
 0x124   : > { %v613_v63 = vpop.f32.mrb[18].mxu0  ;;  %v677_v0 = vpop.f32.mrb[18].mxu1 }
 0x125   : > { %v614_v1 = vadd.f32 %v1489_v47, %v613_v63  ;;  %v678_v2 = vadd.f32 %v1489_v47, %v677_v0  ;;  %v615_v3 = vpop.f32.mrb[19].mxu0  ;;  %v679_v4 = vpop.f32.mrb[19].mxu1  ;;  %v713_v5 = vmax.f32 %v611_v59, 0.0  ;;  %v729_v6 = vmax.f32 %v675_v60, 0.0 }
 0x127   : > { %v714_v7 = vmax.f32 %v614_v1, 0.0  ;;  %v730_v8 = vmax.f32 %v678_v2, 0.0 }
 0x129   : > { %v1160_v9 = vpack.c.bf16 %v714_v7, %v713_v5  ;;  %v1200_v10 = vpack.c.bf16 %v730_v8, %v729_v6 }
 0x12a   : > { %v618_v11 = vpop.f32.mrb[20].mxu0  ;;  %v682_v12 = vpop.f32.mrb[20].mxu1 }
 0x12b   : > { %1220 = vst [vmem:[%s1499_s23 + $0x20] sm:$0xff] %v1160_v9   ;;  %1228 = vst [vmem:[%s1499_s23 + $0x60] sm:$0xff] %v1200_v10   ;;  %v619_v13 = vadd.f32 %v1489_v47, %v618_v11  ;;  %v683_v14 = vadd.f32 %v1489_v47, %v682_v12  ;;  %v620_v15 = vpop.f32.mrb[21].mxu0  ;;  %v684_v16 = vpop.f32.mrb[21].mxu1 }
 0x12c   : > { %v621_v17 = vpop.f32.mrb[22].mxu0  ;;  %v685_v18 = vpop.f32.mrb[22].mxu1 }
 0x12d   : > { %v622_v19 = vadd.f32 %v1489_v47, %v621_v17  ;;  %v686_v20 = vadd.f32 %v1489_v47, %v685_v18  ;;  %v623_v21 = vpop.f32.mrb[23].mxu0  ;;  %v687_v22 = vpop.f32.mrb[23].mxu1  ;;  %v715_v23 = vmax.f32 %v619_v13, 0.0  ;;  %v731_v24 = vmax.f32 %v683_v14, 0.0 }
 0x12f   : > { %v716_v25 = vmax.f32 %v622_v19, 0.0  ;;  %v732_v26 = vmax.f32 %v686_v20, 0.0 }
 0x131   : > { %v1165_v27 = vpack.c.bf16 %v716_v25, %v715_v23  ;;  %v1205_v28 = vpack.c.bf16 %v732_v26, %v731_v24 }
 0x132   : > { %v626_v29 = vpop.f32.mrb[24].mxu0  ;;  %v690_v30 = vpop.f32.mrb[24].mxu1 }
 0x133   : > { %1221 = vst [vmem:[%s1499_s23 + $0x28] sm:$0xff] %v1165_v27   ;;  %1229 = vst [vmem:[%s1499_s23 + $0x68] sm:$0xff] %v1205_v28   ;;  %v627_v31 = vadd.f32 %v1489_v47, %v626_v29  ;;  %v691_v32 = vadd.f32 %v1489_v47, %v690_v30  ;;  %v628_v33 = vpop.f32.mrb[25].mxu0  ;;  %v692_v34 = vpop.f32.mrb[25].mxu1 }
 0x134   : > { %v629_v35 = vpop.f32.mrb[26].mxu0  ;;  %v693_v36 = vpop.f32.mrb[26].mxu1 }
 0x135   : > { %v630_v37 = vadd.f32 %v1489_v47, %v629_v35  ;;  %v694_v38 = vadd.f32 %v1489_v47, %v693_v36  ;;  %v631_v39 = vpop.f32.mrb[27].mxu0  ;;  %v695_v40 = vpop.f32.mrb[27].mxu1  ;;  %v717_v41 = vmax.f32 %v627_v31, 0.0  ;;  %v733_v42 = vmax.f32 %v691_v32, 0.0 }
 0x137   : > { %v718_v43 = vmax.f32 %v630_v37, 0.0  ;;  %v734_v44 = vmax.f32 %v694_v38, 0.0 }
 0x139   : > { %v1170_v45 = vpack.c.bf16 %v718_v43, %v717_v41  ;;  %v1210_v46 = vpack.c.bf16 %v734_v44, %v733_v42 }
 0x13a   : > { %v634_v48 = vpop.f32.mrb[28].mxu0  ;;  %v698_v49 = vpop.f32.mrb[28].mxu1 }
 0x13b   : > { %1222 = vst [vmem:[%s1499_s23 + $0x30] sm:$0xff] %v1170_v45   ;;  %1230 = vst [vmem:[%s1499_s23 + $0x70] sm:$0xff] %v1210_v46   ;;  %v635_v50 = vadd.f32 %v1489_v47, %v634_v48  ;;  %v699_v51 = vadd.f32 %v1489_v47, %v698_v49  ;;  %v636_v52 = vpop.f32.mrb[29].mxu0  ;;  %v700_v53 = vpop.f32.mrb[29].mxu1 }
 0x13c   : > { %v637_v54 = vpop.f32.mrb[30].mxu0  ;;  %v701_v55 = vpop.f32.mrb[30].mxu1 }
 0x13d   : > { %v638_v56 = vadd.f32 %v1489_v47, %v637_v54  ;;  %v702_v57 = vadd.f32 %v1489_v47, %v701_v55  ;;  %v639_v58 = vpop.f32.mrb[31].mxu0  ;;  %v703_v59 = vpop.f32.mrb[31].mxu1  ;;  %v719_v60 = vmax.f32 %v635_v50, 0.0  ;;  %v735_v61 = vmax.f32 %v699_v51, 0.0 }
 0x13f   : > { %v720_v62 = vmax.f32 %v638_v56, 0.0  ;;  %v736_v63 = vmax.f32 %v702_v57, 0.0 }
 0x141   : > { %v1175_v0 = vpack.c.bf16 %v720_v62, %v719_v60  ;;  %v1215_v1 = vpack.c.bf16 %v736_v63, %v735_v61 }
 0x143   : > { %1223 = vst [vmem:[%s1499_s23 + $0x38] sm:$0xff] %v1175_v0   ;;  %1231 = vst [vmem:[%s1499_s23 + $0x78] sm:$0xff] %v1215_v1  }
 0x144 PF: > { %s13_s14 = sadd.s32 1, %s1358_s14   ;;  %s1558_s12 = smov %s1354_s13 }
 0x145   : > { %p10_p5 = scmp.ge.s32.totalorder %s13_s14, 4   ;;  %s1559_s13 = smov %s1561_s15 }
 0x147   :  { %12 = sbr.rel (!%p10_p5) target bundleno = 2 (0x2), region = 68 }

// kernel: dino_forward.27
= control target key start
LH: loop header
LB: loop body
LE: loop exit
PB: predicated region body
PF: predicated region fallthrough
CT: control target
= control target key end

     0   :  { %s618_s1 = inlined_call_operand.vmem [shape: bf16[128,128], index: 1, kind: input, shape index: {}]   ;;  %s619_s0 = inlined_call_operand.vmem [shape: bf16[128,128], index: 0, kind: input, shape index: {}]   ;;  %s620_s2 = inlined_call_operand.vmem [shape: f32[1,128], index: 2, kind: input, shape index: {}]   ;;  %s621_s3 = inlined_call_operand.vmem [shape: bf16[128,128], index: 3, kind: output, shape index: {}]  }
   0x1   :  { %v507_v0 = vld [vmem:[%s618_s1] sm:$0xff]   ;;  %v508_v1 = vld [vmem:[%s618_s1 + $0x8] sm:$0xff]   ;;  %v509_v2 = vld [vmem:[%s618_s1 + $0x10] sm:$0xff]  }
   0x2   :  { %459 = vmatprep.subr.bf16.mxu0 %v507_v0  ;;  %491 = vmatprep.subr.bf16.mxu1 %v507_v0  ;;  %v510_v3 = vld [vmem:[%s618_s1 + $0x18] sm:$0xff]   ;;  %v515_v4 = vld [vmem:[%s619_s0] sm:$0xff]   ;;  %v512_v7 = vld [vmem:[%s618_s1 + $0x28] sm:$0xff]  }
   0x3   :  { %460 = vmatpush3.bf16.msra.mxu0 %v507_v0  ;;  %499 = vmatpush3.bf16.msra.mxu1 %v507_v0  ;;  %v516_v5 = vld [vmem:[%s619_s0 + $0x20] sm:$0xff]   ;;  %v513_v8 = vld [vmem:[%s618_s1 + $0x30] sm:$0xff]   ;;  %v514_v9 = vld [vmem:[%s618_s1 + $0x38] sm:$0xff]  }
   0x4   :  { %461 = vmatprep.subr.bf16.mxu0 %v508_v1  ;;  %492 = vmatprep.subr.bf16.mxu1 %v508_v1  ;;  %v511_v6 = vld [vmem:[%s618_s1 + $0x20] sm:$0xff]   ;;  %v517_v10 = vld [vmem:[%s619_s0 + $0x8] sm:$0xff]   ;;  %v519_v12 = vld [vmem:[%s619_s0 + $0x10] sm:$0xff]  }
   0x5   :  { %475 = vmatprep.mubr.bf16.mxu0 %v515_v4  ;;  %483 = vmatprep.mubr.bf16.mxu1 %v516_v5  ;;  %v518_v11 = vld [vmem:[%s619_s0 + $0x28] sm:$0xff]   ;;  %v520_v13 = vld [vmem:[%s619_s0 + $0x30] sm:$0xff]   ;;  %v521_v14 = vld [vmem:[%s619_s0 + $0x18] sm:$0xff]  }
   0x6   :  { %v522_v15 = vld [vmem:[%s619_s0 + $0x38] sm:$0xff]   ;;  %v347_v16 = vld [vmem:[%s620_s2] ss:$0 sm:$0xff] }
   0x7   :  { %462 = vmatpush3.bf16.msra.mxu0 %v508_v1  ;;  %500 = vmatpush3.bf16.msra.mxu1 %v508_v1 }
   0x8   :  { %463 = vmatprep.subr.bf16.mxu0 %v509_v2  ;;  %493 = vmatprep.subr.bf16.mxu1 %v509_v2 }
   0xb   :  { %464 = vmatpush3.bf16.msra.mxu0 %v509_v2  ;;  %501 = vmatpush3.bf16.msra.mxu1 %v509_v2 }
   0xc   :  { %465 = vmatprep.subr.bf16.mxu0 %v510_v3  ;;  %494 = vmatprep.subr.bf16.mxu1 %v510_v3 }
   0xf   :  { %466 = vmatpush3.bf16.msra.mxu0 %v510_v3  ;;  %502 = vmatpush3.bf16.msra.mxu1 %v510_v3 }
  0x10   :  { %467 = vmatprep.subr.bf16.mxu0 %v511_v6  ;;  %495 = vmatprep.subr.bf16.mxu1 %v511_v6 }
  0x13   :  { %468 = vmatpush3.bf16.msra.mxu0 %v511_v6  ;;  %503 = vmatpush3.bf16.msra.mxu1 %v511_v6 }
  0x14   :  { %469 = vmatprep.subr.bf16.mxu0 %v512_v7  ;;  %496 = vmatprep.subr.bf16.mxu1 %v512_v7 }
  0x17   :  { %470 = vmatpush3.bf16.msra.mxu0 %v512_v7  ;;  %504 = vmatpush3.bf16.msra.mxu1 %v512_v7 }
  0x18   :  { %471 = vmatprep.subr.bf16.mxu0 %v513_v8  ;;  %497 = vmatprep.subr.bf16.mxu1 %v513_v8 }
  0x1b   :  { %472 = vmatpush3.bf16.msra.mxu0 %v513_v8  ;;  %505 = vmatpush3.bf16.msra.mxu1 %v513_v8 }
  0x1c   :  { %473 = vmatprep.subr.bf16.mxu0 %v514_v9  ;;  %498 = vmatprep.subr.bf16.mxu1 %v514_v9 }
  0x1f   :  { %474 = vmatpush3.bf16.msra.mxu0 %v514_v9  ;;  %506 = vmatpush3.bf16.msra.mxu1 %v514_v9 }
  0x22   :  { %476 = vmatmul.mubr.bf16.vlgmr.msra.gmra.mrb[0].mxu0 %v517_v10  ;;  %484 = vmatmul.mubr.bf16.vlgmr.msra.gmra.mrb[0].mxu1 %v518_v11 }
  0x23   :  { %479 = vmatprep.mubr.bf16.mxu0 %v519_v12  ;;  %487 = vmatprep.mubr.bf16.mxu1 %v520_v13 }
  0x2a   :  { %480 = vmatmul.mubr.bf16.gmra.mrb[4].mxu0 %v521_v14  ;;  %488 = vmatmul.mubr.bf16.gmra.mrb[4].mxu1 %v522_v15 }
  0xf5   :  { %v477_v17 = vpop.f32.mrb[0].mxu0  ;;  %v485_v18 = vpop.f32.mrb[0].mxu1 }
  0xf6   :  { %v193_v19 = vadd.f32 %v477_v17, %v347_v16  ;;  %v225_v20 = vadd.f32 %v485_v18, %v347_v16  ;;  %v184_v21 = vpop.f32.mrb[1].mxu0  ;;  %v216_v22 = vpop.f32.mrb[1].mxu1 }
  0xf7   :  { %v185_v23 = vadd.f32 %v347_v16, %v184_v21  ;;  %v217_v24 = vadd.f32 %v347_v16, %v216_v22  ;;  %v478_v25 = vpop.f32.mrb[2].mxu0  ;;  %v486_v26 = vpop.f32.mrb[2].mxu1 }
  0xf8   :  { %v196_v27 = vadd.f32 %v478_v25, %v347_v16  ;;  %v228_v28 = vadd.f32 %v486_v26, %v347_v16  ;;  %v187_v29 = vpop.f32.mrb[3].mxu0  ;;  %v219_v30 = vpop.f32.mrb[3].mxu1  ;;  %v249_v33 = vmax.f32 %v193_v19, 0.0  ;;  %v257_v34 = vmax.f32 %v225_v20, 0.0 }
  0xf9   :  { %v188_v31 = vadd.f32 %v347_v16, %v187_v29  ;;  %v220_v32 = vadd.f32 %v347_v16, %v219_v30  ;;  %v247_v37 = vmax.f32 %v185_v23, 0.0  ;;  %v255_v38 = vmax.f32 %v217_v24, 0.0 }
  0xfa   :  { %v250_v35 = vmax.f32 %v196_v27, 0.0  ;;  %v258_v36 = vmax.f32 %v228_v28, 0.0 }
  0xfb   :  { %v248_v39 = vmax.f32 %v188_v31, 0.0  ;;  %v256_v40 = vmax.f32 %v220_v32, 0.0 }
  0xfc   :  { %v404_v41 = vpack.c.bf16 %v250_v35, %v249_v33  ;;  %v424_v42 = vpack.c.bf16 %v258_v36, %v257_v34 }
  0xfd   :  { %v399_v43 = vpack.c.bf16 %v248_v39, %v247_v37  ;;  %v419_v44 = vpack.c.bf16 %v256_v40, %v255_v38  ;;  %v481_v45 = vpop.f32.mrb[4].mxu0  ;;  %v489_v46 = vpop.f32.mrb[4].mxu1 }
  0xfe   :  { %436 = vst [vmem:[%s621_s3 + $0x8] sm:$0xff] %v404_v41   ;;  %440 = vst [vmem:[%s621_s3 + $0x28] sm:$0xff] %v424_v42   ;;  %v209_v47 = vadd.f32 %v481_v45, %v347_v16  ;;  %v241_v48 = vadd.f32 %v489_v46, %v347_v16  ;;  %v200_v49 = vpop.f32.mrb[5].mxu0  ;;  %v232_v50 = vpop.f32.mrb[5].mxu1 }
  0xff   :  { %400 = vst [vmem:[%s621_s3] sm:$0xff] %v399_v43   ;;  %439 = vst [vmem:[%s621_s3 + $0x20] sm:$0xff] %v419_v44   ;;  %v201_v51 = vadd.f32 %v347_v16, %v200_v49  ;;  %v233_v52 = vadd.f32 %v347_v16, %v232_v50  ;;  %v482_v53 = vpop.f32.mrb[6].mxu0  ;;  %v490_v54 = vpop.f32.mrb[6].mxu1 }
 0x100   :  { %v212_v55 = vadd.f32 %v482_v53, %v347_v16  ;;  %v244_v56 = vadd.f32 %v490_v54, %v347_v16  ;;  %v203_v57 = vpop.f32.mrb[7].mxu0  ;;  %v235_v58 = vpop.f32.mrb[7].mxu1  ;;  %v253_v61 = vmax.f32 %v209_v47, 0.0  ;;  %v261_v62 = vmax.f32 %v241_v48, 0.0 }
 0x101   :  { %v204_v59 = vadd.f32 %v347_v16, %v203_v57  ;;  %v236_v60 = vadd.f32 %v347_v16, %v235_v58  ;;  %v251_v1 = vmax.f32 %v201_v51, 0.0  ;;  %v259_v2 = vmax.f32 %v233_v52, 0.0 }
 0x102   :  { %v254_v63 = vmax.f32 %v212_v55, 0.0  ;;  %v262_v0 = vmax.f32 %v244_v56, 0.0 }
 0x103   :  { %v252_v3 = vmax.f32 %v204_v59, 0.0  ;;  %v260_v4 = vmax.f32 %v236_v60, 0.0 }
 0x104   :  { %v414_v5 = vpack.c.bf16 %v254_v63, %v253_v61  ;;  %v434_v6 = vpack.c.bf16 %v262_v0, %v261_v62 }
 0x105   :  { %v409_v7 = vpack.c.bf16 %v252_v3, %v251_v1  ;;  %v429_v8 = vpack.c.bf16 %v260_v4, %v259_v2 }
 0x106   :  { %438 = vst [vmem:[%s621_s3 + $0x18] sm:$0xff] %v414_v5   ;;  %442 = vst [vmem:[%s621_s3 + $0x38] sm:$0xff] %v434_v6  }
 0x107   :  { %437 = vst [vmem:[%s621_s3 + $0x10] sm:$0xff] %v409_v7   ;;  %441 = vst [vmem:[%s621_s3 + $0x30] sm:$0xff] %v429_v8  }

// kernel: dino_forward.30
= control target key start
LH: loop header
LB: loop body
LE: loop exit
PB: predicated region body
PF: predicated region fallthrough
CT: control target
= control target key end

     0   :  { %s1407_s15 = smov 0   ;;  %s1409_s16 = smov 0   ;;  %s1632_s0 = inlined_call_operand.vmem [shape: bf16[128,128], index: 0, kind: input, shape index: {}]   ;;  %s1633_s1 = inlined_call_operand.vmem [shape: bf16[128,256], index: 1, kind: input, shape index: {}]   ;;  %s1634_s2 = inlined_call_operand.vmem [shape: f32[1,256], index: 2, kind: input, shape index: {}]   ;;  %s1635_s3 = inlined_call_operand.vmem [shape: bf16[128,256], index: 3, kind: input, shape index: {}]   ;;  %s1636_s4 = inlined_call_operand.vmem [shape: bf16[128,256], index: 4, kind: output, shape index: {}]  }
   0x1   :  { %s1411_s17 = smov 0   ;;  %s1413_s18 = smov 0  }
   0x2   :  { %s1415_s19 = smov 0  }
   0x3 LB: > { %s23_s20 = sadd.s32 1, %s1376_s18  ;;  %s1070_s21 = sadd.s32 4294967295, %s1380_s19   ;;  %s1380_s19 = sphi %s1415_s19, %s14_s19   ;;  %s1376_s18 = sphi %s1413_s18, %s1642_s18   ;;  %s1372_s17 = sphi %s1411_s17, %s1641_s17   ;;  %s1368_s16 = sphi %s1409_s16, %s1640_s16   ;;  %s1364_s15 = sphi %s1407_s15, %s1639_s15  }
   0x4   : > { %p24_p0 = scmp.ge.s32.totalorder %s23_s20, 2  ;;  %p66_p1 = scmp.ne.s32.totalorder %s1368_s16, %s1364_s15 }
   0x5   : > { %p67_p2 = scmp.eq.s32.totalorder %s1380_s19, 0  ;;  %p152_p4 = scmp.eq.s32.totalorder %s1070_s21, 1 }
   0x6   : > { %s1644_s20 = smov (%p24_p0, %s23_s20), 0  ;;  %s59_s24 = sadd.s32 1, %s1368_s16 }
   0x7   : > { %p1439_p3 = por %p67_p2, %p66_p1  ;;  %s56_s23 = ssub.s32 %s1376_s18, %s1644_s20 }
   0x8   : > { %p57_p5 = scmp.eq.s32.totalorder %s56_s23, 0  ;;  %p1446_p6 = por %p152_p4, %p66_p1 }
   0x9   : > { %p1074_p7 = scmp.ge.s32.totalorder %s1380_s19, 2 }
   0xa   : > { %s1451_s26 = scalar_select %p57_p5, %s1368_s16, %s59_s24  }
   0xb   : > { %183 = sbr.rel (%p1074_p7) target bundleno = 46 (0x2e), region = 20 }
  0x12   : > { %186 = sbr.rel (!%p1439_p3) target bundleno = 32 (0x20), region = 24  ;;  %s188_s27 = sand.u32 (%p1439_p3), 1, %s1368_s16  }
  0x13   : > { %s1076_s28 = sshll.u32 (%p1439_p3), %s1376_s18, 2  ;;  %s1075_s29 = sshll.u32 (%p1439_p3), %s188_s27, 6 }
  0x14   : > { %s1461_s6 = scalar_lea.vmem (%p1439_p3), %s1633_s1, %s1076_s28  ;;  %s190_s7 = scalar_lea.vmem (%p1439_p3), [#allocation2], %s1075_s29 }
  0x15   : > { %v208_v0 = vld [vmem:[%s1461_s6] sm:$0xf] (%p1439_p3)  ;;  %v210_v1 = vld [vmem:[%s1461_s6 + $0x8] sm:$0xf] (%p1439_p3)  ;;  %v212_v2 = vld [vmem:[%s1461_s6 + $0x10] sm:$0xf] (%p1439_p3) }
  0x16   : > { %209 = vst [vmem:[%s190_s7] sm:$0xf] (%p1439_p3), %v208_v0  ;;  %211 = vst [vmem:[%s190_s7 + $0x4] sm:$0xf] (%p1439_p3), %v210_v1  ;;  %v214_v3 = vld [vmem:[%s1461_s6 + $0x18] sm:$0xf] (%p1439_p3) }
  0x17   : > { %v216_v4 = vld [vmem:[%s1461_s6 + $0x20] sm:$0xf] (%p1439_p3)  ;;  %213 = vst [vmem:[%s190_s7 + $0x8] sm:$0xf] (%p1439_p3), %v212_v2  ;;  %215 = vst [vmem:[%s190_s7 + $0xc] sm:$0xf] (%p1439_p3), %v214_v3 }
  0x18   : > { %217 = vst [vmem:[%s190_s7 + $0x10] sm:$0xf] (%p1439_p3), %v216_v4  ;;  %v218_v5 = vld [vmem:[%s1461_s6 + $0x28] sm:$0xf] (%p1439_p3)  ;;  %v220_v6 = vld [vmem:[%s1461_s6 + $0x30] sm:$0xf] (%p1439_p3) }
  0x19   : > { %v222_v7 = vld [vmem:[%s1461_s6 + $0x38] sm:$0xf]  ;;  %219 = vst [vmem:[%s190_s7 + $0x14] sm:$0xf] %v218_v5  ;;  %221 = vst [vmem:[%s190_s7 + $0x18] sm:$0xf] %v220_v6 }
  0x1a   : > { %223 = vst [vmem:[%s190_s7 + $0x1c] sm:$0xf] %v222_v7  ;;  %v224_v8 = vld [vmem:[%s1461_s6 + $0x40] sm:$0xf]  ;;  %v226_v9 = vld [vmem:[%s1461_s6 + $0x48] sm:$0xf] }
  0x1b   : > { %v228_v10 = vld [vmem:[%s1461_s6 + $0x50] sm:$0xf]  ;;  %225 = vst [vmem:[%s190_s7 + $0x20] sm:$0xf] %v224_v8  ;;  %227 = vst [vmem:[%s190_s7 + $0x24] sm:$0xf] %v226_v9 }
  0x1c   : > { %229 = vst [vmem:[%s190_s7 + $0x28] sm:$0xf] %v228_v10  ;;  %v230_v11 = vld [vmem:[%s1461_s6 + $0x58] sm:$0xf]  ;;  %v232_v12 = vld [vmem:[%s1461_s6 + $0x60] sm:$0xf] }
  0x1d   : > { %v234_v13 = vld [vmem:[%s1461_s6 + $0x68] sm:$0xf]  ;;  %231 = vst [vmem:[%s190_s7 + $0x2c] sm:$0xf] %v230_v11  ;;  %233 = vst [vmem:[%s190_s7 + $0x30] sm:$0xf] %v232_v12 }
  0x1e   : > { %235 = vst [vmem:[%s190_s7 + $0x34] sm:$0xf] %v234_v13  ;;  %v236_v14 = vld [vmem:[%s1461_s6 + $0x70] sm:$0xf]  ;;  %v238_v15 = vld [vmem:[%s1461_s6 + $0x78] sm:$0xf] }
  0x1f   : > { %237 = vst [vmem:[%s190_s7 + $0x38] sm:$0xf] %v236_v14  ;;  %239 = vst [vmem:[%s190_s7 + $0x3c] sm:$0xf] %v238_v15 }
  0x20 PF: > { %300 = sbr.rel (!%p1439_p3) target bundleno = 46 (0x2e), region = 69  ;;  %s302_s8 = sand.u32 (%p1439_p3), 1, %s1368_s16  }
  0x21   : > { %s1078_s9 = sshll.u32 (%p1439_p3), %s1376_s18, 2  ;;  %s1077_s10 = sshll.u32 (%p1439_p3), %s302_s8, 6 }
  0x22   : > { %s1486_s13 = scalar_lea.vmem (%p1439_p3), %s1635_s3, %s1078_s9  ;;  %s304_s14 = scalar_lea.vmem (%p1439_p3), [#allocation3], %s1077_s10 }
  0x23   : > { %v325_v16 = vld [vmem:[%s1486_s13] sm:$0xf] (%p1439_p3)  ;;  %v327_v17 = vld [vmem:[%s1486_s13 + $0x8] sm:$0xf] (%p1439_p3)  ;;  %v329_v18 = vld [vmem:[%s1486_s13 + $0x10] sm:$0xf] (%p1439_p3) }
  0x24   : > { %326 = vst [vmem:[%s304_s14] sm:$0xf] (%p1439_p3), %v325_v16  ;;  %328 = vst [vmem:[%s304_s14 + $0x4] sm:$0xf] (%p1439_p3), %v327_v17  ;;  %v331_v19 = vld [vmem:[%s1486_s13 + $0x18] sm:$0xf] (%p1439_p3) }
  0x25   : > { %v333_v20 = vld [vmem:[%s1486_s13 + $0x20] sm:$0xf] (%p1439_p3)  ;;  %330 = vst [vmem:[%s304_s14 + $0x8] sm:$0xf] (%p1439_p3), %v329_v18  ;;  %332 = vst [vmem:[%s304_s14 + $0xc] sm:$0xf] (%p1439_p3), %v331_v19 }
  0x26   : > { %334 = vst [vmem:[%s304_s14 + $0x10] sm:$0xf] (%p1439_p3), %v333_v20  ;;  %v335_v21 = vld [vmem:[%s1486_s13 + $0x28] sm:$0xf] (%p1439_p3)  ;;  %v337_v22 = vld [vmem:[%s1486_s13 + $0x30] sm:$0xf] (%p1439_p3) }
  0x27   : > { %v339_v23 = vld [vmem:[%s1486_s13 + $0x38] sm:$0xf]  ;;  %336 = vst [vmem:[%s304_s14 + $0x14] sm:$0xf] %v335_v21  ;;  %338 = vst [vmem:[%s304_s14 + $0x18] sm:$0xf] %v337_v22 }
  0x28   : > { %340 = vst [vmem:[%s304_s14 + $0x1c] sm:$0xf] %v339_v23  ;;  %v341_v24 = vld [vmem:[%s1486_s13 + $0x40] sm:$0xf]  ;;  %v343_v25 = vld [vmem:[%s1486_s13 + $0x48] sm:$0xf] }
  0x29   : > { %v345_v26 = vld [vmem:[%s1486_s13 + $0x50] sm:$0xf]  ;;  %342 = vst [vmem:[%s304_s14 + $0x20] sm:$0xf] %v341_v24  ;;  %344 = vst [vmem:[%s304_s14 + $0x24] sm:$0xf] %v343_v25 }
  0x2a   : > { %346 = vst [vmem:[%s304_s14 + $0x28] sm:$0xf] %v345_v26  ;;  %v347_v27 = vld [vmem:[%s1486_s13 + $0x58] sm:$0xf]  ;;  %v349_v28 = vld [vmem:[%s1486_s13 + $0x60] sm:$0xf] }
  0x2b   : > { %v351_v29 = vld [vmem:[%s1486_s13 + $0x68] sm:$0xf]  ;;  %348 = vst [vmem:[%s304_s14 + $0x2c] sm:$0xf] %v347_v27  ;;  %350 = vst [vmem:[%s304_s14 + $0x30] sm:$0xf] %v349_v28 }
  0x2c   : > { %352 = vst [vmem:[%s304_s14 + $0x34] sm:$0xf] %v351_v29  ;;  %v353_v30 = vld [vmem:[%s1486_s13 + $0x70] sm:$0xf]  ;;  %v355_v31 = vld [vmem:[%s1486_s13 + $0x78] sm:$0xf] }
  0x2d   : > { %354 = vst [vmem:[%s304_s14 + $0x38] sm:$0xf] %v353_v30  ;;  %356 = vst [vmem:[%s304_s14 + $0x3c] sm:$0xf] %v355_v31 }
  0x2e PF: > { %p1079_p8 = scmp.ge.s32.totalorder %s1380_s19, 1  ;;  %p410_p9 = scmp.lt.s32.totalorder %s1380_s19, 3 }
  0x30   : > { %p411_p10 = pnand %p1079_p8, %p410_p9 }
  0x31   : > { %s417_s21 = sand.u32 (!%p411_p10), 1, %s1364_s15   ;;  %v1334_v32 = vld [vmem:[%s1632_s0] sm:$0xff] (!%p411_p10)   ;;  %v1336_v42 = vld [vmem:[%s1632_s0 + $0x8] sm:$0xff] (!%p411_p10)   ;;  %v1338_v44 = vld [vmem:[%s1632_s0 + $0x10] sm:$0xff] (!%p411_p10)   ;;  %p466_p11 = scmp.lt.s32.totalorder (!%p411_p10), %s1372_s17, 1 }
  0x32   : > { %414 = sbr.rel (%p411_p10) target bundleno = 328 (0x148), region = 110  ;;  %s1510_s24 = sshll.u32 (!%p411_p10), %s417_s21, 6  ;;  %v1335_v33 = vld [vmem:[%s1632_s0 + $0x20] sm:$0xff] (!%p411_p10)   ;;  %1254 = vmatprep.mubr.bf16.mxu0 (!%p411_p10), %v1334_v32  ;;  %v1337_v43 = vld [vmem:[%s1632_s0 + $0x28] sm:$0xff] (!%p411_p10)   ;;  %v1339_v45 = vld [vmem:[%s1632_s0 + $0x30] sm:$0xff] (!%p411_p10)  }
  0x33   : > { %s1516_s29 = scalar_lea.vmem (!%p411_p10), [#allocation2], %s1510_s24  ;;  %1262 = vmatprep.mubr.bf16.mxu1 (!%p411_p10), %v1335_v33  ;;  %v1340_v46 = vld [vmem:[%s1632_s0 + $0x18] sm:$0xff] (!%p411_p10)   ;;  %s426_s28 = scalar_lea.vmem (!%p411_p10), [#allocation3], %s1510_s24 }
  0x34   : > { %v1326_v34 = vld [vmem:[%s1516_s29] sm:$0xff] (!%p411_p10)   ;;  %v1327_v35 = vld [vmem:[%s1516_s29 + $0x8] sm:$0xff] (!%p411_p10)   ;;  %v1328_v36 = vld [vmem:[%s1516_s29 + $0x10] sm:$0xff] (!%p411_p10)  }
  0x35   : > { %1238 = vmatprep.subr.bf16.mxu0 (!%p411_p10), %v1326_v34  ;;  %1270 = vmatprep.subr.bf16.mxu1 (!%p411_p10), %v1326_v34  ;;  %v1329_v37 = vld [vmem:[%s1516_s29 + $0x18] sm:$0xff] (!%p411_p10)   ;;  %v1330_v38 = vld [vmem:[%s1516_s29 + $0x20] sm:$0xff] (!%p411_p10)   ;;  %v1331_v39 = vld [vmem:[%s1516_s29 + $0x28] sm:$0xff] (!%p411_p10)  }
  0x36   : > { %1239 = vmatpush3.bf16.msra.mxu0 (!%p411_p10), %v1326_v34  ;;  %1278 = vmatpush3.bf16.msra.mxu1 (!%p411_p10), %v1326_v34  ;;  %v1332_v40 = vld [vmem:[%s1516_s29 + $0x30] sm:$0xff] (!%p411_p10)   ;;  %v1333_v41 = vld [vmem:[%s1516_s29 + $0x38] sm:$0xff] (!%p411_p10)   ;;  %v1208_v48 = vld [vmem:[%s426_s28 + $0x8] sm:$0xff] (!%p411_p10)   ;;  %s1581_s29 = scalar_lea.vmem (!%p411_p10), [#allocation4], %s1510_s24 }
  0x37   : > { %1240 = vmatprep.subr.bf16.mxu0 (!%p411_p10), %v1327_v35  ;;  %1271 = vmatprep.subr.bf16.mxu1 (!%p411_p10), %v1327_v35  ;;  %v1341_v47 = vld [vmem:[%s1632_s0 + $0x38] sm:$0xff] (!%p411_p10)   ;;  %v1212_v49 = vld [vmem:[%s426_s28 + $0x28] sm:$0xff] (!%p411_p10)   ;;  %v1137_v50 = vld [vmem:[%s426_s28] sm:$0xff] (!%p411_p10)   ;;  %v1142_v55 = vunpack.c.l.bf16 (!%p411_p10), %v1208_v48  ;;  %v1143_v63 = vunpack.c.h.bf16 (!%p411_p10), %v1208_v48 }
  0x38   : > { %v1211_v51 = vld [vmem:[%s426_s28 + $0x20] sm:$0xff] (!%p411_p10)   ;;  %v1552_v53 = vld [vmem:[%s426_s28 + $0x18] sm:$0xff] (!%p411_p10)   ;;  %v1158_v56 = vunpack.c.l.bf16 (!%p411_p10), %v1212_v49  ;;  %v1138_v57 = vunpack.c.l.bf16 (!%p411_p10), %v1137_v50  ;;  %v1556_v59 = vld [vmem:[%s426_s28 + $0x10] sm:$0xff] (!%p411_p10)   ;;  %v1159_v0 = vunpack.c.h.bf16 (!%p411_p10), %v1212_v49  ;;  %v1139_v1 = vunpack.c.h.bf16 (!%p411_p10), %v1137_v50 }
  0x39   : > { %s467_s21 = scalar_select %p466_p11, %s1372_s17, 1  ;;  %v1554_v54 = vld [vmem:[%s426_s28 + $0x38] sm:$0xff]   ;;  %v1154_v58 = vunpack.c.l.bf16 %v1211_v51  ;;  %v1558_v60 = vld [vmem:[%s426_s28 + $0x30] sm:$0xff]   ;;  %v1155_v2 = vunpack.c.h.bf16 %v1211_v51  ;;  %v1150_v7 = vunpack.c.l.bf16 %v1552_v53  ;;  %v1146_v13 = vunpack.c.l.bf16 %v1556_v59 }
  0x3a   : > { %1241 = vmatpush3.bf16.msra.mxu0 %v1327_v35  ;;  %1279 = vmatpush3.bf16.msra.mxu1 %v1327_v35  ;;  %v1166_v8 = vunpack.c.l.bf16 %v1554_v54  ;;  %v1162_v14 = vunpack.c.l.bf16 %v1558_v60  ;;  %v1151_v27 = vunpack.c.h.bf16 %v1552_v53  ;;  %v1167_v28 = vunpack.c.h.bf16 %v1554_v54  ;;  %s1117_s24 = sshll.u32 (%p1446_p6), %s1372_s17, 2 }
  0x3b   : > { %1242 = vmatprep.subr.bf16.mxu0 %v1328_v36  ;;  %1272 = vmatprep.subr.bf16.mxu1 %v1328_v36  ;;  %s468_s27 = scalar_lea.vmem %s1634_s2, %s467_s21  ;;  %v1147_v31 = vunpack.c.h.bf16 %v1556_v59  ;;  %v1163_v32 = vunpack.c.h.bf16 %v1558_v60  ;;  %s859_s5 = scalar_lea.vmem (%p1446_p6), %s1636_s4, %s1117_s24 }
  0x3c   : > { %v1550_v52 = vld [vmem:[%s468_s27] ss:$0 sm:$0xff] }
  0x3e   : > { %1243 = vmatpush3.bf16.msra.mxu0 %v1328_v36  ;;  %1280 = vmatpush3.bf16.msra.mxu1 %v1328_v36 }
  0x3f   : > { %1244 = vmatprep.subr.bf16.mxu0 %v1329_v37  ;;  %1273 = vmatprep.subr.bf16.mxu1 %v1329_v37 }
  0x42   : > { %1245 = vmatpush3.bf16.msra.mxu0 %v1329_v37  ;;  %1281 = vmatpush3.bf16.msra.mxu1 %v1329_v37 }
  0x43   : > { %1246 = vmatprep.subr.bf16.mxu0 %v1330_v38  ;;  %1274 = vmatprep.subr.bf16.mxu1 %v1330_v38 }
  0x46   : > { %1247 = vmatpush3.bf16.msra.mxu0 %v1330_v38  ;;  %1282 = vmatpush3.bf16.msra.mxu1 %v1330_v38 }
  0x47   : > { %1248 = vmatprep.subr.bf16.mxu0 %v1331_v39  ;;  %1275 = vmatprep.subr.bf16.mxu1 %v1331_v39 }
  0x4a   : > { %1249 = vmatpush3.bf16.msra.mxu0 %v1331_v39  ;;  %1283 = vmatpush3.bf16.msra.mxu1 %v1331_v39 }
  0x4b   : > { %1250 = vmatprep.subr.bf16.mxu0 %v1332_v40  ;;  %1276 = vmatprep.subr.bf16.mxu1 %v1332_v40 }
  0x4e   : > { %1251 = vmatpush3.bf16.msra.mxu0 %v1332_v40  ;;  %1284 = vmatpush3.bf16.msra.mxu1 %v1332_v40 }
  0x4f   : > { %1252 = vmatprep.subr.bf16.mxu0 %v1333_v41  ;;  %1277 = vmatprep.subr.bf16.mxu1 %v1333_v41 }
  0x52   : > { %1253 = vmatpush3.bf16.msra.mxu0 %v1333_v41  ;;  %1285 = vmatpush3.bf16.msra.mxu1 %v1333_v41 }
  0x55   : > { %1255 = vmatmul.mubr.bf16.vlgmr.msra.gmra.mrb[0].mxu0 %v1336_v42  ;;  %1263 = vmatmul.mubr.bf16.vlgmr.msra.gmra.mrb[0].mxu1 %v1337_v43 }
  0x56   : > { %1258 = vmatprep.mubr.bf16.mxu0 %v1338_v44  ;;  %1266 = vmatprep.mubr.bf16.mxu1 %v1339_v45 }
  0x5d   : > { %1259 = vmatmul.mubr.bf16.gmra.mrb[4].mxu0 %v1340_v46  ;;  %1267 = vmatmul.mubr.bf16.gmra.mrb[4].mxu1 %v1341_v47 }
 0x128   : > { %v1256_v61 = vpop.f32.mrb[0].mxu0  ;;  %v1264_v62 = vpop.f32.mrb[0].mxu1 }
 0x129   : > { %v650_v3 = vadd.f32 %v1256_v61, %v1550_v52  ;;  %v682_v4 = vadd.f32 %v1264_v62, %v1550_v52  ;;  %v641_v5 = vpop.f32.mrb[1].mxu0  ;;  %v673_v6 = vpop.f32.mrb[1].mxu1 }
 0x12a   : > { %v642_v9 = vadd.f32 %v1550_v52, %v641_v5  ;;  %v674_v10 = vadd.f32 %v1550_v52, %v673_v6  ;;  %v1257_v11 = vpop.f32.mrb[2].mxu0  ;;  %v1265_v12 = vpop.f32.mrb[2].mxu1 }
 0x12b   : > { %v738_v15 = vadd.f32 %v1142_v55, %v650_v3  ;;  %v746_v16 = vadd.f32 %v1158_v56, %v682_v4  ;;  %v653_v17 = vadd.f32 %v1257_v11, %v1550_v52  ;;  %v685_v18 = vadd.f32 %v1265_v12, %v1550_v52  ;;  %v644_v19 = vpop.f32.mrb[3].mxu0  ;;  %v676_v20 = vpop.f32.mrb[3].mxu1 }
 0x12c   : > { %v736_v21 = vadd.f32 %v1138_v57, %v642_v9  ;;  %v744_v22 = vadd.f32 %v1154_v58, %v674_v10  ;;  %v645_v23 = vadd.f32 %v1550_v52, %v644_v19  ;;  %v677_v24 = vadd.f32 %v1550_v52, %v676_v20 }
 0x12d   : > { %v739_v25 = vadd.f32 %v1143_v63, %v653_v17  ;;  %v747_v26 = vadd.f32 %v1159_v0, %v685_v18  ;;  %v754_v33 = vmax.f32 %v738_v15, 0.0  ;;  %v762_v34 = vmax.f32 %v746_v16, 0.0 }
 0x12e   : > { %v737_v29 = vadd.f32 %v1139_v1, %v645_v23  ;;  %v745_v30 = vadd.f32 %v1155_v2, %v677_v24  ;;  %v752_v37 = vmax.f32 %v736_v21, 0.0  ;;  %v760_v38 = vmax.f32 %v744_v22, 0.0 }
 0x12f   : > { %v755_v35 = vmax.f32 %v739_v25, 0.0  ;;  %v763_v36 = vmax.f32 %v747_v26, 0.0 }
 0x130   : > { %v753_v39 = vmax.f32 %v737_v29, 0.0  ;;  %v761_v40 = vmax.f32 %v745_v30, 0.0  ;;  %v1260_v41 = vpop.f32.mrb[4].mxu0  ;;  %v1268_v42 = vpop.f32.mrb[4].mxu1 }
 0x131   : > { %v1176_v43 = vpack.c.bf16 %v755_v35, %v754_v33  ;;  %v1196_v44 = vpack.c.bf16 %v763_v36, %v762_v34  ;;  %v666_v45 = vadd.f32 %v1260_v41, %v1550_v52  ;;  %v698_v46 = vadd.f32 %v1268_v42, %v1550_v52  ;;  %v657_v47 = vpop.f32.mrb[5].mxu0  ;;  %v689_v48 = vpop.f32.mrb[5].mxu1 }
 0x132   : > { %v1171_v49 = vpack.c.bf16 %v753_v39, %v752_v37  ;;  %v1191_v50 = vpack.c.bf16 %v761_v40, %v760_v38  ;;  %v658_v51 = vadd.f32 %v1550_v52, %v657_v47  ;;  %v690_v53 = vadd.f32 %v1550_v52, %v689_v48  ;;  %v1261_v54 = vpop.f32.mrb[6].mxu0  ;;  %v1269_v55 = vpop.f32.mrb[6].mxu1 }
 0x133   : > { %1215 = vst [vmem:[%s1581_s29 + $0x8] sm:$0xff] %v1176_v43   ;;  %1219 = vst [vmem:[%s1581_s29 + $0x28] sm:$0xff] %v1196_v44   ;;  %v742_v56 = vadd.f32 %v1150_v7, %v666_v45  ;;  %v750_v57 = vadd.f32 %v1166_v8, %v698_v46  ;;  %v669_v58 = vadd.f32 %v1261_v54, %v1550_v52  ;;  %v660_v60 = vpop.f32.mrb[7].mxu0  ;;  %v692_v61 = vpop.f32.mrb[7].mxu1 }
 0x134   : > { %v701_v59 = vadd.f32 %v1269_v55, %v1550_v52  ;;  %1172 = vst [vmem:[%s1581_s29] sm:$0xff] %v1171_v49   ;;  %1218 = vst [vmem:[%s1581_s29 + $0x20] sm:$0xff] %v1191_v50   ;;  %v740_v62 = vadd.f32 %v1146_v13, %v658_v51  ;;  %v748_v63 = vadd.f32 %v1162_v14, %v690_v53 }
 0x135   : > { %v661_v0 = vadd.f32 %v1550_v52, %v660_v60  ;;  %v693_v1 = vadd.f32 %v1550_v52, %v692_v61  ;;  %v743_v2 = vadd.f32 %v1151_v27, %v669_v58  ;;  %v758_v6 = vmax.f32 %v742_v56, 0.0 }
 0x136   : > { %v751_v3 = vadd.f32 %v1167_v28, %v701_v59  ;;  %v766_v7 = vmax.f32 %v750_v57, 0.0  ;;  %v756_v10 = vmax.f32 %v740_v62, 0.0  ;;  %v764_v11 = vmax.f32 %v748_v63, 0.0 }
 0x137   : > { %v741_v4 = vadd.f32 %v1147_v31, %v661_v0  ;;  %v749_v5 = vadd.f32 %v1163_v32, %v693_v1  ;;  %v759_v8 = vmax.f32 %v743_v2, 0.0  ;;  %854 = sbr.rel (!%p1446_p6) target bundleno = 328 (0x148), region = 122 }
 0x138   : > { %v767_v9 = vmax.f32 %v751_v3, 0.0 }
 0x139   : > { %v757_v12 = vmax.f32 %v741_v4, 0.0  ;;  %v765_v13 = vmax.f32 %v749_v5, 0.0  ;;  %v1186_v14 = vpack.c.bf16 %v759_v8, %v758_v6 }
 0x13a   : > { %v1206_v15 = vpack.c.bf16 %v767_v9, %v766_v7  ;;  %v879_v19 = vld [vmem:[%s1581_s29 + $0x8] sm:$0xf] (%p1446_p6)  ;;  %v881_v20 = vld [vmem:[%s1581_s29 + $0xc] sm:$0xf] (%p1446_p6) }
 0x13b   : > { %v1181_v16 = vpack.c.bf16 %v757_v12, %v756_v10  ;;  %v1201_v52 = vpack.c.bf16 %v765_v13, %v764_v11  ;;  %1217 = vst [vmem:[%s1581_s29 + $0x18] sm:$0xff] %v1186_v14   ;;  %v875_v17 = vld [vmem:[%s1581_s29] sm:$0xf] (%p1446_p6)  ;;  %v877_v18 = vld [vmem:[%s1581_s29 + $0x4] sm:$0xf] (%p1446_p6) }
 0x13c   : > { %1221 = vst [vmem:[%s1581_s29 + $0x38] sm:$0xff] %v1206_v15   ;;  %876 = vst [vmem:[%s859_s5] sm:$0xf] (%p1446_p6), %v875_v17  ;;  %v891_v25 = vld [vmem:[%s1581_s29 + $0x20] sm:$0xf] (%p1446_p6)  ;;  %v893_v26 = vld [vmem:[%s1581_s29 + $0x24] sm:$0xf] (%p1446_p6) }
 0x13d   : > { %1216 = vst [vmem:[%s1581_s29 + $0x10] sm:$0xff] %v1181_v16   ;;  %1220 = vst [vmem:[%s1581_s29 + $0x30] sm:$0xff] %v1201_v52   ;;  %v895_v27 = vld [vmem:[%s1581_s29 + $0x28] sm:$0xf] (%p1446_p6)  ;;  %v897_v28 = vld [vmem:[%s1581_s29 + $0x2c] sm:$0xf] (%p1446_p6) }
 0x13e   : > { %878 = vst [vmem:[%s859_s5 + $0x8] sm:$0xf] %v877_v18  ;;  %880 = vst [vmem:[%s859_s5 + $0x10] sm:$0xf] %v879_v19 }
 0x13f   : > { %882 = vst [vmem:[%s859_s5 + $0x18] sm:$0xf] %v881_v20  ;;  %892 = vst [vmem:[%s859_s5 + $0x40] sm:$0xf] %v891_v25 }
 0x140   : > { %894 = vst [vmem:[%s859_s5 + $0x48] sm:$0xf] %v893_v26  ;;  %896 = vst [vmem:[%s859_s5 + $0x50] sm:$0xf] %v895_v27 }
 0x141   : > { %898 = vst [vmem:[%s859_s5 + $0x58] sm:$0xf] %v897_v28 }
 0x142   : > { %v887_v23 = vld [vmem:[%s1581_s29 + $0x18] sm:$0xf]  ;;  %v889_v24 = vld [vmem:[%s1581_s29 + $0x1c] sm:$0xf] }
 0x143   : > { %888 = vst [vmem:[%s859_s5 + $0x30] sm:$0xf] %v887_v23  ;;  %890 = vst [vmem:[%s859_s5 + $0x38] sm:$0xf] %v889_v24  ;;  %v903_v31 = vld [vmem:[%s1581_s29 + $0x38] sm:$0xf] }
 0x144   : > { %v883_v21 = vld [vmem:[%s1581_s29 + $0x10] sm:$0xf]  ;;  %v885_v22 = vld [vmem:[%s1581_s29 + $0x14] sm:$0xf]  ;;  %v905_v32 = vld [vmem:[%s1581_s29 + $0x3c] sm:$0xf] }
 0x145   : > { %884 = vst [vmem:[%s859_s5 + $0x20] sm:$0xf] %v883_v21  ;;  %886 = vst [vmem:[%s859_s5 + $0x28] sm:$0xf] %v885_v22  ;;  %v899_v29 = vld [vmem:[%s1581_s29 + $0x30] sm:$0xf] }
 0x146   : > { %v901_v30 = vld [vmem:[%s1581_s29 + $0x34] sm:$0xf]  ;;  %900 = vst [vmem:[%s859_s5 + $0x60] sm:$0xf] %v899_v29  ;;  %904 = vst [vmem:[%s859_s5 + $0x70] sm:$0xf] %v903_v31 }
 0x147   : > { %902 = vst [vmem:[%s859_s5 + $0x68] sm:$0xf] %v901_v30  ;;  %906 = vst [vmem:[%s859_s5 + $0x78] sm:$0xf] %v905_v32 }
 0x148 PF: > { %s14_s19 = sadd.s32 1, %s1380_s19   ;;  %s1639_s15 = smov %s1368_s16 }
 0x149   : > { %p11_p12 = scmp.ge.s32.totalorder %s14_s19, 4   ;;  %s1640_s16 = smov %s1451_s26 }
 0x14a   : > { %s1641_s17 = smov %s1376_s18  ;;  %s1642_s18 = smov %s1644_s20 }
 0x14b   :  { %13 = sbr.rel (!%p11_p12) target bundleno = 3 (0x3), region = 208 }

// kernel: dino_forward.29
= control target key start
LH: loop header
LB: loop body
LE: loop exit
PB: predicated region body
PF: predicated region fallthrough
CT: control target
= control target key end

     0   :  { %s1122_s12 = smov 0   ;;  %s1124_s13 = smov 0   ;;  %s1281_s0 = inlined_call_operand.vmem [shape: bf16[128,128], index: 0, kind: input, shape index: {}]   ;;  %s1282_s1 = inlined_call_operand.vmem [shape: bf16[128,256], index: 1, kind: input, shape index: {}]   ;;  %s1283_s2 = inlined_call_operand.vmem [shape: f32[1,256], index: 2, kind: input, shape index: {}]   ;;  %s1284_s3 = inlined_call_operand.vmem [shape: bf16[128,256], index: 3, kind: output, shape index: {}]  }
   0x1   :  { %s1126_s14 = smov 0   ;;  %s1128_s15 = smov 0  }
   0x2   :  { %s1130_s16 = smov 0  }
   0x3 LB: > { %s22_s17 = sadd.s32 1, %s1096_s15  ;;  %s832_s18 = sadd.s32 4294967295, %s1100_s16   ;;  %s1100_s16 = sphi %s1130_s16, %s13_s16   ;;  %s1096_s15 = sphi %s1128_s15, %s1289_s15   ;;  %s1092_s14 = sphi %s1126_s14, %s1288_s14   ;;  %s1088_s13 = sphi %s1124_s13, %s1287_s13   ;;  %s1084_s12 = sphi %s1122_s12, %s1286_s12  }
   0x4   : > { %p23_p0 = scmp.ge.s32.totalorder %s22_s17, 2  ;;  %p65_p1 = scmp.ne.s32.totalorder %s1088_s13, %s1084_s12 }
   0x5   : > { %p66_p2 = scmp.eq.s32.totalorder %s1100_s16, 0  ;;  %p123_p4 = scmp.eq.s32.totalorder %s832_s18, 1 }
   0x6   : > { %s1291_s17 = smov (%p23_p0, %s22_s17), 0  ;;  %s58_s20 = sadd.s32 1, %s1088_s13 }
   0x7   : > { %p67_p3 = por %p66_p2, %p65_p1  ;;  %s55_s19 = ssub.s32 %s1096_s15, %s1291_s17 }
   0x8   : > { %p56_p5 = scmp.eq.s32.totalorder %s55_s19, 0  ;;  %p1157_p6 = por %p123_p4, %p65_p1 }
   0x9   : > { %p836_p7 = scmp.ge.s32.totalorder %s1100_s16, 2 }
   0xa   : > { %s1162_s22 = scalar_select %p56_p5, %s1088_s13, %s58_s20  }
   0xb   : > { %154 = sbr.rel (%p836_p7) target bundleno = 32 (0x20), region = 20 }
  0x12   : > { %157 = sbr.rel (!%p67_p3) target bundleno = 32 (0x20), region = 24  ;;  %s159_s23 = sand.u32 (%p67_p3), 1, %s1088_s13  }
  0x13   : > { %s838_s24 = sshll.u32 (%p67_p3), %s1096_s15, 2  ;;  %s837_s25 = sshll.u32 (%p67_p3), %s159_s23, 6 }
  0x14   : > { %s1170_s28 = scalar_lea.vmem (%p67_p3), %s1282_s1, %s838_s24  ;;  %s161_s29 = scalar_lea.vmem (%p67_p3), [#allocation2], %s837_s25 }
  0x15   : > { %v179_v0 = vld [vmem:[%s1170_s28] sm:$0xf] (%p67_p3)  ;;  %v181_v1 = vld [vmem:[%s1170_s28 + $0x8] sm:$0xf] (%p67_p3)  ;;  %v183_v2 = vld [vmem:[%s1170_s28 + $0x10] sm:$0xf] (%p67_p3) }
  0x16   : > { %180 = vst [vmem:[%s161_s29] sm:$0xf] (%p67_p3), %v179_v0  ;;  %182 = vst [vmem:[%s161_s29 + $0x4] sm:$0xf] (%p67_p3), %v181_v1  ;;  %v185_v3 = vld [vmem:[%s1170_s28 + $0x18] sm:$0xf] (%p67_p3) }
  0x17   : > { %v187_v4 = vld [vmem:[%s1170_s28 + $0x20] sm:$0xf] (%p67_p3)  ;;  %184 = vst [vmem:[%s161_s29 + $0x8] sm:$0xf] (%p67_p3), %v183_v2  ;;  %186 = vst [vmem:[%s161_s29 + $0xc] sm:$0xf] (%p67_p3), %v185_v3 }
  0x18   : > { %188 = vst [vmem:[%s161_s29 + $0x10] sm:$0xf] (%p67_p3), %v187_v4  ;;  %v189_v5 = vld [vmem:[%s1170_s28 + $0x28] sm:$0xf] (%p67_p3)  ;;  %v191_v6 = vld [vmem:[%s1170_s28 + $0x30] sm:$0xf] (%p67_p3) }
  0x19   : > { %v193_v7 = vld [vmem:[%s1170_s28 + $0x38] sm:$0xf]  ;;  %190 = vst [vmem:[%s161_s29 + $0x14] sm:$0xf] %v189_v5  ;;  %192 = vst [vmem:[%s161_s29 + $0x18] sm:$0xf] %v191_v6 }
  0x1a   : > { %194 = vst [vmem:[%s161_s29 + $0x1c] sm:$0xf] %v193_v7  ;;  %v195_v8 = vld [vmem:[%s1170_s28 + $0x40] sm:$0xf]  ;;  %v197_v9 = vld [vmem:[%s1170_s28 + $0x48] sm:$0xf] }
  0x1b   : > { %v199_v10 = vld [vmem:[%s1170_s28 + $0x50] sm:$0xf]  ;;  %196 = vst [vmem:[%s161_s29 + $0x20] sm:$0xf] %v195_v8  ;;  %198 = vst [vmem:[%s161_s29 + $0x24] sm:$0xf] %v197_v9 }
  0x1c   : > { %200 = vst [vmem:[%s161_s29 + $0x28] sm:$0xf] %v199_v10  ;;  %v201_v11 = vld [vmem:[%s1170_s28 + $0x58] sm:$0xf]  ;;  %v203_v12 = vld [vmem:[%s1170_s28 + $0x60] sm:$0xf] }
  0x1d   : > { %v205_v13 = vld [vmem:[%s1170_s28 + $0x68] sm:$0xf]  ;;  %202 = vst [vmem:[%s161_s29 + $0x2c] sm:$0xf] %v201_v11  ;;  %204 = vst [vmem:[%s161_s29 + $0x30] sm:$0xf] %v203_v12 }
  0x1e   : > { %206 = vst [vmem:[%s161_s29 + $0x34] sm:$0xf] %v205_v13  ;;  %v207_v14 = vld [vmem:[%s1170_s28 + $0x70] sm:$0xf]  ;;  %v209_v15 = vld [vmem:[%s1170_s28 + $0x78] sm:$0xf] }
  0x1f   : > { %208 = vst [vmem:[%s161_s29 + $0x38] sm:$0xf] %v207_v14  ;;  %210 = vst [vmem:[%s161_s29 + $0x3c] sm:$0xf] %v209_v15 }
  0x20 PF: > { %p839_p8 = scmp.ge.s32.totalorder %s1100_s16, 1  ;;  %p270_p9 = scmp.lt.s32.totalorder %s1100_s16, 3 }
  0x22   : > { %p271_p10 = pnand %p839_p8, %p270_p9 }
  0x23   : > { %s277_s30 = sand.u32 (!%p271_p10), 1, %s1084_s12   ;;  %v1054_v16 = vld [vmem:[%s1281_s0] sm:$0xff] (!%p271_p10)   ;;  %v1056_v26 = vld [vmem:[%s1281_s0 + $0x8] sm:$0xff] (!%p271_p10)   ;;  %v1058_v28 = vld [vmem:[%s1281_s0 + $0x10] sm:$0xff] (!%p271_p10)   ;;  %p313_p11 = scmp.lt.s32.totalorder (!%p271_p10), %s1092_s14, 1 }
  0x24   : > { %274 = sbr.rel (%p271_p10) target bundleno = 310 (0x136), region = 69  ;;  %s1194_s6 = sshll.u32 (!%p271_p10), %s277_s30, 6  ;;  %v1055_v17 = vld [vmem:[%s1281_s0 + $0x20] sm:$0xff] (!%p271_p10)   ;;  %974 = vmatprep.mubr.bf16.mxu0 (!%p271_p10), %v1054_v16  ;;  %v1057_v27 = vld [vmem:[%s1281_s0 + $0x28] sm:$0xff] (!%p271_p10)   ;;  %v1059_v29 = vld [vmem:[%s1281_s0 + $0x30] sm:$0xff] (!%p271_p10)  }
  0x25   : > { %s1200_s9 = scalar_lea.vmem (!%p271_p10), [#allocation2], %s1194_s6  ;;  %982 = vmatprep.mubr.bf16.mxu1 (!%p271_p10), %v1055_v17  ;;  %v1060_v30 = vld [vmem:[%s1281_s0 + $0x18] sm:$0xff] (!%p271_p10)   ;;  %s1234_s7 = scalar_lea.vmem (!%p271_p10), [#allocation3], %s1194_s6 }
  0x26   : > { %v1046_v18 = vld [vmem:[%s1200_s9] sm:$0xff] (!%p271_p10)   ;;  %v1047_v19 = vld [vmem:[%s1200_s9 + $0x8] sm:$0xff] (!%p271_p10)   ;;  %v1048_v20 = vld [vmem:[%s1200_s9 + $0x10] sm:$0xff] (!%p271_p10)  }
  0x27   : > { %958 = vmatprep.subr.bf16.mxu0 (!%p271_p10), %v1046_v18  ;;  %990 = vmatprep.subr.bf16.mxu1 (!%p271_p10), %v1046_v18  ;;  %v1049_v21 = vld [vmem:[%s1200_s9 + $0x18] sm:$0xff] (!%p271_p10)   ;;  %v1050_v22 = vld [vmem:[%s1200_s9 + $0x20] sm:$0xff] (!%p271_p10)   ;;  %v1051_v23 = vld [vmem:[%s1200_s9 + $0x28] sm:$0xff] (!%p271_p10)  }
  0x28   : > { %959 = vmatpush3.bf16.msra.mxu0 (!%p271_p10), %v1046_v18  ;;  %998 = vmatpush3.bf16.msra.mxu1 (!%p271_p10), %v1046_v18  ;;  %v1052_v24 = vld [vmem:[%s1200_s9 + $0x30] sm:$0xff] (!%p271_p10)   ;;  %v1053_v25 = vld [vmem:[%s1200_s9 + $0x38] sm:$0xff] (!%p271_p10)  }
  0x29   : > { %960 = vmatprep.subr.bf16.mxu0 (!%p271_p10), %v1047_v19  ;;  %991 = vmatprep.subr.bf16.mxu1 (!%p271_p10), %v1047_v19  ;;  %v1061_v31 = vld [vmem:[%s1281_s0 + $0x38] sm:$0xff] (!%p271_p10)  }
  0x2b   : > { %s314_s29 = scalar_select %p313_p11, %s1092_s14, 1 }
  0x2c   : > { %961 = vmatpush3.bf16.msra.mxu0 %v1047_v19  ;;  %999 = vmatpush3.bf16.msra.mxu1 %v1047_v19  ;;  %s876_s6 = sshll.u32 (%p1157_p6), %s1092_s14, 2 }
  0x2d   : > { %962 = vmatprep.subr.bf16.mxu0 %v1048_v20  ;;  %992 = vmatprep.subr.bf16.mxu1 %v1048_v20  ;;  %s315_s5 = scalar_lea.vmem %s1283_s2, %s314_s29  ;;  %s641_s10 = scalar_lea.vmem (%p1157_p6), %s1284_s3, %s876_s6 }
  0x2e   : > { %v842_v33 = vld [vmem:[%s315_s5] ss:$0 sm:$0xff] }
  0x30   : > { %963 = vmatpush3.bf16.msra.mxu0 %v1048_v20  ;;  %1000 = vmatpush3.bf16.msra.mxu1 %v1048_v20 }
  0x31   : > { %964 = vmatprep.subr.bf16.mxu0 %v1049_v21  ;;  %993 = vmatprep.subr.bf16.mxu1 %v1049_v21 }
  0x34   : > { %965 = vmatpush3.bf16.msra.mxu0 %v1049_v21  ;;  %1001 = vmatpush3.bf16.msra.mxu1 %v1049_v21 }
  0x35   : > { %966 = vmatprep.subr.bf16.mxu0 %v1050_v22  ;;  %994 = vmatprep.subr.bf16.mxu1 %v1050_v22 }
  0x38   : > { %967 = vmatpush3.bf16.msra.mxu0 %v1050_v22  ;;  %1002 = vmatpush3.bf16.msra.mxu1 %v1050_v22 }
  0x39   : > { %968 = vmatprep.subr.bf16.mxu0 %v1051_v23  ;;  %995 = vmatprep.subr.bf16.mxu1 %v1051_v23 }
  0x3c   : > { %969 = vmatpush3.bf16.msra.mxu0 %v1051_v23  ;;  %1003 = vmatpush3.bf16.msra.mxu1 %v1051_v23 }
  0x3d   : > { %970 = vmatprep.subr.bf16.mxu0 %v1052_v24  ;;  %996 = vmatprep.subr.bf16.mxu1 %v1052_v24 }
  0x40   : > { %971 = vmatpush3.bf16.msra.mxu0 %v1052_v24  ;;  %1004 = vmatpush3.bf16.msra.mxu1 %v1052_v24 }
  0x41   : > { %972 = vmatprep.subr.bf16.mxu0 %v1053_v25  ;;  %997 = vmatprep.subr.bf16.mxu1 %v1053_v25 }
  0x44   : > { %973 = vmatpush3.bf16.msra.mxu0 %v1053_v25  ;;  %1005 = vmatpush3.bf16.msra.mxu1 %v1053_v25 }
  0x47   : > { %975 = vmatmul.mubr.bf16.vlgmr.msra.gmra.mrb[0].mxu0 %v1056_v26  ;;  %983 = vmatmul.mubr.bf16.vlgmr.msra.gmra.mrb[0].mxu1 %v1057_v27 }
  0x48   : > { %978 = vmatprep.mubr.bf16.mxu0 %v1058_v28  ;;  %986 = vmatprep.mubr.bf16.mxu1 %v1059_v29 }
  0x4f   : > { %979 = vmatmul.mubr.bf16.gmra.mrb[4].mxu0 %v1060_v30  ;;  %987 = vmatmul.mubr.bf16.gmra.mrb[4].mxu1 %v1061_v31 }
 0x11a   : > { %v976_v32 = vpop.f32.mrb[0].mxu0  ;;  %v984_v34 = vpop.f32.mrb[0].mxu1 }
 0x11b   : > { %v487_v35 = vpop.f32.mrb[1].mxu0  ;;  %v519_v36 = vpop.f32.mrb[1].mxu1  ;;  %v496_v39 = vadd.f32 %v976_v32, %v842_v33  ;;  %v528_v40 = vadd.f32 %v984_v34, %v842_v33 }
 0x11c   : > { %v977_v37 = vpop.f32.mrb[2].mxu0  ;;  %v985_v38 = vpop.f32.mrb[2].mxu1  ;;  %v488_v45 = vadd.f32 %v842_v33, %v487_v35  ;;  %v520_v46 = vadd.f32 %v842_v33, %v519_v36 }
 0x11d   : > { %v499_v41 = vadd.f32 %v977_v37, %v842_v33  ;;  %v531_v42 = vadd.f32 %v985_v38, %v842_v33  ;;  %v490_v43 = vpop.f32.mrb[3].mxu0  ;;  %v522_v44 = vpop.f32.mrb[3].mxu1 }
 0x11e   : > { %v491_v47 = vadd.f32 %v842_v33, %v490_v43  ;;  %v523_v48 = vadd.f32 %v842_v33, %v522_v44 }
 0x11f   : > { %v903_v49 = vpack.c.bf16 %v499_v41, %v496_v39  ;;  %v923_v50 = vpack.c.bf16 %v531_v42, %v528_v40 }
 0x120   : > { %v898_v51 = vpack.c.bf16 %v491_v47, %v488_v45  ;;  %v918_v52 = vpack.c.bf16 %v523_v48, %v520_v46 }
 0x121   : > { %935 = vst [vmem:[%s1234_s7 + $0x8] sm:$0xff] %v903_v49   ;;  %939 = vst [vmem:[%s1234_s7 + $0x28] sm:$0xff] %v923_v50  }
 0x122   : > { %899 = vst [vmem:[%s1234_s7] sm:$0xff] %v898_v51   ;;  %938 = vst [vmem:[%s1234_s7 + $0x20] sm:$0xff] %v918_v52   ;;  %v980_v53 = vpop.f32.mrb[4].mxu0  ;;  %v988_v54 = vpop.f32.mrb[4].mxu1 }
 0x123   : > { %v503_v55 = vpop.f32.mrb[5].mxu0  ;;  %v535_v56 = vpop.f32.mrb[5].mxu1  ;;  %v512_v59 = vadd.f32 %v980_v53, %v842_v33  ;;  %v544_v60 = vadd.f32 %v988_v54, %v842_v33 }
 0x124   : > { %v981_v57 = vpop.f32.mrb[6].mxu0  ;;  %v989_v58 = vpop.f32.mrb[6].mxu1  ;;  %v504_v1 = vadd.f32 %v842_v33, %v503_v55  ;;  %v536_v2 = vadd.f32 %v842_v33, %v535_v56  ;;  %636 = sbr.rel (!%p1157_p6) target bundleno = 310 (0x136), region = 77 }
 0x125   : > { %v515_v61 = vadd.f32 %v981_v57, %v842_v33  ;;  %v547_v62 = vadd.f32 %v989_v58, %v842_v33  ;;  %v506_v63 = vpop.f32.mrb[7].mxu0  ;;  %v538_v0 = vpop.f32.mrb[7].mxu1 }
 0x126   : > { %v507_v3 = vadd.f32 %v842_v33, %v506_v63  ;;  %v539_v4 = vadd.f32 %v842_v33, %v538_v0 }
 0x127   : > { %v913_v5 = vpack.c.bf16 %v515_v61, %v512_v59  ;;  %v933_v6 = vpack.c.bf16 %v547_v62, %v544_v60 }
 0x128   : > { %v908_v7 = vpack.c.bf16 %v507_v3, %v504_v1  ;;  %v928_v8 = vpack.c.bf16 %v539_v4, %v536_v2  ;;  %v661_v11 = vld [vmem:[%s1234_s7 + $0x8] sm:$0xf] (%p1157_p6)  ;;  %v663_v12 = vld [vmem:[%s1234_s7 + $0xc] sm:$0xf] (%p1157_p6) }
 0x129   : > { %937 = vst [vmem:[%s1234_s7 + $0x18] sm:$0xff] %v913_v5   ;;  %941 = vst [vmem:[%s1234_s7 + $0x38] sm:$0xff] %v933_v6   ;;  %v657_v9 = vld [vmem:[%s1234_s7] sm:$0xf] (%p1157_p6)  ;;  %v659_v10 = vld [vmem:[%s1234_s7 + $0x4] sm:$0xf] (%p1157_p6) }
 0x12a   : > { %936 = vst [vmem:[%s1234_s7 + $0x10] sm:$0xff] %v908_v7   ;;  %940 = vst [vmem:[%s1234_s7 + $0x30] sm:$0xff] %v928_v8   ;;  %v673_v17 = vld [vmem:[%s1234_s7 + $0x20] sm:$0xf] (%p1157_p6)  ;;  %v675_v18 = vld [vmem:[%s1234_s7 + $0x24] sm:$0xf] (%p1157_p6) }
 0x12b   : > { %658 = vst [vmem:[%s641_s10] sm:$0xf] %v657_v9  ;;  %660 = vst [vmem:[%s641_s10 + $0x8] sm:$0xf] %v659_v10  ;;  %v677_v19 = vld [vmem:[%s1234_s7 + $0x28] sm:$0xf] }
 0x12c   : > { %662 = vst [vmem:[%s641_s10 + $0x10] sm:$0xf] %v661_v11  ;;  %664 = vst [vmem:[%s641_s10 + $0x18] sm:$0xf] %v663_v12  ;;  %v679_v20 = vld [vmem:[%s1234_s7 + $0x2c] sm:$0xf] }
 0x12d   : > { %674 = vst [vmem:[%s641_s10 + $0x40] sm:$0xf] %v673_v17  ;;  %676 = vst [vmem:[%s641_s10 + $0x48] sm:$0xf] %v675_v18 }
 0x12e   : > { %678 = vst [vmem:[%s641_s10 + $0x50] sm:$0xf] %v677_v19  ;;  %680 = vst [vmem:[%s641_s10 + $0x58] sm:$0xf] %v679_v20 }
 0x130   : > { %v669_v15 = vld [vmem:[%s1234_s7 + $0x18] sm:$0xf]  ;;  %v671_v16 = vld [vmem:[%s1234_s7 + $0x1c] sm:$0xf] }
 0x131   : > { %v665_v13 = vld [vmem:[%s1234_s7 + $0x10] sm:$0xf]  ;;  %v667_v14 = vld [vmem:[%s1234_s7 + $0x14] sm:$0xf]  ;;  %670 = vst [vmem:[%s641_s10 + $0x30] sm:$0xf] %v669_v15 }
 0x132   : > { %666 = vst [vmem:[%s641_s10 + $0x20] sm:$0xf] %v665_v13  ;;  %668 = vst [vmem:[%s641_s10 + $0x28] sm:$0xf] %v667_v14  ;;  %v681_v21 = vld [vmem:[%s1234_s7 + $0x30] sm:$0xf] }
 0x133   : > { %672 = vst [vmem:[%s641_s10 + $0x38] sm:$0xf] %v671_v16  ;;  %v683_v22 = vld [vmem:[%s1234_s7 + $0x34] sm:$0xf]  ;;  %682 = vst [vmem:[%s641_s10 + $0x60] sm:$0xf] %v681_v21 }
 0x134   : > { %684 = vst [vmem:[%s641_s10 + $0x68] sm:$0xf] %v683_v22  ;;  %v685_v23 = vld [vmem:[%s1234_s7 + $0x38] sm:$0xf]  ;;  %v687_v24 = vld [vmem:[%s1234_s7 + $0x3c] sm:$0xf] }
 0x135   : > { %686 = vst [vmem:[%s641_s10 + $0x70] sm:$0xf] %v685_v23  ;;  %688 = vst [vmem:[%s641_s10 + $0x78] sm:$0xf] %v687_v24 }
 0x136 PF: > { %s13_s16 = sadd.s32 1, %s1100_s16   ;;  %s1286_s12 = smov %s1088_s13 }
 0x137   : > { %p10_p12 = scmp.ge.s32.totalorder %s13_s16, 4   ;;  %s1287_s13 = smov %s1162_s22 }
 0x138   : > { %s1288_s14 = smov %s1096_s15  ;;  %s1289_s15 = smov %s1291_s17 }
 0x139   :  { %12 = sbr.rel (!%p10_p12) target bundleno = 3 (0x3), region = 155 }

// kernel: dino_forward.28
= control target key start
LH: loop header
LB: loop body
LE: loop exit
PB: predicated region body
PF: predicated region fallthrough
CT: control target
= control target key end

     0   :  { %s2926_s1 = inlined_call_operand.vmem [shape: bf16[1152,128], index: 1, kind: input, shape index: {}]   ;;  %s2927_s0 = inlined_call_operand.vmem [shape: bf16[128,1152], index: 0, kind: input, shape index: {}]   ;;  %s2928_s2 = inlined_call_operand.vmem [shape: f32[1,128], index: 2, kind: input, shape index: {}]   ;;  %s2929_s3 = inlined_call_operand.vmem [shape: bf16[128,128], index: 3, kind: output, shape index: {}]  }
   0x1   :  { %v2175_v0 = vld [vmem:[%s2926_s1 + $0x40] sm:$0xff]   ;;  %v2179_v4 = vld [vmem:[%s2926_s1 + $0x48] sm:$0xff]   ;;  %v2183_v8 = vld [vmem:[%s2926_s1 + $0x50] sm:$0xff]  }
   0x2   :  { %v2176_v1 = vld [vmem:[%s2926_s1 + $0xc0] sm:$0xff]   ;;  %1855 = vmatprep.subr.bf16.mxu0 %v2175_v0  ;;  %v2180_v5 = vld [vmem:[%s2926_s1 + $0xc8] sm:$0xff]   ;;  %v2184_v9 = vld [vmem:[%s2926_s1 + $0xd0] sm:$0xff]  }
   0x3   :  { %v2177_v2 = vld [vmem:[%s2926_s1] sm:$0xff]   ;;  %1919 = vmatprep.subr.bf16.mxu1 %v2176_v1  ;;  %v2181_v6 = vld [vmem:[%s2926_s1 + $0x8] sm:$0xff]   ;;  %v2185_v10 = vld [vmem:[%s2926_s1 + $0x10] sm:$0xff]  }
   0x4   :  { %v2178_v3 = vld [vmem:[%s2926_s1 + $0x80] sm:$0xff]   ;;  %1856 = vmatpush3.bf16.msra.mxu0 %v2177_v2  ;;  %v2182_v7 = vld [vmem:[%s2926_s1 + $0x88] sm:$0xff]   ;;  %v2186_v11 = vld [vmem:[%s2926_s1 + $0x90] sm:$0xff]  }
   0x5   :  { %1920 = vmatpush3.bf16.msra.mxu1 %v2178_v3  ;;  %1857 = vmatprep.subr.bf16.mxu0 %v2179_v4  ;;  %v2187_v12 = vld [vmem:[%s2926_s1 + $0x58] sm:$0xff]   ;;  %v2191_v16 = vld [vmem:[%s2926_s1 + $0x60] sm:$0xff]   ;;  %v2195_v20 = vld [vmem:[%s2926_s1 + $0x68] sm:$0xff]  }
   0x6   :  { %1921 = vmatprep.subr.bf16.mxu1 %v2180_v5  ;;  %v2188_v13 = vld [vmem:[%s2926_s1 + $0xd8] sm:$0xff]   ;;  %v2192_v17 = vld [vmem:[%s2926_s1 + $0xe0] sm:$0xff]   ;;  %v2196_v21 = vld [vmem:[%s2926_s1 + $0xe8] sm:$0xff]  }
   0x7   :  { %v2189_v14 = vld [vmem:[%s2926_s1 + $0x18] sm:$0xff]   ;;  %v2193_v18 = vld [vmem:[%s2926_s1 + $0x20] sm:$0xff]   ;;  %v2197_v22 = vld [vmem:[%s2926_s1 + $0x28] sm:$0xff]  }
   0x8   :  { %1858 = vmatpush3.bf16.msra.mxu0 %v2181_v6  ;;  %v2190_v15 = vld [vmem:[%s2926_s1 + $0x98] sm:$0xff]   ;;  %v2194_v19 = vld [vmem:[%s2926_s1 + $0xa0] sm:$0xff]   ;;  %v2198_v23 = vld [vmem:[%s2926_s1 + $0xa8] sm:$0xff]  }
   0x9   :  { %1922 = vmatpush3.bf16.msra.mxu1 %v2182_v7  ;;  %1859 = vmatprep.subr.bf16.mxu0 %v2183_v8  ;;  %v2199_v24 = vld [vmem:[%s2926_s1 + $0x70] sm:$0xff]   ;;  %v2203_v28 = vld [vmem:[%s2926_s1 + $0x78] sm:$0xff]   ;;  %v2207_v32 = vld [vmem:[%s2927_s0] ss:$36 sps:$4 sm:$0xff]  }
   0xa   :  { %1923 = vmatprep.subr.bf16.mxu1 %v2184_v9  ;;  %v2200_v25 = vld [vmem:[%s2926_s1 + $0xf0] sm:$0xff]   ;;  %v2204_v29 = vld [vmem:[%s2926_s1 + $0xf8] sm:$0xff]   ;;  %v2209_v33 = vld [vmem:[%s2927_s0 + $0x4] ss:$36 sps:$4 sm:$0xff]  }
   0xb   :  { %v2201_v26 = vld [vmem:[%s2926_s1 + $0x30] sm:$0xff]   ;;  %v2205_v30 = vld [vmem:[%s2926_s1 + $0x38] sm:$0xff]   ;;  %v2210_v34 = vld [vmem:[%s2927_s0 + $0x8] ss:$36 sps:$4 sm:$0xff]   ;;  %1078 = vmatprep.mubr.bf16.mxu0 %v2209_v33 }
   0xc   :  { %1860 = vmatpush3.bf16.msra.mxu0 %v2185_v10  ;;  %v2202_v27 = vld [vmem:[%s2926_s1 + $0xb0] sm:$0xff]   ;;  %v2206_v31 = vld [vmem:[%s2926_s1 + $0xb8] sm:$0xff]   ;;  %v2213_v36 = vld [vmem:[%s2926_s1 + $0x140] sm:$0xff]  }
   0xd   :  { %1924 = vmatpush3.bf16.msra.mxu1 %v2186_v11  ;;  %1861 = vmatprep.subr.bf16.mxu0 %v2187_v12  ;;  %v2212_v35 = vld [vmem:[%s2927_s0 + $0xc] ss:$36 sps:$4 sm:$0xff]   ;;  %v2214_v37 = vld [vmem:[%s2926_s1 + $0x1c0] sm:$0xff]   ;;  %v2219_v41 = vld [vmem:[%s2927_s0 + $0x54] ss:$36 sps:$4 sm:$0xff]  }
   0xe   :  { %1925 = vmatprep.subr.bf16.mxu1 %v2188_v13  ;;  %1175 = vmatprep.mubr.bf16.mxu1 %v2212_v35  ;;  %v2215_v38 = vld [vmem:[%s2926_s1 + $0x100] sm:$0xff]   ;;  %v2217_v40 = vld [vmem:[%s2927_s0 + $0x4c] ss:$36 sps:$4 sm:$0xff]   ;;  %v2227_v48 = vld [vmem:[%s2927_s0 + $0x94] ss:$36 sps:$4 sm:$0xff]  }
   0xf   :  { %v2216_v39 = vld [vmem:[%s2926_s1 + $0x180] sm:$0xff]   ;;  %v2221_v42 = vld [vmem:[%s2927_s0 + $0x48] ss:$36 sps:$4 sm:$0xff]   ;;  %v2222_v43 = vld [vmem:[%s2927_s0 + $0x50] ss:$36 sps:$4 sm:$0xff]  }
  0x10   :  { %1862 = vmatpush3.bf16.msra.mxu0 %v2189_v14  ;;  %v2223_v44 = vld [vmem:[%s2926_s1 + $0x148] sm:$0xff]   ;;  %v2229_v49 = vld [vmem:[%s2927_s0 + $0x9c] ss:$36 sps:$4 sm:$0xff]   ;;  %v2231_v50 = vld [vmem:[%s2927_s0 + $0x90] ss:$36 sps:$4 sm:$0xff]  }
  0x11   :  { %1926 = vmatpush3.bf16.msra.mxu1 %v2190_v15  ;;  %1863 = vmatprep.subr.bf16.mxu0 %v2191_v16  ;;  %v2224_v45 = vld [vmem:[%s2926_s1 + $0x1c8] sm:$0xff]   ;;  %v2232_v51 = vld [vmem:[%s2927_s0 + $0x98] ss:$36 sps:$4 sm:$0xff]   ;;  %v2233_v52 = vld [vmem:[%s2926_s1 + $0x150] sm:$0xff]  }
  0x12   :  { %1927 = vmatprep.subr.bf16.mxu1 %v2192_v17  ;;  %v2225_v46 = vld [vmem:[%s2926_s1 + $0x108] sm:$0xff]   ;;  %v2234_v53 = vld [vmem:[%s2926_s1 + $0x1d0] sm:$0xff]   ;;  %v2237_v56 = vld [vmem:[%s2927_s0 + $0xdc] ss:$36 sps:$4 sm:$0xff]  }
  0x13   :  { %v2226_v47 = vld [vmem:[%s2926_s1 + $0x188] sm:$0xff]   ;;  %v2235_v54 = vld [vmem:[%s2926_s1 + $0x110] sm:$0xff]   ;;  %v2241_v58 = vld [vmem:[%s2927_s0 + $0xd8] ss:$36 sps:$4 sm:$0xff]  }
  0x14   :  { %1864 = vmatpush3.bf16.msra.mxu0 %v2193_v18  ;;  %v2236_v55 = vld [vmem:[%s2926_s1 + $0x190] sm:$0xff]   ;;  %v2239_v57 = vld [vmem:[%s2927_s0 + $0xe4] ss:$36 sps:$4 sm:$0xff]   ;;  %v2243_v60 = vld [vmem:[%s2926_s1 + $0x158] sm:$0xff]  }
  0x15   :  { %1928 = vmatpush3.bf16.msra.mxu1 %v2194_v19  ;;  %1865 = vmatprep.subr.bf16.mxu0 %v2195_v20  ;;  %v2242_v59 = vld [vmem:[%s2927_s0 + $0xe0] ss:$36 sps:$4 sm:$0xff]   ;;  %v2244_v61 = vld [vmem:[%s2926_s1 + $0x1d8] sm:$0xff]   ;;  %v2249_v1 = vld [vmem:[%s2927_s0 + $0x12c] ss:$36 sps:$4 sm:$0xff]  }
  0x16   :  { %1929 = vmatprep.subr.bf16.mxu1 %v2196_v21  ;;  %v2245_v62 = vld [vmem:[%s2926_s1 + $0x118] sm:$0xff]   ;;  %v2247_v0 = vld [vmem:[%s2927_s0 + $0x124] ss:$36 sps:$4 sm:$0xff]   ;;  %v2257_v8 = vld [vmem:[%s2927_s0 + $0x16c] ss:$36 sps:$4 sm:$0xff]  }
  0x17   :  { %v2246_v63 = vld [vmem:[%s2926_s1 + $0x198] sm:$0xff]   ;;  %v2251_v2 = vld [vmem:[%s2927_s0 + $0x120] ss:$36 sps:$4 sm:$0xff]   ;;  %v2252_v4 = vld [vmem:[%s2927_s0 + $0x128] ss:$36 sps:$4 sm:$0xff]  }
  0x18   :  { %1866 = vmatpush3.bf16.msra.mxu0 %v2197_v22  ;;  %v2253_v3 = vld [vmem:[%s2926_s1 + $0x160] sm:$0xff]   ;;  %v2259_v9 = vld [vmem:[%s2927_s0 + $0x174] ss:$36 sps:$4 sm:$0xff]   ;;  %v2263_v10 = vld [vmem:[%s2926_s1 + $0x168] sm:$0xff]  }
  0x19   :  { %1930 = vmatpush3.bf16.msra.mxu1 %v2198_v23  ;;  %1867 = vmatprep.subr.bf16.mxu0 %v2199_v24  ;;  %v2254_v5 = vld [vmem:[%s2926_s1 + $0x1e0] sm:$0xff]   ;;  %v2264_v11 = vld [vmem:[%s2926_s1 + $0x1e8] sm:$0xff]   ;;  %v2262_v15 = vld [vmem:[%s2927_s0 + $0x170] ss:$36 sps:$4 sm:$0xff]  }
  0x1a   :  { %1931 = vmatprep.subr.bf16.mxu1 %v2200_v25  ;;  %v2255_v6 = vld [vmem:[%s2926_s1 + $0x120] sm:$0xff]   ;;  %v2261_v12 = vld [vmem:[%s2927_s0 + $0x168] ss:$36 sps:$4 sm:$0xff]   ;;  %v2267_v16 = vld [vmem:[%s2927_s0 + $0x1b4] ss:$36 sps:$4 sm:$0xff]  }
  0x1b   :  { %v2256_v7 = vld [vmem:[%s2926_s1 + $0x1a0] sm:$0xff]   ;;  %v2265_v13 = vld [vmem:[%s2926_s1 + $0x128] sm:$0xff]   ;;  %v2273_v18 = vld [vmem:[%s2926_s1 + $0x170] sm:$0xff]  }
  0x1c   :  { %1868 = vmatpush3.bf16.msra.mxu0 %v2201_v26  ;;  %v2266_v14 = vld [vmem:[%s2926_s1 + $0x1a8] sm:$0xff]   ;;  %v2269_v17 = vld [vmem:[%s2927_s0 + $0x1bc] ss:$36 sps:$4 sm:$0xff]   ;;  %v2274_v19 = vld [vmem:[%s2926_s1 + $0x1f0] sm:$0xff]  }
  0x1d   :  { %1932 = vmatpush3.bf16.msra.mxu1 %v2202_v27  ;;  %1869 = vmatprep.subr.bf16.mxu0 %v2203_v28  ;;  %v2275_v20 = vld [vmem:[%s2926_s1 + $0x130] sm:$0xff]   ;;  %v2272_v23 = vld [vmem:[%s2927_s0 + $0x1b8] ss:$36 sps:$4 sm:$0xff]   ;;  %v2279_v25 = vld [vmem:[%s2927_s0 + $0x204] ss:$36 sps:$4 sm:$0xff]  }
  0x1e   :  { %1933 = vmatprep.subr.bf16.mxu1 %v2204_v29  ;;  %v2276_v21 = vld [vmem:[%s2926_s1 + $0x1b0] sm:$0xff]   ;;  %v2277_v24 = vld [vmem:[%s2927_s0 + $0x1fc] ss:$36 sps:$4 sm:$0xff]  }
  0x1f   :  { %v2271_v22 = vld [vmem:[%s2927_s0 + $0x1b0] ss:$36 sps:$4 sm:$0xff]   ;;  %v2283_v26 = vld [vmem:[%s2926_s1 + $0x178] sm:$0xff]  }
  0x20   :  { %1870 = vmatpush3.bf16.msra.mxu0 %v2205_v30  ;;  %v2284_v27 = vld [vmem:[%s2926_s1 + $0x1f8] sm:$0xff]   ;;  %v2287_v35 = vld [vmem:[%s2927_s0 + $0x10] ss:$36 sps:$4 sm:$0xff]  }
  0x21   :  { %1934 = vmatpush3.bf16.msra.mxu1 %v2206_v31  ;;  %1983 = vmatprep.subr.bf16.mxu0 %v2213_v36  ;;  %v2285_v28 = vld [vmem:[%s2926_s1 + $0x138] sm:$0xff]   ;;  %v2282_v31 = vld [vmem:[%s2927_s0 + $0x200] ss:$36 sps:$4 sm:$0xff]  }
  0x22   :  { %2047 = vmatprep.subr.bf16.mxu1 %v2214_v37  ;;  %v2286_v29 = vld [vmem:[%s2926_s1 + $0x1b8] sm:$0xff]  }
  0x23   :  { %1079 = vmatmul.mubr.bf16.vlgmr.msra.gmra.mrb[0].mxu0 %v2207_v32  ;;  %v2281_v30 = vld [vmem:[%s2927_s0 + $0x1f8] ss:$36 sps:$4 sm:$0xff]   ;;  %v2293_v32 = vld [vmem:[%s2926_s1 + $0x200] sm:$0xff]  }
  0x24   :  { %1176 = vmatmul.mubr.bf16.vlgmr.msra.gmra.mrb[0].mxu1 %v2210_v34  ;;  %1984 = vmatpush3.bf16.msra.mxu0 %v2215_v38  ;;  %v2289_v33 = vld [vmem:[%s2927_s0 + $0x14] ss:$36 sps:$4 sm:$0xff]   ;;  %v2292_v34 = vld [vmem:[%s2927_s0 + $0x1c] ss:$36 sps:$4 sm:$0xff]   ;;  %v2296_v38 = vld [vmem:[%s2927_s0 + $0x64] ss:$36 sps:$4 sm:$0xff]  }
  0x25   :  { %2048 = vmatpush3.bf16.msra.mxu1 %v2216_v39  ;;  %1086 = vmatprep.mubr.bf16.mxu0 %v2217_v40  ;;  %v2290_v36 = vld [vmem:[%s2927_s0 + $0x18] ss:$36 sps:$4 sm:$0xff]   ;;  %v2300_v39 = vld [vmem:[%s2926_s1 + $0x208] sm:$0xff]   ;;  %v2307_v40 = vld [vmem:[%s2926_s1 + $0x210] sm:$0xff]  }
  0x26   :  { %1183 = vmatprep.mubr.bf16.mxu1 %v2219_v41  ;;  %1985 = vmatprep.subr.bf16.mxu0 %v2223_v44  ;;  %v2294_v37 = vld [vmem:[%s2927_s0 + $0x5c] ss:$36 sps:$4 sm:$0xff]   ;;  %v2303_v44 = vld [vmem:[%s2927_s0 + $0xac] ss:$36 sps:$4 sm:$0xff]  }
  0x27   :  { %2049 = vmatprep.subr.bf16.mxu1 %v2224_v45  ;;  %v2298_v41 = vld [vmem:[%s2927_s0 + $0x58] ss:$36 sps:$4 sm:$0xff]  }
  0x28   :  { %1986 = vmatpush3.bf16.msra.mxu0 %v2225_v46  ;;  %v2314_v45 = vld [vmem:[%s2926_s1 + $0x218] sm:$0xff]   ;;  %v2321_v46 = vld [vmem:[%s2926_s1 + $0x220] sm:$0xff]  }
  0x29   :  { %2050 = vmatpush3.bf16.msra.mxu1 %v2226_v47  ;;  %1987 = vmatprep.subr.bf16.mxu0 %v2233_v52  ;;  %v2305_v47 = vld [vmem:[%s2927_s0 + $0xa0] ss:$36 sps:$4 sm:$0xff]   ;;  %v2312_v52 = vld [vmem:[%s2927_s0 + $0xe8] ss:$36 sps:$4 sm:$0xff]  }
  0x2a   :  { %2051 = vmatprep.subr.bf16.mxu1 %v2234_v53  ;;  %v2335_v53 = vld [vmem:[%s2926_s1 + $0x230] sm:$0xff]  }
  0x2b   :  { %1087 = vmatmul.mubr.bf16.gmra.mrb[4].mxu0 %v2221_v42  ;;  %v2299_v42 = vld [vmem:[%s2927_s0 + $0x60] ss:$36 sps:$4 sm:$0xff]  }
  0x2c   :  { %1184 = vmatmul.mubr.bf16.gmra.mrb[4].mxu1 %v2222_v43  ;;  %1094 = vmatprep.mubr.bf16.mxu0 %v2227_v48  ;;  %v2301_v43 = vld [vmem:[%s2927_s0 + $0xa4] ss:$36 sps:$4 sm:$0xff]  }
  0x2d   :  { %1191 = vmatprep.mubr.bf16.mxu1 %v2229_v49  ;;  %1988 = vmatpush3.bf16.msra.mxu0 %v2235_v54  ;;  %v2306_v48 = vld [vmem:[%s2927_s0 + $0xa8] ss:$36 sps:$4 sm:$0xff]   ;;  %v2313_v54 = vld [vmem:[%s2927_s0 + $0xf0] ss:$36 sps:$4 sm:$0xff]  }
  0x2e   :  { %2052 = vmatpush3.bf16.msra.mxu1 %v2236_v55  ;;  %1989 = vmatprep.subr.bf16.mxu0 %v2243_v60  ;;  %v2308_v49 = vld [vmem:[%s2927_s0 + $0xec] ss:$36 sps:$4 sm:$0xff]   ;;  %v2315_v55 = vld [vmem:[%s2927_s0 + $0x134] ss:$36 sps:$4 sm:$0xff]   ;;  %v2322_v60 = vld [vmem:[%s2927_s0 + $0x17c] ss:$36 sps:$4 sm:$0xff]  }
  0x2f   :  { %2053 = vmatprep.subr.bf16.mxu1 %v2244_v61  ;;  %v2324_v61 = vld [vmem:[%s2927_s0 + $0x184] ss:$36 sps:$4 sm:$0xff]  }
  0x31   :  { %1990 = vmatpush3.bf16.msra.mxu0 %v2245_v62  ;;  %v2326_v62 = vld [vmem:[%s2927_s0 + $0x178] ss:$36 sps:$4 sm:$0xff]  }
  0x32   :  { %2054 = vmatpush3.bf16.msra.mxu1 %v2246_v63  ;;  %1991 = vmatprep.subr.bf16.mxu0 %v2253_v3  ;;  %v2327_v63 = vld [vmem:[%s2927_s0 + $0x180] ss:$36 sps:$4 sm:$0xff]   ;;  %v2334_v3 = vld [vmem:[%s2927_s0 + $0x1c8] ss:$36 sps:$4 sm:$0xff]  }
  0x33   :  { %1095 = vmatmul.mubr.bf16.gmra.mrb[8].mxu0 %v2231_v50  ;;  %2055 = vmatprep.subr.bf16.mxu1 %v2254_v5  ;;  %v2310_v50 = vld [vmem:[%s2927_s0 + $0xf4] ss:$36 sps:$4 sm:$0xff]  }
  0x34   :  { %1192 = vmatmul.mubr.bf16.gmra.mrb[8].mxu1 %v2232_v51  ;;  %1102 = vmatprep.mubr.bf16.mxu0 %v2237_v56  ;;  %v2328_v51 = vld [vmem:[%s2926_s1 + $0x228] sm:$0xff]   ;;  %v2317_v56 = vld [vmem:[%s2927_s0 + $0x13c] ss:$36 sps:$4 sm:$0xff]   ;;  %v2338_v5 = vld [vmem:[%s2927_s0 + $0x214] ss:$36 sps:$4 sm:$0xff]  }
  0x35   :  { %1199 = vmatprep.mubr.bf16.mxu1 %v2239_v57  ;;  %1992 = vmatpush3.bf16.msra.mxu0 %v2255_v6  ;;  %v2342_v57 = vld [vmem:[%s2926_s1 + $0x238] sm:$0xff]   ;;  %v2340_v6 = vld [vmem:[%s2927_s0 + $0x208] ss:$36 sps:$4 sm:$0xff]  }
  0x36   :  { %2056 = vmatpush3.bf16.msra.mxu1 %v2256_v7  ;;  %1993 = vmatprep.subr.bf16.mxu0 %v2263_v10  ;;  %v2341_v7 = vld [vmem:[%s2927_s0 + $0x210] ss:$36 sps:$4 sm:$0xff]   ;;  %v2345_v10 = vld [vmem:[%s2927_s0 + $0x68] ss:$36 sps:$4 sm:$0xff]  }
  0x37   :  { %2057 = vmatprep.subr.bf16.mxu1 %v2264_v11  ;;  %v2346_v11 = vld [vmem:[%s2927_s0 + $0x188] ss:$36 sps:$4 sm:$0xff]  }
  0x39   :  { %1994 = vmatpush3.bf16.msra.mxu0 %v2265_v13  ;;  %v2348_v13 = vld [vmem:[%s2927_s0 + $0x1d0] ss:$36 sps:$4 sm:$0xff]  }
  0x3a   :  { %2058 = vmatpush3.bf16.msra.mxu1 %v2266_v14  ;;  %1995 = vmatprep.subr.bf16.mxu0 %v2273_v18  ;;  %v2349_v14 = vld [vmem:[%s2927_s0 + $0xf8] ss:$36 sps:$4 sm:$0xff]   ;;  %v2806_v18 = vld [vmem:[%s2928_s2] ss:$0 sm:$0xff] }
  0x3b   :  { %1103 = vmatmul.mubr.bf16.gmra.mrb[12].mxu0 %v2241_v58  ;;  %2059 = vmatprep.subr.bf16.mxu1 %v2274_v19  ;;  %v2319_v58 = vld [vmem:[%s2927_s0 + $0x130] ss:$36 sps:$4 sm:$0xff]  }
  0x3c   :  { %1200 = vmatmul.mubr.bf16.gmra.mrb[12].mxu1 %v2242_v59  ;;  %1110 = vmatprep.mubr.bf16.mxu0 %v2247_v0  ;;  %v2320_v59 = vld [vmem:[%s2927_s0 + $0x138] ss:$36 sps:$4 sm:$0xff]   ;;  %v2329_v0 = vld [vmem:[%s2927_s0 + $0x1c4] ss:$36 sps:$4 sm:$0xff]  }
  0x3d   :  { %1207 = vmatprep.mubr.bf16.mxu1 %v2249_v1  ;;  %1996 = vmatpush3.bf16.msra.mxu0 %v2275_v20  ;;  %v2331_v1 = vld [vmem:[%s2927_s0 + $0x1cc] ss:$36 sps:$4 sm:$0xff]  }
  0x3e   :  { %2060 = vmatpush3.bf16.msra.mxu1 %v2276_v21  ;;  %1997 = vmatprep.subr.bf16.mxu0 %v2283_v26 }
  0x3f   :  { %2061 = vmatprep.subr.bf16.mxu1 %v2284_v27 }
  0x41   :  { %1998 = vmatpush3.bf16.msra.mxu0 %v2285_v28 }
  0x42   :  { %2062 = vmatpush3.bf16.msra.mxu1 %v2286_v29  ;;  %2127 = vmatprep.subr.bf16.mxu0 %v2293_v32 }
  0x43   :  { %1111 = vmatmul.mubr.bf16.gmra.mrb[16].mxu0 %v2251_v2  ;;  %2159 = vmatprep.subr.bf16.mxu1 %v2293_v32  ;;  %v2333_v2 = vld [vmem:[%s2927_s0 + $0x1c0] ss:$36 sps:$4 sm:$0xff]  }
  0x44   :  { %1208 = vmatmul.mubr.bf16.gmra.mrb[16].mxu1 %v2252_v4  ;;  %1118 = vmatprep.mubr.bf16.mxu0 %v2257_v8  ;;  %v2336_v4 = vld [vmem:[%s2927_s0 + $0x20c] ss:$36 sps:$4 sm:$0xff]   ;;  %v2343_v8 = vld [vmem:[%s2927_s0 + $0x20] ss:$36 sps:$4 sm:$0xff]  }
  0x45   :  { %1215 = vmatprep.mubr.bf16.mxu1 %v2259_v9  ;;  %v2344_v9 = vld [vmem:[%s2927_s0 + $0x140] ss:$36 sps:$4 sm:$0xff]  }
  0x4b   :  { %1119 = vmatmul.mubr.bf16.gmra.mrb[20].mxu0 %v2261_v12  ;;  %v2347_v12 = vld [vmem:[%s2927_s0 + $0xb0] ss:$36 sps:$4 sm:$0xff]  }
  0x4c   :  { %1216 = vmatmul.mubr.bf16.gmra.mrb[20].mxu1 %v2262_v15  ;;  %1126 = vmatprep.mubr.bf16.mxu0 %v2267_v16  ;;  %v2350_v15 = vld [vmem:[%s2927_s0 + $0x218] ss:$36 sps:$4 sm:$0xff]  }
  0x4d   :  { %1223 = vmatprep.mubr.bf16.mxu1 %v2269_v17 }
  0x53   :  { %1127 = vmatmul.mubr.bf16.gmra.mrb[24].mxu0 %v2271_v22 }
  0x54   :  { %1224 = vmatmul.mubr.bf16.gmra.mrb[24].mxu1 %v2272_v23  ;;  %1134 = vmatprep.mubr.bf16.mxu0 %v2277_v24 }
  0x55   :  { %1231 = vmatprep.mubr.bf16.mxu1 %v2279_v25 }
  0x5b   :  { %1135 = vmatmul.mubr.bf16.gmra.mrb[28].mxu0 %v2281_v30 }
  0x5c   :  { %1232 = vmatmul.mubr.bf16.gmra.mrb[28].mxu1 %v2282_v31  ;;  %1272 = vmatprep.mubr.bf16.mxu0 %v2289_v33 }
  0x5d   :  { %1369 = vmatprep.mubr.bf16.mxu1 %v2292_v34 }
  0x63   :  { %1273 = vmatmul.mubr.bf16.vlgmr.msra.gmra.mrb[32].mxu0 %v2287_v35 }
  0x64   :  { %1370 = vmatmul.mubr.bf16.vlgmr.msra.gmra.mrb[32].mxu1 %v2290_v36  ;;  %2128 = vmatpush3.bf16.msra.mxu0 %v2293_v32 }
  0x65   :  { %2167 = vmatpush3.bf16.msra.mxu1 %v2293_v32  ;;  %1280 = vmatprep.mubr.bf16.mxu0 %v2294_v37 }
  0x66   :  { %1377 = vmatprep.mubr.bf16.mxu1 %v2296_v38  ;;  %2129 = vmatprep.subr.bf16.mxu0 %v2300_v39 }
  0x67   :  { %2160 = vmatprep.subr.bf16.mxu1 %v2300_v39 }
  0x68   :  { %2130 = vmatpush3.bf16.msra.mxu0 %v2300_v39 }
  0x69   :  { %2168 = vmatpush3.bf16.msra.mxu1 %v2300_v39  ;;  %2131 = vmatprep.subr.bf16.mxu0 %v2307_v40 }
  0x6a   :  { %2161 = vmatprep.subr.bf16.mxu1 %v2307_v40 }
  0x6b   :  { %1281 = vmatmul.mubr.bf16.gmra.mrb[36].mxu0 %v2298_v41 }
  0x6c   :  { %1378 = vmatmul.mubr.bf16.gmra.mrb[36].mxu1 %v2299_v42  ;;  %1288 = vmatprep.mubr.bf16.mxu0 %v2301_v43 }
  0x6d   :  { %1385 = vmatprep.mubr.bf16.mxu1 %v2303_v44  ;;  %2132 = vmatpush3.bf16.msra.mxu0 %v2307_v40 }
  0x6e   :  { %2169 = vmatpush3.bf16.msra.mxu1 %v2307_v40  ;;  %2133 = vmatprep.subr.bf16.mxu0 %v2314_v45 }
  0x6f   :  { %2162 = vmatprep.subr.bf16.mxu1 %v2314_v45 }
  0x71   :  { %2134 = vmatpush3.bf16.msra.mxu0 %v2314_v45 }
  0x72   :  { %2170 = vmatpush3.bf16.msra.mxu1 %v2314_v45  ;;  %2135 = vmatprep.subr.bf16.mxu0 %v2321_v46 }
  0x73   :  { %1289 = vmatmul.mubr.bf16.gmra.mrb[40].mxu0 %v2305_v47  ;;  %2163 = vmatprep.subr.bf16.mxu1 %v2321_v46 }
  0x74   :  { %1386 = vmatmul.mubr.bf16.gmra.mrb[40].mxu1 %v2306_v48  ;;  %1296 = vmatprep.mubr.bf16.mxu0 %v2308_v49 }
  0x75   :  { %1393 = vmatprep.mubr.bf16.mxu1 %v2310_v50  ;;  %2136 = vmatpush3.bf16.msra.mxu0 %v2321_v46 }
  0x76   :  { %2171 = vmatpush3.bf16.msra.mxu1 %v2321_v46  ;;  %2137 = vmatprep.subr.bf16.mxu0 %v2328_v51 }
  0x77   :  { %2164 = vmatprep.subr.bf16.mxu1 %v2328_v51 }
  0x79   :  { %2138 = vmatpush3.bf16.msra.mxu0 %v2328_v51 }
  0x7a   :  { %2172 = vmatpush3.bf16.msra.mxu1 %v2328_v51  ;;  %2139 = vmatprep.subr.bf16.mxu0 %v2335_v53 }
  0x7b   :  { %1297 = vmatmul.mubr.bf16.gmra.mrb[44].mxu0 %v2312_v52  ;;  %2165 = vmatprep.subr.bf16.mxu1 %v2335_v53 }
  0x7c   :  { %1394 = vmatmul.mubr.bf16.gmra.mrb[44].mxu1 %v2313_v54  ;;  %1304 = vmatprep.mubr.bf16.mxu0 %v2315_v55 }
  0x7d   :  { %1401 = vmatprep.mubr.bf16.mxu1 %v2317_v56  ;;  %2140 = vmatpush3.bf16.msra.mxu0 %v2335_v53 }
  0x7e   :  { %2173 = vmatpush3.bf16.msra.mxu1 %v2335_v53  ;;  %2141 = vmatprep.subr.bf16.mxu0 %v2342_v57 }
  0x7f   :  { %2166 = vmatprep.subr.bf16.mxu1 %v2342_v57 }
  0x81   :  { %2142 = vmatpush3.bf16.msra.mxu0 %v2342_v57 }
  0x82   :  { %2174 = vmatpush3.bf16.msra.mxu1 %v2342_v57 }
  0x83   :  { %1305 = vmatmul.mubr.bf16.gmra.mrb[48].mxu0 %v2319_v58 }
  0x84   :  { %1402 = vmatmul.mubr.bf16.gmra.mrb[48].mxu1 %v2320_v59  ;;  %1312 = vmatprep.mubr.bf16.mxu0 %v2322_v60 }
  0x85   :  { %1409 = vmatprep.mubr.bf16.mxu1 %v2324_v61 }
  0x8b   :  { %1313 = vmatmul.mubr.bf16.gmra.mrb[52].mxu0 %v2326_v62 }
  0x8c   :  { %1410 = vmatmul.mubr.bf16.gmra.mrb[52].mxu1 %v2327_v63  ;;  %1320 = vmatprep.mubr.bf16.mxu0 %v2329_v0 }
  0x8d   :  { %1417 = vmatprep.mubr.bf16.mxu1 %v2331_v1 }
  0x93   :  { %1321 = vmatmul.mubr.bf16.gmra.mrb[56].mxu0 %v2333_v2 }
  0x94   :  { %1418 = vmatmul.mubr.bf16.gmra.mrb[56].mxu1 %v2334_v3  ;;  %1328 = vmatprep.mubr.bf16.mxu0 %v2336_v4 }
  0x95   :  { %1425 = vmatprep.mubr.bf16.mxu1 %v2338_v5 }
  0x9b   :  { %1329 = vmatmul.mubr.bf16.gmra.mrb[60].mxu0 %v2340_v6 }
  0x9c   :  { %1426 = vmatmul.mubr.bf16.gmra.mrb[60].mxu1 %v2341_v7  ;;  %2143 = vmatprep.mubr.bf16.mxu0 %v2343_v8 }
  0x9d   :  { %2151 = vmatprep.mubr.bf16.mxu1 %v2344_v9 }
  0xa3   :  { %2144 = vmatmul.mubr.bf16.vlgmr.msra.gmra.mrb[64].mxu0 %v2345_v10 }
  0xa4   :  { %2152 = vmatmul.mubr.bf16.vlgmr.msra.gmra.mrb[64].mxu1 %v2346_v11  ;;  %2147 = vmatprep.mubr.bf16.mxu0 %v2347_v12 }
  0xa5   :  { %2155 = vmatprep.mubr.bf16.mxu1 %v2348_v13 }
  0xab   :  { %2148 = vmatmul.mubr.bf16.gmra.mrb[68].mxu0 %v2349_v14 }
  0xac   :  { %2156 = vmatmul.mubr.bf16.gmra.mrb[68].mxu1 %v2350_v15 }
  0xf6   :  { %v1871_v16 = vpop.f32.mrb[0].mxu0 }
  0xf7   :  { %v1935_v17 = vpop.f32.mrb[0].mxu1  ;;  %v1872_v19 = vpop.f32.mrb[1].mxu0 }
  0xf8   :  { %v1873_v20 = vadd.f32 %v1872_v19, %v1871_v16  ;;  %v1936_v21 = vpop.f32.mrb[1].mxu1  ;;  %v1874_v22 = vpop.f32.mrb[2].mxu0 }
  0xf9   :  { %v1937_v23 = vadd.f32 %v1936_v21, %v1935_v17  ;;  %v1938_v24 = vpop.f32.mrb[2].mxu1  ;;  %v1875_v25 = vpop.f32.mrb[3].mxu0 }
  0xfa   :  { %v1081_v26 = vadd.f32 %v1873_v20, %v2806_v18  ;;  %v1876_v27 = vadd.f32 %v1875_v25, %v1874_v22  ;;  %v1939_v28 = vpop.f32.mrb[3].mxu1 }
  0xfb   :  { %v1940_v29 = vadd.f32 %v1939_v28, %v1938_v24 }
  0xfc   :  { %v2809_v30 = vadd.f32 %v1937_v23, %v1081_v26  ;;  %v1084_v31 = vadd.f32 %v1876_v27, %v2806_v18 }
  0xfe   :  { %v2812_v32 = vadd.f32 %v1940_v29, %v1084_v31  ;;  %v1877_v33 = vpop.f32.mrb[4].mxu0 }
  0xff   :  { %v1941_v34 = vpop.f32.mrb[4].mxu1  ;;  %v1878_v35 = vpop.f32.mrb[5].mxu0 }
 0x100   :  { %v1879_v36 = vadd.f32 %v1878_v35, %v1877_v33  ;;  %v1942_v37 = vpop.f32.mrb[5].mxu1  ;;  %v1880_v38 = vpop.f32.mrb[6].mxu0 }
 0x101   :  { %v1943_v39 = vadd.f32 %v1942_v37, %v1941_v34  ;;  %v1944_v40 = vpop.f32.mrb[6].mxu1  ;;  %v1881_v41 = vpop.f32.mrb[7].mxu0 }
 0x102   :  { %v1089_v42 = vadd.f32 %v1879_v36, %v2806_v18  ;;  %v1882_v43 = vadd.f32 %v1881_v41, %v1880_v38  ;;  %v1945_v44 = vpop.f32.mrb[7].mxu1 }
 0x103   :  { %v1946_v45 = vadd.f32 %v1945_v44, %v1944_v40 }
 0x104   :  { %v2815_v46 = vadd.f32 %v1943_v39, %v1089_v42  ;;  %v1092_v47 = vadd.f32 %v1882_v43, %v2806_v18 }
 0x106   :  { %v2818_v48 = vadd.f32 %v1946_v45, %v1092_v47  ;;  %v1883_v49 = vpop.f32.mrb[8].mxu0 }
 0x107   :  { %v1947_v50 = vpop.f32.mrb[8].mxu1  ;;  %v1884_v51 = vpop.f32.mrb[9].mxu0 }
 0x108   :  { %v1885_v52 = vadd.f32 %v1884_v51, %v1883_v49  ;;  %v1948_v53 = vpop.f32.mrb[9].mxu1  ;;  %v1886_v54 = vpop.f32.mrb[10].mxu0 }
 0x109   :  { %v1949_v55 = vadd.f32 %v1948_v53, %v1947_v50  ;;  %v1950_v56 = vpop.f32.mrb[10].mxu1  ;;  %v1887_v57 = vpop.f32.mrb[11].mxu0 }
 0x10a   :  { %v1097_v58 = vadd.f32 %v1885_v52, %v2806_v18  ;;  %v1888_v59 = vadd.f32 %v1887_v57, %v1886_v54  ;;  %v1951_v60 = vpop.f32.mrb[11].mxu1 }
 0x10b   :  { %v1952_v61 = vadd.f32 %v1951_v60, %v1950_v56 }
 0x10c   :  { %v2821_v62 = vadd.f32 %v1949_v55, %v1097_v58  ;;  %v1100_v63 = vadd.f32 %v1888_v59, %v2806_v18 }
 0x10e   :  { %v2824_v0 = vadd.f32 %v1952_v61, %v1100_v63  ;;  %v1889_v1 = vpop.f32.mrb[12].mxu0 }
 0x10f   :  { %v1953_v2 = vpop.f32.mrb[12].mxu1  ;;  %v1890_v3 = vpop.f32.mrb[13].mxu0 }
 0x110   :  { %v1891_v4 = vadd.f32 %v1890_v3, %v1889_v1  ;;  %v1954_v5 = vpop.f32.mrb[13].mxu1  ;;  %v1892_v6 = vpop.f32.mrb[14].mxu0 }
 0x111   :  { %v1955_v7 = vadd.f32 %v1954_v5, %v1953_v2  ;;  %v1956_v8 = vpop.f32.mrb[14].mxu1  ;;  %v1893_v9 = vpop.f32.mrb[15].mxu0 }
 0x112   :  { %v1105_v10 = vadd.f32 %v1891_v4, %v2806_v18  ;;  %v1894_v11 = vadd.f32 %v1893_v9, %v1892_v6  ;;  %v1957_v12 = vpop.f32.mrb[15].mxu1 }
 0x113   :  { %v1958_v13 = vadd.f32 %v1957_v12, %v1956_v8 }
 0x114   :  { %v2827_v14 = vadd.f32 %v1955_v7, %v1105_v10  ;;  %v1108_v15 = vadd.f32 %v1894_v11, %v2806_v18 }
 0x116   :  { %v2830_v16 = vadd.f32 %v1958_v13, %v1108_v15  ;;  %v1895_v17 = vpop.f32.mrb[16].mxu0 }
 0x117   :  { %v1959_v19 = vpop.f32.mrb[16].mxu1  ;;  %v1896_v20 = vpop.f32.mrb[17].mxu0 }
 0x118   :  { %v1897_v21 = vadd.f32 %v1896_v20, %v1895_v17  ;;  %v1960_v22 = vpop.f32.mrb[17].mxu1  ;;  %v1898_v23 = vpop.f32.mrb[18].mxu0 }
 0x119   :  { %v1961_v24 = vadd.f32 %v1960_v22, %v1959_v19  ;;  %v1962_v25 = vpop.f32.mrb[18].mxu1  ;;  %v1899_v26 = vpop.f32.mrb[19].mxu0 }
 0x11a   :  { %v1113_v27 = vadd.f32 %v1897_v21, %v2806_v18  ;;  %v1900_v28 = vadd.f32 %v1899_v26, %v1898_v23  ;;  %v1963_v29 = vpop.f32.mrb[19].mxu1 }
 0x11b   :  { %v1964_v31 = vadd.f32 %v1963_v29, %v1962_v25 }
 0x11c   :  { %v2833_v33 = vadd.f32 %v1961_v24, %v1113_v27  ;;  %v1116_v34 = vadd.f32 %v1900_v28, %v2806_v18 }
 0x11e   :  { %v2836_v35 = vadd.f32 %v1964_v31, %v1116_v34  ;;  %v1901_v36 = vpop.f32.mrb[20].mxu0 }
 0x11f   :  { %v1965_v37 = vpop.f32.mrb[20].mxu1  ;;  %v1902_v38 = vpop.f32.mrb[21].mxu0 }
 0x120   :  { %v1903_v39 = vadd.f32 %v1902_v38, %v1901_v36  ;;  %v1966_v40 = vpop.f32.mrb[21].mxu1  ;;  %v1904_v41 = vpop.f32.mrb[22].mxu0 }
 0x121   :  { %v1967_v42 = vadd.f32 %v1966_v40, %v1965_v37  ;;  %v1968_v43 = vpop.f32.mrb[22].mxu1  ;;  %v1905_v44 = vpop.f32.mrb[23].mxu0 }
 0x122   :  { %v1121_v45 = vadd.f32 %v1903_v39, %v2806_v18  ;;  %v1906_v47 = vadd.f32 %v1905_v44, %v1904_v41  ;;  %v1969_v49 = vpop.f32.mrb[23].mxu1 }
 0x123   :  { %v1970_v50 = vadd.f32 %v1969_v49, %v1968_v43 }
 0x124   :  { %v2839_v51 = vadd.f32 %v1967_v42, %v1121_v45  ;;  %v1124_v52 = vadd.f32 %v1906_v47, %v2806_v18 }
 0x126   :  { %v2842_v53 = vadd.f32 %v1970_v50, %v1124_v52  ;;  %v1907_v54 = vpop.f32.mrb[24].mxu0 }
 0x127   :  { %v1971_v55 = vpop.f32.mrb[24].mxu1  ;;  %v1908_v56 = vpop.f32.mrb[25].mxu0 }
 0x128   :  { %v1909_v57 = vadd.f32 %v1908_v56, %v1907_v54  ;;  %v1972_v58 = vpop.f32.mrb[25].mxu1  ;;  %v1910_v59 = vpop.f32.mrb[26].mxu0 }
 0x129   :  { %v1973_v60 = vadd.f32 %v1972_v58, %v1971_v55  ;;  %v1974_v61 = vpop.f32.mrb[26].mxu1  ;;  %v1911_v63 = vpop.f32.mrb[27].mxu0 }
 0x12a   :  { %v1129_v1 = vadd.f32 %v1909_v57, %v2806_v18  ;;  %v1912_v2 = vadd.f32 %v1911_v63, %v1910_v59  ;;  %v1975_v3 = vpop.f32.mrb[27].mxu1 }
 0x12b   :  { %v1976_v4 = vadd.f32 %v1975_v3, %v1974_v61 }
 0x12c   :  { %v2845_v5 = vadd.f32 %v1973_v60, %v1129_v1  ;;  %v1132_v6 = vadd.f32 %v1912_v2, %v2806_v18 }
 0x12e   :  { %v2848_v7 = vadd.f32 %v1976_v4, %v1132_v6  ;;  %v1913_v8 = vpop.f32.mrb[28].mxu0 }
 0x12f   :  { %v1977_v9 = vpop.f32.mrb[28].mxu1  ;;  %v1914_v10 = vpop.f32.mrb[29].mxu0 }
 0x130   :  { %v1915_v11 = vadd.f32 %v1914_v10, %v1913_v8  ;;  %v1978_v12 = vpop.f32.mrb[29].mxu1  ;;  %v1916_v13 = vpop.f32.mrb[30].mxu0 }
 0x131   :  { %v1979_v15 = vadd.f32 %v1978_v12, %v1977_v9  ;;  %v1980_v17 = vpop.f32.mrb[30].mxu1  ;;  %v1917_v19 = vpop.f32.mrb[31].mxu0 }
 0x132   :  { %v1137_v20 = vadd.f32 %v1915_v11, %v2806_v18  ;;  %v1918_v21 = vadd.f32 %v1917_v19, %v1916_v13  ;;  %v1981_v22 = vpop.f32.mrb[31].mxu1 }
 0x133   :  { %v1982_v23 = vadd.f32 %v1981_v22, %v1980_v17 }
 0x134   :  { %v2851_v24 = vadd.f32 %v1979_v15, %v1137_v20  ;;  %v1140_v25 = vadd.f32 %v1918_v21, %v2806_v18 }
 0x136   :  { %v2854_v26 = vadd.f32 %v1982_v23, %v1140_v25  ;;  %v1999_v27 = vpop.f32.mrb[32].mxu0 }
 0x137   :  { %v2063_v28 = vpop.f32.mrb[32].mxu1  ;;  %v2000_v29 = vpop.f32.mrb[33].mxu0 }
 0x138   :  { %v2001_v31 = vadd.f32 %v2000_v29, %v1999_v27  ;;  %v2064_v34 = vpop.f32.mrb[33].mxu1  ;;  %v2002_v36 = vpop.f32.mrb[34].mxu0 }
 0x139   :  { %v2065_v37 = vadd.f32 %v2064_v34, %v2063_v28  ;;  %v2066_v38 = vpop.f32.mrb[34].mxu1  ;;  %v2003_v39 = vpop.f32.mrb[35].mxu0 }
 0x13a   :  { %v1275_v40 = vadd.f32 %v2001_v31, %v2809_v30  ;;  %v2004_v41 = vadd.f32 %v2003_v39, %v2002_v36  ;;  %v2067_v42 = vpop.f32.mrb[35].mxu1 }
 0x13b   :  { %v2068_v43 = vadd.f32 %v2067_v42, %v2066_v38 }
 0x13c   :  { %v1278_v44 = vadd.f32 %v2004_v41, %v2812_v32  ;;  %v2858_v45 = vadd.f32 %v2065_v37, %v1275_v40 }
 0x13e   :  { %v2005_v18 = vpop.f32.mrb[36].mxu0  ;;  %v2860_v47 = vadd.f32 %v2068_v43, %v1278_v44 }
 0x13f   :  { %v2069_v49 = vpop.f32.mrb[36].mxu1  ;;  %v2006_v50 = vpop.f32.mrb[37].mxu0 }
 0x140   :  { %v2007_v52 = vadd.f32 %v2006_v50, %v2005_v18  ;;  %v2070_v54 = vpop.f32.mrb[37].mxu1  ;;  %v2008_v55 = vpop.f32.mrb[38].mxu0 }
 0x141   :  { %v2071_v56 = vadd.f32 %v2070_v54, %v2069_v49  ;;  %v2072_v57 = vpop.f32.mrb[38].mxu1  ;;  %v2009_v58 = vpop.f32.mrb[39].mxu0 }
 0x142   :  { %v1283_v30 = vadd.f32 %v2007_v52, %v2815_v46  ;;  %v2010_v59 = vadd.f32 %v2009_v58, %v2008_v55  ;;  %v2073_v60 = vpop.f32.mrb[39].mxu1 }
 0x143   :  { %v2074_v61 = vadd.f32 %v2073_v60, %v2072_v57 }
 0x144   :  { %v1286_v32 = vadd.f32 %v2010_v59, %v2818_v48  ;;  %v2864_v63 = vadd.f32 %v2071_v56, %v1283_v30 }
 0x146   :  { %v2011_v1 = vpop.f32.mrb[40].mxu0  ;;  %v2866_v2 = vadd.f32 %v2074_v61, %v1286_v32 }
 0x147   :  { %v2075_v3 = vpop.f32.mrb[40].mxu1  ;;  %v2012_v4 = vpop.f32.mrb[41].mxu0 }
 0x148   :  { %v2013_v6 = vadd.f32 %v2012_v4, %v2011_v1  ;;  %v2076_v8 = vpop.f32.mrb[41].mxu1  ;;  %v2014_v9 = vpop.f32.mrb[42].mxu0 }
 0x149   :  { %v2077_v10 = vadd.f32 %v2076_v8, %v2075_v3  ;;  %v2078_v11 = vpop.f32.mrb[42].mxu1  ;;  %v2015_v12 = vpop.f32.mrb[43].mxu0 }
 0x14a   :  { %v1291_v46 = vadd.f32 %v2013_v6, %v2821_v62  ;;  %v2016_v13 = vadd.f32 %v2015_v12, %v2014_v9  ;;  %v2079_v15 = vpop.f32.mrb[43].mxu1 }
 0x14b   :  { %v2080_v17 = vadd.f32 %v2079_v15, %v2078_v11 }
 0x14c   :  { %v1294_v48 = vadd.f32 %v2016_v13, %v2824_v0  ;;  %v2870_v19 = vadd.f32 %v2077_v10, %v1291_v46 }
 0x14e   :  { %v2017_v20 = vpop.f32.mrb[44].mxu0  ;;  %v2872_v21 = vadd.f32 %v2080_v17, %v1294_v48 }
 0x14f   :  { %v2081_v22 = vpop.f32.mrb[44].mxu1  ;;  %v2018_v23 = vpop.f32.mrb[45].mxu0 }
 0x150   :  { %v2019_v25 = vadd.f32 %v2018_v23, %v2017_v20  ;;  %v2082_v27 = vpop.f32.mrb[45].mxu1  ;;  %v2020_v28 = vpop.f32.mrb[46].mxu0 }
 0x151   :  { %v2083_v29 = vadd.f32 %v2082_v27, %v2081_v22  ;;  %v2084_v31 = vpop.f32.mrb[46].mxu1  ;;  %v2021_v34 = vpop.f32.mrb[47].mxu0 }
 0x152   :  { %v1299_v62 = vadd.f32 %v2019_v25, %v2827_v14  ;;  %v2022_v36 = vadd.f32 %v2021_v34, %v2020_v28  ;;  %v2085_v37 = vpop.f32.mrb[47].mxu1 }
 0x153   :  { %v2086_v38 = vadd.f32 %v2085_v37, %v2084_v31 }
 0x154   :  { %v1302_v0 = vadd.f32 %v2022_v36, %v2830_v16  ;;  %v2876_v39 = vadd.f32 %v2083_v29, %v1299_v62 }
 0x156   :  { %v2023_v40 = vpop.f32.mrb[48].mxu0  ;;  %v2878_v41 = vadd.f32 %v2086_v38, %v1302_v0 }
 0x157   :  { %v2087_v42 = vpop.f32.mrb[48].mxu1  ;;  %v2024_v43 = vpop.f32.mrb[49].mxu0 }
 0x158   :  { %v2025_v44 = vadd.f32 %v2024_v43, %v2023_v40  ;;  %v2088_v18 = vpop.f32.mrb[49].mxu1  ;;  %v2026_v49 = vpop.f32.mrb[50].mxu0 }
 0x159   :  { %v2089_v50 = vadd.f32 %v2088_v18, %v2087_v42  ;;  %v2090_v52 = vpop.f32.mrb[50].mxu1  ;;  %v2027_v54 = vpop.f32.mrb[51].mxu0 }
 0x15a   :  { %v1307_v14 = vadd.f32 %v2025_v44, %v2833_v33  ;;  %v2028_v55 = vadd.f32 %v2027_v54, %v2026_v49  ;;  %v2091_v56 = vpop.f32.mrb[51].mxu1 }
 0x15b   :  { %v2092_v57 = vadd.f32 %v2091_v56, %v2090_v52 }
 0x15c   :  { %v1310_v16 = vadd.f32 %v2028_v55, %v2836_v35  ;;  %v1404_v58 = vadd.f32 %v2089_v50, %v1307_v14 }
 0x15e   :  { %v2029_v30 = vpop.f32.mrb[52].mxu0  ;;  %v2882_v59 = vadd.f32 %v2092_v57, %v1310_v16 }
 0x15f   :  { %v2093_v60 = vpop.f32.mrb[52].mxu1  ;;  %v2030_v61 = vpop.f32.mrb[53].mxu0 }
 0x160   :  { %v2031_v32 = vadd.f32 %v2030_v61, %v2029_v30  ;;  %v2094_v1 = vpop.f32.mrb[53].mxu1  ;;  %v2032_v3 = vpop.f32.mrb[54].mxu0 }
 0x161   :  { %v2095_v4 = vadd.f32 %v2094_v1, %v2093_v60  ;;  %v2096_v6 = vpop.f32.mrb[54].mxu1  ;;  %v2033_v8 = vpop.f32.mrb[55].mxu0 }
 0x162   :  { %v1315_v9 = vadd.f32 %v2031_v32, %v2839_v51  ;;  %v2034_v33 = vadd.f32 %v2033_v8, %v2032_v3  ;;  %v2097_v10 = vpop.f32.mrb[55].mxu1 }
 0x163   :  { %v2098_v11 = vadd.f32 %v2097_v10, %v2096_v6 }
 0x164   :  { %v1318_v12 = vadd.f32 %v2034_v33, %v2842_v53  ;;  %v1412_v35 = vadd.f32 %v2095_v4, %v1315_v9 }
 0x166   :  { %v2035_v46 = vpop.f32.mrb[56].mxu0  ;;  %v1415_v13 = vadd.f32 %v2098_v11, %v1318_v12 }
 0x167   :  { %v2099_v15 = vpop.f32.mrb[56].mxu1  ;;  %v2036_v17 = vpop.f32.mrb[57].mxu0 }
 0x168   :  { %v2037_v48 = vadd.f32 %v2036_v17, %v2035_v46  ;;  %v2100_v20 = vpop.f32.mrb[57].mxu1  ;;  %v2038_v22 = vpop.f32.mrb[58].mxu0 }
 0x169   :  { %v2101_v23 = vadd.f32 %v2100_v20, %v2099_v15  ;;  %v2102_v25 = vpop.f32.mrb[58].mxu1  ;;  %v2039_v27 = vpop.f32.mrb[59].mxu0 }
 0x16a   :  { %v1323_v28 = vadd.f32 %v2037_v48, %v2845_v5  ;;  %v2040_v29 = vadd.f32 %v2039_v27, %v2038_v22  ;;  %v2103_v51 = vpop.f32.mrb[59].mxu1 }
 0x16b   :  { %v2104_v31 = vadd.f32 %v2103_v51, %v2102_v25 }
 0x16c   :  { %v1326_v34 = vadd.f32 %v2040_v29, %v2848_v7  ;;  %v1420_v62 = vadd.f32 %v2101_v23, %v1323_v28 }
 0x16e   :  { %v2041_v53 = vpop.f32.mrb[60].mxu0  ;;  %v2888_v36 = vadd.f32 %v2104_v31, %v1326_v34 }
 0x16f   :  { %v2105_v37 = vpop.f32.mrb[60].mxu1  ;;  %v2042_v38 = vpop.f32.mrb[61].mxu0 }
 0x170   :  { %v2043_v0 = vadd.f32 %v2042_v38, %v2041_v53  ;;  %v2106_v40 = vpop.f32.mrb[61].mxu1  ;;  %v2044_v42 = vpop.f32.mrb[62].mxu0 }
 0x171   :  { %v2107_v43 = vadd.f32 %v2106_v40, %v2105_v37  ;;  %v2108_v44 = vpop.f32.mrb[62].mxu1  ;;  %v2045_v18 = vpop.f32.mrb[63].mxu0 }
 0x172   :  { %v1331_v49 = vadd.f32 %v2043_v0, %v2851_v24  ;;  %v2046_v5 = vadd.f32 %v2045_v18, %v2044_v42  ;;  %v2109_v50 = vpop.f32.mrb[63].mxu1 }
 0x173   :  { %v2110_v52 = vadd.f32 %v2109_v50, %v2108_v44 }
 0x174   :  { %v1334_v54 = vadd.f32 %v2046_v5, %v2854_v26  ;;  %v1428_v7 = vadd.f32 %v2107_v43, %v1331_v49 }
 0x176   :  { %v2145_v14 = vpop.f32.mrb[64].mxu0  ;;  %v1431_v55 = vadd.f32 %v2110_v52, %v1334_v54 }
 0x177   :  { %v1477_v56 = vadd.f32 %v2145_v14, %v2864_v63  ;;  %v2153_v57 = vpop.f32.mrb[64].mxu1  ;;  %v1468_v16 = vpop.f32.mrb[65].mxu0 }
 0x178   :  { %v1509_v30 = vadd.f32 %v2153_v57, %v1412_v35  ;;  %v1469_v60 = vadd.f32 %v1468_v16, %v2858_v45  ;;  %v1500_v61 = vpop.f32.mrb[65].mxu1  ;;  %v2146_v32 = vpop.f32.mrb[66].mxu0 }
 0x179   :  { %v1501_v1 = vadd.f32 %v1500_v61, %v1404_v58  ;;  %v1480_v24 = vadd.f32 %v2146_v32, %v2866_v2  ;;  %v2154_v3 = vpop.f32.mrb[66].mxu1  ;;  %v1471_v4 = vpop.f32.mrb[67].mxu0  ;;  %v1533_v9 = vmax.f32 %v1477_v56, 0.0 }
 0x17a   :  { %v1512_v6 = vadd.f32 %v2154_v3, %v1415_v13  ;;  %v1472_v26 = vadd.f32 %v1471_v4, %v2860_v47  ;;  %v1503_v8 = vpop.f32.mrb[67].mxu1  ;;  %v1541_v10 = vmax.f32 %v1509_v30, 0.0  ;;  %v1531_v11 = vmax.f32 %v1469_v60, 0.0 }
 0x17b   :  { %v1534_v33 = vmax.f32 %v1480_v24, 0.0  ;;  %v1504_v63 = vadd.f32 %v1503_v8, %v2882_v59  ;;  %v1539_v45 = vmax.f32 %v1501_v1, 0.0 }
 0x17c   :  { %v1542_v12 = vmax.f32 %v1512_v6, 0.0  ;;  %v1532_v35 = vmax.f32 %v1472_v26, 0.0 }
 0x17d   :  { %v1816_v46 = vpack.c.bf16 %v1534_v33, %v1533_v9  ;;  %v1540_v15 = vmax.f32 %v1504_v63, 0.0 }
 0x17e   :  { %v1836_v58 = vpack.c.bf16 %v1542_v12, %v1541_v10  ;;  %v1811_v17 = vpack.c.bf16 %v1532_v35, %v1531_v11  ;;  %v2149_v2 = vpop.f32.mrb[68].mxu0 }
 0x17f   :  { %1848 = vst [vmem:[%s2929_s3 + $0x8] sm:$0xff] %v1816_v46   ;;  %v1831_v47 = vpack.c.bf16 %v1540_v15, %v1539_v45  ;;  %v1493_v13 = vadd.f32 %v2149_v2, %v2876_v39  ;;  %v2157_v48 = vpop.f32.mrb[68].mxu1  ;;  %v1484_v20 = vpop.f32.mrb[69].mxu0 }
 0x180   :  { %1852 = vst [vmem:[%s2929_s3 + $0x28] sm:$0xff] %v1836_v58   ;;  %1812 = vst [vmem:[%s2929_s3] sm:$0xff] %v1811_v17   ;;  %v1525_v59 = vadd.f32 %v2157_v48, %v1428_v7  ;;  %v1485_v22 = vadd.f32 %v1484_v20, %v2870_v19  ;;  %v1516_v23 = vpop.f32.mrb[69].mxu1  ;;  %v2150_v25 = vpop.f32.mrb[70].mxu0 }
 0x181   :  { %1851 = vst [vmem:[%s2929_s3 + $0x20] sm:$0xff] %v1831_v47   ;;  %v1517_v39 = vadd.f32 %v1516_v23, %v1420_v62  ;;  %v1496_v27 = vadd.f32 %v2150_v25, %v2878_v41  ;;  %v2158_v28 = vpop.f32.mrb[70].mxu1  ;;  %v1487_v29 = vpop.f32.mrb[71].mxu0  ;;  %v1537_v53 = vmax.f32 %v1493_v13, 0.0 }
 0x182   :  { %v1528_v51 = vadd.f32 %v2158_v28, %v1431_v55  ;;  %v1488_v31 = vadd.f32 %v1487_v29, %v2872_v21  ;;  %v1519_v34 = vpop.f32.mrb[71].mxu1  ;;  %v1545_v19 = vmax.f32 %v1525_v59, 0.0  ;;  %v1535_v0 = vmax.f32 %v1485_v22, 0.0 }
 0x183   :  { %v1538_v37 = vmax.f32 %v1496_v27, 0.0  ;;  %v1520_v38 = vadd.f32 %v1519_v34, %v2888_v36  ;;  %v1543_v43 = vmax.f32 %v1517_v39, 0.0 }
 0x184   :  { %v1546_v40 = vmax.f32 %v1528_v51, 0.0  ;;  %v1536_v42 = vmax.f32 %v1488_v31, 0.0 }
 0x185   :  { %v1826_v44 = vpack.c.bf16 %v1538_v37, %v1537_v53  ;;  %v1544_v18 = vmax.f32 %v1520_v38, 0.0 }
 0x186   :  { %v1846_v62 = vpack.c.bf16 %v1546_v40, %v1545_v19  ;;  %v1821_v49 = vpack.c.bf16 %v1536_v42, %v1535_v0 }
 0x187   :  { %1850 = vst [vmem:[%s2929_s3 + $0x18] sm:$0xff] %v1826_v44   ;;  %v1841_v41 = vpack.c.bf16 %v1544_v18, %v1543_v43 }
 0x188   :  { %1854 = vst [vmem:[%s2929_s3 + $0x38] sm:$0xff] %v1846_v62   ;;  %1849 = vst [vmem:[%s2929_s3 + $0x10] sm:$0xff] %v1821_v49  }
 0x189   :  { %1853 = vst [vmem:[%s2929_s3 + $0x30] sm:$0xff] %v1841_v41  }

// kernel: dino_forward.31
= control target key start
LH: loop header
LB: loop body
LE: loop exit
PB: predicated region body
PF: predicated region fallthrough
CT: control target
= control target key end

     0   :  { %s836_s1 = inlined_call_operand.vmem [shape: bf16[256,128], index: 1, kind: input, shape index: {}]   ;;  %s837_s0 = inlined_call_operand.vmem [shape: bf16[128,256], index: 0, kind: input, shape index: {}]   ;;  %s838_s2 = inlined_call_operand.vmem [shape: f32[1,128], index: 2, kind: input, shape index: {}]   ;;  %s839_s3 = inlined_call_operand.vmem [shape: bf16[128,128], index: 3, kind: output, shape index: {}]  }
   0x1   :  { %v635_v0 = vld [vmem:[%s836_s1 + $0x40] sm:$0xff]   ;;  %v637_v2 = vld [vmem:[%s836_s1 + $0x48] sm:$0xff]   ;;  %v639_v4 = vld [vmem:[%s836_s1 + $0x50] sm:$0xff]  }
   0x2   :  { %v636_v1 = vld [vmem:[%s836_s1] sm:$0xff]   ;;  %555 = vmatprep.subr.bf16.mxu0 %v635_v0  ;;  %619 = vmatprep.subr.bf16.mxu1 %v635_v0  ;;  %v638_v3 = vld [vmem:[%s836_s1 + $0x8] sm:$0xff]   ;;  %v640_v5 = vld [vmem:[%s836_s1 + $0x10] sm:$0xff]  }
   0x3   :  { %556 = vmatpush3.bf16.msra.mxu0 %v636_v1  ;;  %627 = vmatpush3.bf16.msra.mxu1 %v636_v1  ;;  %v641_v6 = vld [vmem:[%s836_s1 + $0x58] sm:$0xff]   ;;  %v643_v8 = vld [vmem:[%s836_s1 + $0x60] sm:$0xff]   ;;  %v645_v10 = vld [vmem:[%s836_s1 + $0x68] sm:$0xff]  }
   0x4   :  { %557 = vmatprep.subr.bf16.mxu0 %v637_v2  ;;  %620 = vmatprep.subr.bf16.mxu1 %v637_v2  ;;  %v642_v7 = vld [vmem:[%s836_s1 + $0x18] sm:$0xff]   ;;  %v644_v9 = vld [vmem:[%s836_s1 + $0x20] sm:$0xff]   ;;  %v646_v13 = vld [vmem:[%s836_s1 + $0x28] sm:$0xff]  }
   0x5   :  { %v653_v11 = vld [vmem:[%s837_s0 + $0x4] ss:$8 sps:$4 sm:$0xff]   ;;  %v647_v14 = vld [vmem:[%s836_s1 + $0x70] sm:$0xff]   ;;  %v649_v16 = vld [vmem:[%s836_s1 + $0x78] sm:$0xff]  }
   0x6   :  { %v656_v12 = vld [vmem:[%s837_s0 + $0x44] ss:$8 sps:$4 sm:$0xff]   ;;  %278 = vmatprep.mubr.bf16.mxu0 %v653_v11  ;;  %v648_v15 = vld [vmem:[%s836_s1 + $0x30] sm:$0xff]   ;;  %v650_v17 = vld [vmem:[%s836_s1 + $0x38] sm:$0xff]  }
   0x7   :  { %558 = vmatpush3.bf16.msra.mxu0 %v638_v3  ;;  %628 = vmatpush3.bf16.msra.mxu1 %v638_v3  ;;  %v651_v18 = vld [vmem:[%s837_s0] ss:$8 sps:$4 sm:$0xff]   ;;  %v657_v20 = vld [vmem:[%s837_s0 + $0x14] ss:$8 sps:$4 sm:$0xff]   ;;  %v661_v22 = vld [vmem:[%s837_s0 + $0x10] ss:$8 sps:$4 sm:$0xff]  }
   0x8   :  { %559 = vmatprep.subr.bf16.mxu0 %v639_v4  ;;  %621 = vmatprep.subr.bf16.mxu1 %v639_v4  ;;  %v654_v19 = vld [vmem:[%s837_s0 + $0x40] ss:$8 sps:$4 sm:$0xff]   ;;  %v659_v21 = vld [vmem:[%s837_s0 + $0x54] ss:$8 sps:$4 sm:$0xff]   ;;  %v662_v23 = vld [vmem:[%s837_s0 + $0x50] ss:$8 sps:$4 sm:$0xff]  }
   0x9   :  { %310 = vmatprep.mubr.bf16.mxu1 %v656_v12  ;;  %v663_v24 = vld [vmem:[%s837_s0 + $0x24] ss:$8 sps:$4 sm:$0xff]   ;;  %v667_v26 = vld [vmem:[%s837_s0 + $0x20] ss:$8 sps:$4 sm:$0xff]   ;;  %v669_v28 = vld [vmem:[%s837_s0 + $0x34] ss:$8 sps:$4 sm:$0xff]  }
   0xa   :  { %v665_v25 = vld [vmem:[%s837_s0 + $0x64] ss:$8 sps:$4 sm:$0xff]   ;;  %v668_v27 = vld [vmem:[%s837_s0 + $0x60] ss:$8 sps:$4 sm:$0xff]   ;;  %v671_v29 = vld [vmem:[%s837_s0 + $0x74] ss:$8 sps:$4 sm:$0xff]  }
   0xb   :  { %560 = vmatpush3.bf16.msra.mxu0 %v640_v5  ;;  %629 = vmatpush3.bf16.msra.mxu1 %v640_v5  ;;  %v673_v30 = vld [vmem:[%s837_s0 + $0x30] ss:$8 sps:$4 sm:$0xff]   ;;  %v794_v34 = vld [vmem:[%s838_s2] ss:$0 sm:$0xff] }
   0xc   :  { %561 = vmatprep.subr.bf16.mxu0 %v641_v6  ;;  %622 = vmatprep.subr.bf16.mxu1 %v641_v6  ;;  %v674_v31 = vld [vmem:[%s837_s0 + $0x70] ss:$8 sps:$4 sm:$0xff]  }
   0xf   :  { %562 = vmatpush3.bf16.msra.mxu0 %v642_v7  ;;  %630 = vmatpush3.bf16.msra.mxu1 %v642_v7 }
  0x10   :  { %563 = vmatprep.subr.bf16.mxu0 %v643_v8  ;;  %623 = vmatprep.subr.bf16.mxu1 %v643_v8 }
  0x13   :  { %564 = vmatpush3.bf16.msra.mxu0 %v644_v9  ;;  %631 = vmatpush3.bf16.msra.mxu1 %v644_v9 }
  0x14   :  { %565 = vmatprep.subr.bf16.mxu0 %v645_v10  ;;  %624 = vmatprep.subr.bf16.mxu1 %v645_v10 }
  0x17   :  { %566 = vmatpush3.bf16.msra.mxu0 %v646_v13  ;;  %632 = vmatpush3.bf16.msra.mxu1 %v646_v13 }
  0x18   :  { %567 = vmatprep.subr.bf16.mxu0 %v647_v14  ;;  %625 = vmatprep.subr.bf16.mxu1 %v647_v14 }
  0x1b   :  { %568 = vmatpush3.bf16.msra.mxu0 %v648_v15  ;;  %633 = vmatpush3.bf16.msra.mxu1 %v648_v15 }
  0x1c   :  { %569 = vmatprep.subr.bf16.mxu0 %v649_v16  ;;  %626 = vmatprep.subr.bf16.mxu1 %v649_v16 }
  0x1f   :  { %570 = vmatpush3.bf16.msra.mxu0 %v650_v17  ;;  %634 = vmatpush3.bf16.msra.mxu1 %v650_v17 }
  0x22   :  { %279 = vmatmul.mubr.bf16.vlgmr.msra.gmra.mrb[0].mxu0 %v651_v18  ;;  %311 = vmatmul.mubr.bf16.vlgmr.msra.gmra.mrb[0].mxu1 %v654_v19 }
  0x23   :  { %286 = vmatprep.mubr.bf16.mxu0 %v657_v20  ;;  %318 = vmatprep.mubr.bf16.mxu1 %v659_v21 }
  0x2a   :  { %287 = vmatmul.mubr.bf16.gmra.mrb[4].mxu0 %v661_v22  ;;  %319 = vmatmul.mubr.bf16.gmra.mrb[4].mxu1 %v662_v23 }
  0x2b   :  { %294 = vmatprep.mubr.bf16.mxu0 %v663_v24  ;;  %326 = vmatprep.mubr.bf16.mxu1 %v665_v25 }
  0x32   :  { %295 = vmatmul.mubr.bf16.gmra.mrb[8].mxu0 %v667_v26  ;;  %327 = vmatmul.mubr.bf16.gmra.mrb[8].mxu1 %v668_v27 }
  0x33   :  { %302 = vmatprep.mubr.bf16.mxu0 %v669_v28  ;;  %334 = vmatprep.mubr.bf16.mxu1 %v671_v29 }
  0x3a   :  { %303 = vmatmul.mubr.bf16.gmra.mrb[12].mxu0 %v673_v30  ;;  %335 = vmatmul.mubr.bf16.gmra.mrb[12].mxu1 %v674_v31 }
  0xf5   :  { %v571_v32 = vpop.f32.mrb[0].mxu0  ;;  %v595_v33 = vpop.f32.mrb[0].mxu1 }
  0xf6   :  { %v572_v35 = vpop.f32.mrb[1].mxu0  ;;  %v596_v36 = vpop.f32.mrb[1].mxu1 }
  0xf7   :  { %v573_v37 = vadd.f32 %v572_v35, %v571_v32  ;;  %v597_v38 = vadd.f32 %v596_v36, %v595_v33  ;;  %v574_v39 = vpop.f32.mrb[2].mxu0  ;;  %v598_v40 = vpop.f32.mrb[2].mxu1 }
  0xf8   :  { %v575_v41 = vpop.f32.mrb[3].mxu0  ;;  %v599_v42 = vpop.f32.mrb[3].mxu1 }
  0xf9   :  { %v281_v43 = vadd.f32 %v573_v37, %v794_v34  ;;  %v313_v44 = vadd.f32 %v597_v38, %v794_v34  ;;  %v576_v45 = vadd.f32 %v575_v41, %v574_v39  ;;  %v600_v46 = vadd.f32 %v599_v42, %v598_v40 }
  0xfb   :  { %v284_v47 = vadd.f32 %v576_v45, %v794_v34  ;;  %v316_v48 = vadd.f32 %v600_v46, %v794_v34  ;;  %v343_v49 = vmax.f32 %v281_v43, 0.0  ;;  %v351_v50 = vmax.f32 %v313_v44, 0.0 }
  0xfd   :  { %v344_v51 = vmax.f32 %v284_v47, 0.0  ;;  %v352_v52 = vmax.f32 %v316_v48, 0.0  ;;  %v577_v53 = vpop.f32.mrb[4].mxu0  ;;  %v601_v54 = vpop.f32.mrb[4].mxu1 }
  0xfe   :  { %v578_v55 = vpop.f32.mrb[5].mxu0  ;;  %v602_v56 = vpop.f32.mrb[5].mxu1 }
  0xff   :  { %v511_v57 = vpack.c.bf16 %v344_v51, %v343_v49  ;;  %v531_v58 = vpack.c.bf16 %v352_v52, %v351_v50  ;;  %v579_v59 = vadd.f32 %v578_v55, %v577_v53  ;;  %v603_v60 = vadd.f32 %v602_v56, %v601_v54  ;;  %v580_v61 = vpop.f32.mrb[6].mxu0  ;;  %v604_v62 = vpop.f32.mrb[6].mxu1 }
 0x100   :  { %v581_v63 = vpop.f32.mrb[7].mxu0  ;;  %v605_v0 = vpop.f32.mrb[7].mxu1 }
 0x101   :  { %512 = vst [vmem:[%s839_s3] sm:$0xff] %v511_v57   ;;  %551 = vst [vmem:[%s839_s3 + $0x20] sm:$0xff] %v531_v58   ;;  %v289_v1 = vadd.f32 %v579_v59, %v794_v34  ;;  %v321_v2 = vadd.f32 %v603_v60, %v794_v34  ;;  %v582_v3 = vadd.f32 %v581_v63, %v580_v61 }
 0x102   :  { %v606_v4 = vadd.f32 %v605_v0, %v604_v62 }
 0x103   :  { %v292_v5 = vadd.f32 %v582_v3, %v794_v34  ;;  %v345_v7 = vmax.f32 %v289_v1, 0.0  ;;  %v353_v8 = vmax.f32 %v321_v2, 0.0 }
 0x104   :  { %v324_v6 = vadd.f32 %v606_v4, %v794_v34 }
 0x105   :  { %v346_v9 = vmax.f32 %v292_v5, 0.0  ;;  %v583_v11 = vpop.f32.mrb[8].mxu0  ;;  %v607_v12 = vpop.f32.mrb[8].mxu1 }
 0x106   :  { %v354_v10 = vmax.f32 %v324_v6, 0.0  ;;  %v584_v13 = vpop.f32.mrb[9].mxu0  ;;  %v608_v14 = vpop.f32.mrb[9].mxu1 }
 0x107   :  { %v516_v15 = vpack.c.bf16 %v346_v9, %v345_v7  ;;  %v585_v17 = vadd.f32 %v584_v13, %v583_v11  ;;  %v609_v18 = vadd.f32 %v608_v14, %v607_v12  ;;  %v586_v19 = vpop.f32.mrb[10].mxu0  ;;  %v610_v20 = vpop.f32.mrb[10].mxu1 }
 0x108   :  { %v536_v16 = vpack.c.bf16 %v354_v10, %v353_v8  ;;  %v587_v21 = vpop.f32.mrb[11].mxu0  ;;  %v611_v22 = vpop.f32.mrb[11].mxu1 }
 0x109   :  { %548 = vst [vmem:[%s839_s3 + $0x8] sm:$0xff] %v516_v15   ;;  %v297_v23 = vadd.f32 %v585_v17, %v794_v34  ;;  %v329_v24 = vadd.f32 %v609_v18, %v794_v34  ;;  %v588_v25 = vadd.f32 %v587_v21, %v586_v19  ;;  %v612_v26 = vadd.f32 %v611_v22, %v610_v20 }
 0x10a   :  { %552 = vst [vmem:[%s839_s3 + $0x28] sm:$0xff] %v536_v16  }
 0x10b   :  { %v300_v27 = vadd.f32 %v588_v25, %v794_v34  ;;  %v332_v28 = vadd.f32 %v612_v26, %v794_v34  ;;  %v347_v29 = vmax.f32 %v297_v23, 0.0  ;;  %v355_v30 = vmax.f32 %v329_v24, 0.0 }
 0x10d   :  { %v348_v31 = vmax.f32 %v300_v27, 0.0  ;;  %v356_v32 = vmax.f32 %v332_v28, 0.0  ;;  %v589_v33 = vpop.f32.mrb[12].mxu0  ;;  %v613_v35 = vpop.f32.mrb[12].mxu1 }
 0x10e   :  { %v590_v36 = vpop.f32.mrb[13].mxu0  ;;  %v614_v37 = vpop.f32.mrb[13].mxu1 }
 0x10f   :  { %v521_v38 = vpack.c.bf16 %v348_v31, %v347_v29  ;;  %v541_v39 = vpack.c.bf16 %v356_v32, %v355_v30  ;;  %v591_v40 = vadd.f32 %v590_v36, %v589_v33  ;;  %v615_v41 = vadd.f32 %v614_v37, %v613_v35  ;;  %v592_v42 = vpop.f32.mrb[14].mxu0  ;;  %v616_v43 = vpop.f32.mrb[14].mxu1 }
 0x110   :  { %v593_v44 = vpop.f32.mrb[15].mxu0  ;;  %v617_v45 = vpop.f32.mrb[15].mxu1 }
 0x111   :  { %549 = vst [vmem:[%s839_s3 + $0x10] sm:$0xff] %v521_v38   ;;  %553 = vst [vmem:[%s839_s3 + $0x30] sm:$0xff] %v541_v39   ;;  %v305_v46 = vadd.f32 %v591_v40, %v794_v34  ;;  %v337_v47 = vadd.f32 %v615_v41, %v794_v34  ;;  %v594_v48 = vadd.f32 %v593_v44, %v592_v42 }
 0x112   :  { %v618_v49 = vadd.f32 %v617_v45, %v616_v43 }
 0x113   :  { %v308_v50 = vadd.f32 %v594_v48, %v794_v34  ;;  %v349_v52 = vmax.f32 %v305_v46, 0.0  ;;  %v357_v53 = vmax.f32 %v337_v47, 0.0 }
 0x114   :  { %v340_v51 = vadd.f32 %v618_v49, %v794_v34 }
 0x115   :  { %v350_v54 = vmax.f32 %v308_v50, 0.0 }
 0x116   :  { %v358_v55 = vmax.f32 %v340_v51, 0.0 }
 0x117   :  { %v526_v56 = vpack.c.bf16 %v350_v54, %v349_v52 }
 0x118   :  { %v546_v57 = vpack.c.bf16 %v358_v55, %v357_v53 }
 0x119   :  { %550 = vst [vmem:[%s839_s3 + $0x18] sm:$0xff] %v526_v56  }
 0x11a   :  { %554 = vst [vmem:[%s839_s3 + $0x38] sm:$0xff] %v546_v57  }

// kernel: dino_forward.39
= control target key start
LH: loop header
LB: loop body
LE: loop exit
PB: predicated region body
PF: predicated region fallthrough
CT: control target
= control target key end

     0   :  { %s987_s12 = smov 0   ;;  %s989_s13 = smov 0   ;;  %s1166_s0 = inlined_call_operand.vmem [shape: bf16[32,256], index: 0, kind: input, shape index: {}]   ;;  %s1167_s1 = inlined_call_operand.vmem [shape: bf16[256,512], index: 1, kind: input, shape index: {}]   ;;  %s1168_s2 = inlined_call_operand.vmem [shape: f32[1,512], index: 2, kind: input, shape index: {}]   ;;  %s1169_s3 = inlined_call_operand.vmem [shape: bf16[32,512], index: 3, kind: output, shape index: {}]  }
   0x1   :  { %s991_s14 = smov 0   ;;  %s993_s15 = smov 0  }
   0x2   :  { %s995_s16 = smov 0  }
   0x3 LB: > { %s22_s17 = sadd.s32 1, %s961_s15  ;;  %s767_s18 = sadd.s32 4294967295, %s965_s16   ;;  %s965_s16 = sphi %s995_s16, %s13_s16   ;;  %s961_s15 = sphi %s993_s15, %s1174_s15   ;;  %s957_s14 = sphi %s991_s14, %s1173_s14   ;;  %s953_s13 = sphi %s989_s13, %s1172_s13   ;;  %s949_s12 = sphi %s987_s12, %s1171_s12  }
   0x4   : > { %p23_p0 = scmp.ge.s32.totalorder %s22_s17, 4  ;;  %p65_p1 = scmp.ne.s32.totalorder %s953_s13, %s949_s12 }
   0x5   : > { %p66_p2 = scmp.eq.s32.totalorder %s965_s16, 0  ;;  %p123_p4 = scmp.eq.s32.totalorder %s767_s18, 3 }
   0x6   : > { %s1176_s17 = smov (%p23_p0, %s22_s17), 0  ;;  %s58_s20 = sadd.s32 1, %s953_s13 }
   0x7   : > { %p67_p3 = por %p66_p2, %p65_p1  ;;  %s55_s19 = ssub.s32 %s961_s15, %s1176_s17 }
   0x8   : > { %p56_p5 = scmp.eq.s32.totalorder %s55_s19, 0  ;;  %p1022_p6 = por %p123_p4, %p65_p1 }
   0x9   : > { %p771_p7 = scmp.ge.s32.totalorder %s965_s16, 4 }
   0xa   : > { %s1027_s22 = scalar_select %p56_p5, %s953_s13, %s58_s20  }
   0xb   : > { %155 = sbr.rel (%p771_p7) target bundleno = 43 (0x2b), region = 20 }
  0x12   : > { %158 = sbr.rel (!%p67_p3) target bundleno = 43 (0x2b), region = 24  ;;  %s160_s23 = sand.u32 (%p67_p3), 1, %s953_s13  }
  0x13   : > { %s773_s24 = sshll.u32 (%p67_p3), %s961_s15, 2  ;;  %s772_s25 = sshll.u32 (%p67_p3), %s160_s23, 7 }
  0x14   : > { %s1035_s28 = scalar_lea.vmem (%p67_p3), %s1167_s1, %s773_s24  ;;  %s1039_s29 = scalar_lea.vmem (%p67_p3), [#allocation2], %s772_s25 }
  0x15   : > { %v180_v0 = vld [vmem:[%s1035_s28] sm:$0xf] (%p67_p3)  ;;  %v182_v1 = vld [vmem:[%s1035_s28 + $0x10] sm:$0xf] (%p67_p3) }
  0x16   : > { %181 = vst [vmem:[%s1039_s29] sm:$0xf] (%p67_p3), %v180_v0  ;;  %183 = vst [vmem:[%s1039_s29 + $0x4] sm:$0xf] (%p67_p3), %v182_v1  ;;  %v184_v2 = vld [vmem:[%s1035_s28 + $0x20] sm:$0xf] (%p67_p3) }
  0x17   : > { %v186_v3 = vld [vmem:[%s1035_s28 + $0x30] sm:$0xf] (%p67_p3)  ;;  %v188_v4 = vld [vmem:[%s1035_s28 + $0x40] sm:$0xf] (%p67_p3)  ;;  %185 = vst [vmem:[%s1039_s29 + $0x8] sm:$0xf] (%p67_p3), %v184_v2 }
  0x18   : > { %187 = vst [vmem:[%s1039_s29 + $0xc] sm:$0xf] (%p67_p3), %v186_v3  ;;  %189 = vst [vmem:[%s1039_s29 + $0x10] sm:$0xf] (%p67_p3), %v188_v4  ;;  %v190_v5 = vld [vmem:[%s1035_s28 + $0x50] sm:$0xf] (%p67_p3) }
  0x19   : > { %v192_v6 = vld [vmem:[%s1035_s28 + $0x60] sm:$0xf]  ;;  %v194_v7 = vld [vmem:[%s1035_s28 + $0x70] sm:$0xf]  ;;  %191 = vst [vmem:[%s1039_s29 + $0x14] sm:$0xf] %v190_v5 }
  0x1a   : > { %193 = vst [vmem:[%s1039_s29 + $0x18] sm:$0xf] %v192_v6  ;;  %195 = vst [vmem:[%s1039_s29 + $0x1c] sm:$0xf] %v194_v7  ;;  %v196_v8 = vld [vmem:[%s1035_s28 + $0x80] sm:$0xf] }
  0x1b   : > { %v198_v9 = vld [vmem:[%s1035_s28 + $0x90] sm:$0xf]  ;;  %v200_v10 = vld [vmem:[%s1035_s28 + $0xa0] sm:$0xf]  ;;  %197 = vst [vmem:[%s1039_s29 + $0x20] sm:$0xf] %v196_v8 }
  0x1c   : > { %199 = vst [vmem:[%s1039_s29 + $0x24] sm:$0xf] %v198_v9  ;;  %201 = vst [vmem:[%s1039_s29 + $0x28] sm:$0xf] %v200_v10  ;;  %v202_v11 = vld [vmem:[%s1035_s28 + $0xb0] sm:$0xf] }
  0x1d   : > { %v204_v12 = vld [vmem:[%s1035_s28 + $0xc0] sm:$0xf]  ;;  %v206_v13 = vld [vmem:[%s1035_s28 + $0xd0] sm:$0xf]  ;;  %203 = vst [vmem:[%s1039_s29 + $0x2c] sm:$0xf] %v202_v11 }
  0x1e   : > { %205 = vst [vmem:[%s1039_s29 + $0x30] sm:$0xf] %v204_v12  ;;  %207 = vst [vmem:[%s1039_s29 + $0x34] sm:$0xf] %v206_v13  ;;  %v208_v14 = vld [vmem:[%s1035_s28 + $0xe0] sm:$0xf] }
  0x1f   : > { %v210_v15 = vld [vmem:[%s1035_s28 + $0xf0] sm:$0xf]  ;;  %v212_v16 = vld [vmem:[%s1035_s28 + $0x100] sm:$0xf]  ;;  %209 = vst [vmem:[%s1039_s29 + $0x38] sm:$0xf] %v208_v14 }
  0x20   : > { %211 = vst [vmem:[%s1039_s29 + $0x3c] sm:$0xf] %v210_v15  ;;  %213 = vst [vmem:[%s1039_s29 + $0x40] sm:$0xf] %v212_v16  ;;  %v214_v17 = vld [vmem:[%s1035_s28 + $0x110] sm:$0xf] }
  0x21   : > { %v216_v18 = vld [vmem:[%s1035_s28 + $0x120] sm:$0xf]  ;;  %v218_v19 = vld [vmem:[%s1035_s28 + $0x130] sm:$0xf]  ;;  %215 = vst [vmem:[%s1039_s29 + $0x44] sm:$0xf] %v214_v17 }
  0x22   : > { %217 = vst [vmem:[%s1039_s29 + $0x48] sm:$0xf] %v216_v18  ;;  %219 = vst [vmem:[%s1039_s29 + $0x4c] sm:$0xf] %v218_v19  ;;  %v220_v20 = vld [vmem:[%s1035_s28 + $0x140] sm:$0xf] }
  0x23   : > { %v222_v21 = vld [vmem:[%s1035_s28 + $0x150] sm:$0xf]  ;;  %v224_v22 = vld [vmem:[%s1035_s28 + $0x160] sm:$0xf]  ;;  %221 = vst [vmem:[%s1039_s29 + $0x50] sm:$0xf] %v220_v20 }
  0x24   : > { %223 = vst [vmem:[%s1039_s29 + $0x54] sm:$0xf] %v222_v21  ;;  %225 = vst [vmem:[%s1039_s29 + $0x58] sm:$0xf] %v224_v22  ;;  %v226_v23 = vld [vmem:[%s1035_s28 + $0x170] sm:$0xf] }
  0x25   : > { %v228_v24 = vld [vmem:[%s1035_s28 + $0x180] sm:$0xf]  ;;  %v230_v25 = vld [vmem:[%s1035_s28 + $0x190] sm:$0xf]  ;;  %227 = vst [vmem:[%s1039_s29 + $0x5c] sm:$0xf] %v226_v23 }
  0x26   : > { %229 = vst [vmem:[%s1039_s29 + $0x60] sm:$0xf] %v228_v24  ;;  %231 = vst [vmem:[%s1039_s29 + $0x64] sm:$0xf] %v230_v25  ;;  %v232_v26 = vld [vmem:[%s1035_s28 + $0x1a0] sm:$0xf] }
  0x27   : > { %v234_v27 = vld [vmem:[%s1035_s28 + $0x1b0] sm:$0xf]  ;;  %v236_v28 = vld [vmem:[%s1035_s28 + $0x1c0] sm:$0xf]  ;;  %233 = vst [vmem:[%s1039_s29 + $0x68] sm:$0xf] %v232_v26 }
  0x28   : > { %235 = vst [vmem:[%s1039_s29 + $0x6c] sm:$0xf] %v234_v27  ;;  %237 = vst [vmem:[%s1039_s29 + $0x70] sm:$0xf] %v236_v28  ;;  %v238_v29 = vld [vmem:[%s1035_s28 + $0x1d0] sm:$0xf] }
  0x29   : > { %v240_v30 = vld [vmem:[%s1035_s28 + $0x1e0] sm:$0xf]  ;;  %v242_v31 = vld [vmem:[%s1035_s28 + $0x1f0] sm:$0xf]  ;;  %239 = vst [vmem:[%s1039_s29 + $0x74] sm:$0xf] %v238_v29 }
  0x2a   : > { %241 = vst [vmem:[%s1039_s29 + $0x78] sm:$0xf] %v240_v30  ;;  %243 = vst [vmem:[%s1039_s29 + $0x7c] sm:$0xf] %v242_v31 }
  0x2b PF: > { %p774_p8 = scmp.ge.s32.totalorder %s965_s16, 1  ;;  %p335_p9 = scmp.lt.s32.totalorder %s965_s16, 5 }
  0x2d   : > { %p336_p10 = pnand %p774_p8, %p335_p9 }
  0x2e   : > { %s342_s30 = sand.u32 (!%p336_p10), 1, %s949_s12   ;;  %v923_v32 = vld [vmem:[%s1166_s0 + $0x4] ss:$8 sps:$4 sm:$0xff] (!%p336_p10)   ;;  %v926_v33 = vld [vmem:[%s1166_s0 + $0x14] ss:$8 sps:$4 sm:$0xff] (!%p336_p10)   ;;  %p380_p11 = scmp.lt.s32.totalorder (!%p336_p10), %s957_s14, 3 }
  0x2f   : > { %339 = sbr.rel (%p336_p10) target bundleno = 313 (0x139), region = 69  ;;  %s775_s4 = sshll.u32 (!%p336_p10), %s342_s30, 7  ;;  %576 = vmatprep.mubr.bf16.mxu0 (!%p336_p10), %v923_v32  ;;  %584 = vmatprep.mubr.bf16.mxu1 (!%p336_p10), %v926_v33  ;;  %v921_v50 = vld [vmem:[%s1166_s0] ss:$8 sps:$4 sm:$0xff] (!%p336_p10)   ;;  %v924_v51 = vld [vmem:[%s1166_s0 + $0x10] ss:$8 sps:$4 sm:$0xff] (!%p336_p10)  }
  0x30   : > { %s1114_s9 = scalar_lea.vmem (!%p336_p10), [#allocation2], %s775_s4  ;;  %s776_s26 = sshll.u32 (!%p336_p10), %s342_s30, 4 }
  0x31   : > { %v905_v34 = vld [vmem:[%s1114_s9 + $0x40] sm:$0xff] (!%p336_p10)   ;;  %v907_v36 = vld [vmem:[%s1114_s9 + $0x48] sm:$0xff] (!%p336_p10)   ;;  %v909_v38 = vld [vmem:[%s1114_s9 + $0x50] sm:$0xff] (!%p336_p10)   ;;  %s372_s27 = scalar_lea.vmem (!%p336_p10), [#allocation3], %s776_s26 }
  0x32   : > { %v906_v35 = vld [vmem:[%s1114_s9] sm:$0xff] (!%p336_p10)   ;;  %821 = vmatprep.subr.bf16.mxu0 (!%p336_p10), %v905_v34  ;;  %849 = vmatprep.subr.bf16.mxu1 (!%p336_p10), %v905_v34  ;;  %v908_v37 = vld [vmem:[%s1114_s9 + $0x8] sm:$0xff] (!%p336_p10)   ;;  %v910_v39 = vld [vmem:[%s1114_s9 + $0x10] sm:$0xff] (!%p336_p10)  }
  0x33   : > { %822 = vmatpush3.bf16.msra.mxu0 (!%p336_p10), %v906_v35  ;;  %857 = vmatpush3.bf16.msra.mxu1 (!%p336_p10), %v906_v35  ;;  %v911_v40 = vld [vmem:[%s1114_s9 + $0x58] sm:$0xff] (!%p336_p10)   ;;  %v913_v42 = vld [vmem:[%s1114_s9 + $0x60] sm:$0xff] (!%p336_p10)   ;;  %v915_v44 = vld [vmem:[%s1114_s9 + $0x68] sm:$0xff] (!%p336_p10)  }
  0x34   : > { %823 = vmatprep.subr.bf16.mxu0 (!%p336_p10), %v907_v36  ;;  %850 = vmatprep.subr.bf16.mxu1 (!%p336_p10), %v907_v36  ;;  %v912_v41 = vld [vmem:[%s1114_s9 + $0x18] sm:$0xff] (!%p336_p10)   ;;  %v914_v43 = vld [vmem:[%s1114_s9 + $0x20] sm:$0xff] (!%p336_p10)   ;;  %v916_v45 = vld [vmem:[%s1114_s9 + $0x28] sm:$0xff] (!%p336_p10)  }
  0x35   : > { %v917_v46 = vld [vmem:[%s1114_s9 + $0x70] sm:$0xff] (!%p336_p10)   ;;  %v919_v48 = vld [vmem:[%s1114_s9 + $0x78] sm:$0xff] (!%p336_p10)  }
  0x36   : > { %v918_v47 = vld [vmem:[%s1114_s9 + $0x30] sm:$0xff]   ;;  %v920_v49 = vld [vmem:[%s1114_s9 + $0x38] sm:$0xff]   ;;  %s381_s20 = scalar_select %p380_p11, %s957_s14, 3 }
  0x37   : > { %824 = vmatpush3.bf16.msra.mxu0 %v908_v37  ;;  %858 = vmatpush3.bf16.msra.mxu1 %v908_v37  ;;  %s803_s28 = sshll.u32 (%p1022_p6), %s957_s14, 2 }
  0x38   : > { %825 = vmatprep.subr.bf16.mxu0 %v909_v38  ;;  %851 = vmatprep.subr.bf16.mxu1 %v909_v38  ;;  %s382_s25 = scalar_lea.vmem %s1168_s2, %s381_s20  ;;  %s624_s30 = scalar_lea.vmem (%p1022_p6), %s1169_s3, %s803_s28 }
  0x39   : > { %v777_v60 = vld [vmem:[%s382_s25] ss:$0 sm:$0xff] }
  0x3b   : > { %826 = vmatpush3.bf16.msra.mxu0 %v910_v39  ;;  %859 = vmatpush3.bf16.msra.mxu1 %v910_v39 }
  0x3c   : > { %827 = vmatprep.subr.bf16.mxu0 %v911_v40  ;;  %852 = vmatprep.subr.bf16.mxu1 %v911_v40 }
  0x3f   : > { %828 = vmatpush3.bf16.msra.mxu0 %v912_v41  ;;  %860 = vmatpush3.bf16.msra.mxu1 %v912_v41 }
  0x40   : > { %829 = vmatprep.subr.bf16.mxu0 %v913_v42  ;;  %853 = vmatprep.subr.bf16.mxu1 %v913_v42 }
  0x43   : > { %830 = vmatpush3.bf16.msra.mxu0 %v914_v43  ;;  %861 = vmatpush3.bf16.msra.mxu1 %v914_v43 }
  0x44   : > { %831 = vmatprep.subr.bf16.mxu0 %v915_v44  ;;  %854 = vmatprep.subr.bf16.mxu1 %v915_v44 }
  0x47   : > { %832 = vmatpush3.bf16.msra.mxu0 %v916_v45  ;;  %862 = vmatpush3.bf16.msra.mxu1 %v916_v45 }
  0x48   : > { %833 = vmatprep.subr.bf16.mxu0 %v917_v46  ;;  %855 = vmatprep.subr.bf16.mxu1 %v917_v46 }
  0x4b   : > { %834 = vmatpush3.bf16.msra.mxu0 %v918_v47  ;;  %863 = vmatpush3.bf16.msra.mxu1 %v918_v47 }
  0x4c   : > { %835 = vmatprep.subr.bf16.mxu0 %v919_v48  ;;  %856 = vmatprep.subr.bf16.mxu1 %v919_v48 }
  0x4f   : > { %836 = vmatpush3.bf16.msra.mxu0 %v920_v49  ;;  %864 = vmatpush3.bf16.msra.mxu1 %v920_v49 }
  0x52   : > { %577 = vmatmul.mubr.bf16.vlgmr.msra.gmra.mrb[0].mxu0 %v921_v50  ;;  %585 = vmatmul.mubr.bf16.vlgmr.msra.gmra.mrb[0].mxu1 %v924_v51 }
 0x125   : > { %v837_v52 = vpop.f32.mrb[0].mxu0  ;;  %v843_v53 = vpop.f32.mrb[0].mxu1 }
 0x126   : > { %v838_v54 = vpop.f32.mrb[1].mxu0  ;;  %v844_v55 = vpop.f32.mrb[1].mxu1 }
 0x127   : > { %v839_v56 = vadd.f32 %v838_v54, %v837_v52  ;;  %v845_v57 = vadd.f32 %v844_v55, %v843_v53  ;;  %v840_v58 = vpop.f32.mrb[2].mxu0  ;;  %v846_v59 = vpop.f32.mrb[2].mxu1 }
 0x128   : > { %v841_v61 = vpop.f32.mrb[3].mxu0  ;;  %v847_v62 = vpop.f32.mrb[3].mxu1 }
 0x129   : > { %v842_v63 = vadd.f32 %v841_v61, %v840_v58  ;;  %v848_v0 = vadd.f32 %v847_v62, %v846_v59  ;;  %v579_v1 = vadd.f32 %v839_v56, %v777_v60  ;;  %v587_v2 = vadd.f32 %v845_v57, %v777_v60  ;;  %619 = sbr.rel (!%p1022_p6) target bundleno = 313 (0x139), region = 77 }
 0x12b   : > { %v582_v3 = vadd.f32 %v842_v63, %v777_v60  ;;  %v590_v4 = vadd.f32 %v848_v0, %v777_v60 }
 0x12d   : > { %v813_v5 = vpack.c.bf16 %v582_v3, %v579_v1  ;;  %v818_v6 = vpack.c.bf16 %v590_v4, %v587_v2 }
 0x12f   : > { %814 = vst [vmem:[%s372_s27] sm:$0xff] %v813_v5   ;;  %820 = vst [vmem:[%s372_s27 + $0x8] sm:$0xff] %v818_v6  }
 0x136   : > { %v640_v7 = vld [vmem:[%s372_s27] sm:$0xf]  ;;  %v642_v8 = vld [vmem:[%s372_s27 + $0x4] sm:$0xf]  ;;  %v644_v9 = vld [vmem:[%s372_s27 + $0x8] sm:$0xf] }
 0x137   : > { %v646_v10 = vld [vmem:[%s372_s27 + $0xc] sm:$0xf]  ;;  %641 = vst [vmem:[%s624_s30] sm:$0xf] %v640_v7  ;;  %643 = vst [vmem:[%s624_s30 + $0x10] sm:$0xf] %v642_v8 }
 0x138   : > { %645 = vst [vmem:[%s624_s30 + $0x20] sm:$0xf] %v644_v9  ;;  %647 = vst [vmem:[%s624_s30 + $0x30] sm:$0xf] %v646_v10 }
 0x139 PF: > { %s13_s16 = sadd.s32 1, %s965_s16   ;;  %s1171_s12 = smov %s953_s13 }
 0x13a   : > { %p10_p12 = scmp.ge.s32.totalorder %s13_s16, 6   ;;  %s1172_s13 = smov %s1027_s22 }
 0x13b   : > { %s1173_s14 = smov %s961_s15  ;;  %s1174_s15 = smov %s1176_s17 }
 0x13c   :  { %12 = sbr.rel (!%p10_p12) target bundleno = 3 (0x3), region = 155 }

// kernel: dino_forward.40
= control target key start
LH: loop header
LB: loop body
LE: loop exit
PB: predicated region body
PF: predicated region fallthrough
CT: control target
= control target key end

     0   :  { %s971_s15 = smov 0   ;;  %s973_s16 = smov 0   ;;  %s1089_s0 = inlined_call_operand.vmem [shape: bf16[32,128], index: 0, kind: input, shape index: {}]   ;;  %s1090_s1 = inlined_call_operand.vmem [shape: bf16[128,512], index: 1, kind: input, shape index: {}]   ;;  %s1091_s2 = inlined_call_operand.vmem [shape: f32[1,512], index: 2, kind: input, shape index: {}]   ;;  %s1092_s3 = inlined_call_operand.vmem [shape: bf16[32,512], index: 3, kind: input, shape index: {}]   ;;  %s1093_s4 = inlined_call_operand.vmem [shape: bf16[32,512], index: 4, kind: output, shape index: {}]  }
   0x1   :  { %s975_s17 = smov 0   ;;  %s977_s18 = smov 0  }
   0x2   :  { %s979_s19 = smov 0  }
   0x3 LB: > { %s23_s20 = sadd.s32 1, %s940_s18  ;;  %s770_s21 = sadd.s32 4294967295, %s944_s19   ;;  %s944_s19 = sphi %s979_s19, %s14_s19   ;;  %s940_s18 = sphi %s977_s18, %s1099_s18   ;;  %s936_s17 = sphi %s975_s17, %s1098_s17   ;;  %s932_s16 = sphi %s973_s16, %s1097_s16   ;;  %s928_s15 = sphi %s971_s15, %s1096_s15  }
   0x4   : > { %p24_p0 = scmp.ge.s32.totalorder %s23_s20, 4  ;;  %p66_p1 = scmp.ne.s32.totalorder %s932_s16, %s928_s15 }
   0x5   : > { %p67_p2 = scmp.eq.s32.totalorder %s944_s19, 0  ;;  %p152_p4 = scmp.eq.s32.totalorder %s770_s21, 3 }
   0x6   : > { %s1101_s20 = smov (%p24_p0, %s23_s20), 0  ;;  %s59_s24 = sadd.s32 1, %s932_s16 }
   0x7   : > { %p1003_p3 = por %p67_p2, %p66_p1  ;;  %s56_s23 = ssub.s32 %s940_s18, %s1101_s20 }
   0x8   : > { %p57_p5 = scmp.eq.s32.totalorder %s56_s23, 0  ;;  %p1010_p6 = por %p152_p4, %p66_p1 }
   0x9   : > { %p774_p7 = scmp.ge.s32.totalorder %s944_s19, 4 }
   0xa   : > { %s1015_s26 = scalar_select %p57_p5, %s932_s16, %s59_s24  }
   0xb   : > { %183 = sbr.rel (%p774_p7) target bundleno = 40 (0x28), region = 20 }
  0x12   : > { %186 = sbr.rel (!%p1003_p3) target bundleno = 33 (0x21), region = 24  ;;  %s188_s27 = sand.u32 (%p1003_p3), 1, %s932_s16  }
  0x13   : > { %s776_s28 = sshll.u32 (%p1003_p3), %s940_s18, 2  ;;  %s775_s29 = sshll.u32 (%p1003_p3), %s188_s27, 6 }
  0x14   : > { %s1025_s6 = scalar_lea.vmem (%p1003_p3), %s1090_s1, %s776_s28  ;;  %s190_s7 = scalar_lea.vmem (%p1003_p3), [#allocation2], %s775_s29 }
  0x15   : > { %v208_v0 = vld [vmem:[%s1025_s6] sm:$0xf] (%p1003_p3)  ;;  %v210_v1 = vld [vmem:[%s1025_s6 + $0x10] sm:$0xf] (%p1003_p3) }
  0x16   : > { %209 = vst [vmem:[%s190_s7] sm:$0xf] (%p1003_p3), %v208_v0  ;;  %211 = vst [vmem:[%s190_s7 + $0x4] sm:$0xf] (%p1003_p3), %v210_v1  ;;  %v212_v2 = vld [vmem:[%s1025_s6 + $0x20] sm:$0xf] (%p1003_p3) }
  0x17   : > { %v214_v3 = vld [vmem:[%s1025_s6 + $0x30] sm:$0xf] (%p1003_p3)  ;;  %v216_v4 = vld [vmem:[%s1025_s6 + $0x40] sm:$0xf] (%p1003_p3)  ;;  %213 = vst [vmem:[%s190_s7 + $0x8] sm:$0xf] (%p1003_p3), %v212_v2 }
  0x18   : > { %215 = vst [vmem:[%s190_s7 + $0xc] sm:$0xf] (%p1003_p3), %v214_v3  ;;  %217 = vst [vmem:[%s190_s7 + $0x10] sm:$0xf] (%p1003_p3), %v216_v4  ;;  %v218_v5 = vld [vmem:[%s1025_s6 + $0x50] sm:$0xf] (%p1003_p3) }
  0x19   : > { %v220_v6 = vld [vmem:[%s1025_s6 + $0x60] sm:$0xf]  ;;  %v222_v7 = vld [vmem:[%s1025_s6 + $0x70] sm:$0xf]  ;;  %219 = vst [vmem:[%s190_s7 + $0x14] sm:$0xf] %v218_v5 }
  0x1a   : > { %221 = vst [vmem:[%s190_s7 + $0x18] sm:$0xf] %v220_v6  ;;  %223 = vst [vmem:[%s190_s7 + $0x1c] sm:$0xf] %v222_v7  ;;  %v224_v8 = vld [vmem:[%s1025_s6 + $0x80] sm:$0xf] }
  0x1b   : > { %v226_v9 = vld [vmem:[%s1025_s6 + $0x90] sm:$0xf]  ;;  %v228_v10 = vld [vmem:[%s1025_s6 + $0xa0] sm:$0xf]  ;;  %225 = vst [vmem:[%s190_s7 + $0x20] sm:$0xf] %v224_v8 }
  0x1c   : > { %227 = vst [vmem:[%s190_s7 + $0x24] sm:$0xf] %v226_v9  ;;  %229 = vst [vmem:[%s190_s7 + $0x28] sm:$0xf] %v228_v10  ;;  %v230_v11 = vld [vmem:[%s1025_s6 + $0xb0] sm:$0xf] }
  0x1d   : > { %v232_v12 = vld [vmem:[%s1025_s6 + $0xc0] sm:$0xf]  ;;  %v234_v13 = vld [vmem:[%s1025_s6 + $0xd0] sm:$0xf]  ;;  %231 = vst [vmem:[%s190_s7 + $0x2c] sm:$0xf] %v230_v11 }
  0x1e   : > { %233 = vst [vmem:[%s190_s7 + $0x30] sm:$0xf] %v232_v12  ;;  %235 = vst [vmem:[%s190_s7 + $0x34] sm:$0xf] %v234_v13  ;;  %v236_v14 = vld [vmem:[%s1025_s6 + $0xe0] sm:$0xf] }
  0x1f   : > { %v238_v15 = vld [vmem:[%s1025_s6 + $0xf0] sm:$0xf]  ;;  %237 = vst [vmem:[%s190_s7 + $0x38] sm:$0xf] %v236_v14 }
  0x20   : > { %239 = vst [vmem:[%s190_s7 + $0x3c] sm:$0xf] %v238_v15 }
  0x21 PF: > { %300 = sbr.rel (!%p1003_p3) target bundleno = 40 (0x28), region = 69  ;;  %s302_s8 = sand.u32 (%p1003_p3), 1, %s932_s16  }
  0x22   : > { %s778_s9 = sshll.u32 (%p1003_p3), %s940_s18, 2  ;;  %s777_s10 = sshll.u32 (%p1003_p3), %s302_s8, 4 }
  0x23   : > { %s309_s13 = scalar_lea.vmem (%p1003_p3), %s1092_s3, %s778_s9  ;;  %s304_s14 = scalar_lea.vmem (%p1003_p3), [#allocation3], %s777_s10 }
  0x24   : > { %v325_v16 = vld [vmem:[%s309_s13] sm:$0xf] (%p1003_p3)  ;;  %v327_v17 = vld [vmem:[%s309_s13 + $0x10] sm:$0xf] (%p1003_p3) }
  0x25   : > { %326 = vst [vmem:[%s304_s14] sm:$0xf] (%p1003_p3), %v325_v16  ;;  %328 = vst [vmem:[%s304_s14 + $0x4] sm:$0xf] (%p1003_p3), %v327_v17  ;;  %v329_v18 = vld [vmem:[%s309_s13 + $0x20] sm:$0xf] (%p1003_p3) }
  0x26   : > { %v331_v19 = vld [vmem:[%s309_s13 + $0x30] sm:$0xf] (%p1003_p3)  ;;  %330 = vst [vmem:[%s304_s14 + $0x8] sm:$0xf] (%p1003_p3), %v329_v18 }
  0x27   : > { %332 = vst [vmem:[%s304_s14 + $0xc] sm:$0xf] (%p1003_p3), %v331_v19 }
  0x28 PF: > { %p779_p8 = scmp.ge.s32.totalorder %s944_s19, 1  ;;  %p362_p9 = scmp.lt.s32.totalorder %s944_s19, 5 }
  0x2a   : > { %p363_p10 = pnand %p779_p8, %p362_p9 }
  0x2b   : > { %s369_s21 = sand.u32 (!%p363_p10), 1, %s928_s15   ;;  %v904_v20 = vld [vmem:[%s1089_s0] sm:$0xff] (!%p363_p10)   ;;  %v905_v29 = vld [vmem:[%s1089_s0 + $0x8] sm:$0xff] (!%p363_p10)   ;;  %p418_p11 = scmp.lt.s32.totalorder (!%p363_p10), %s936_s17, 3 }
  0x2c   : > { %366 = sbr.rel (%p363_p10) target bundleno = 312 (0x138), region = 110  ;;  %s780_s24 = sshll.u32 (!%p363_p10), %s369_s21, 6  ;;  %852 = vmatprep.mubr.bf16.mxu0 (!%p363_p10), %v904_v20 }
  0x2d   : > { %s371_s27 = scalar_lea.vmem (!%p363_p10), [#allocation2], %s780_s24  ;;  %s781_s30 = sshll.u32 (!%p363_p10), %s369_s21, 4 }
  0x2e   : > { %v896_v21 = vld [vmem:[%s371_s27] sm:$0xff] (!%p363_p10)   ;;  %v897_v22 = vld [vmem:[%s371_s27 + $0x8] sm:$0xff] (!%p363_p10)   ;;  %v898_v23 = vld [vmem:[%s371_s27 + $0x10] sm:$0xff] (!%p363_p10)   ;;  %s378_s9 = scalar_lea.vmem (!%p363_p10), [#allocation3], %s781_s30  ;;  %s411_s15 = scalar_lea.vmem (!%p363_p10), [#allocation4], %s781_s30 }
  0x2f   : > { %836 = vmatprep.subr.bf16.mxu0 (!%p363_p10), %v896_v21  ;;  %v899_v24 = vld [vmem:[%s371_s27 + $0x18] sm:$0xff] (!%p363_p10)   ;;  %v900_v25 = vld [vmem:[%s371_s27 + $0x20] sm:$0xff] (!%p363_p10)   ;;  %v901_v26 = vld [vmem:[%s371_s27 + $0x28] sm:$0xff] (!%p363_p10)  }
  0x30   : > { %837 = vmatpush3.bf16.msra.mxu0 (!%p363_p10), %v896_v21  ;;  %v902_v27 = vld [vmem:[%s371_s27 + $0x30] sm:$0xff] (!%p363_p10)   ;;  %v903_v28 = vld [vmem:[%s371_s27 + $0x38] sm:$0xff] (!%p363_p10)  }
  0x31   : > { %838 = vmatprep.subr.bf16.mxu0 (!%p363_p10), %v897_v22  ;;  %v824_v30 = vld [vmem:[%s378_s9 + $0x8] sm:$0xff] (!%p363_p10)   ;;  %v807_v31 = vld [vmem:[%s378_s9] sm:$0xff] (!%p363_p10)  }
  0x32   : > { %v812_v33 = vunpack.c.l.bf16 (!%p363_p10), %v824_v30  ;;  %v808_v35 = vunpack.c.l.bf16 (!%p363_p10), %v807_v31  ;;  %v813_v38 = vunpack.c.h.bf16 (!%p363_p10), %v824_v30  ;;  %v809_v41 = vunpack.c.h.bf16 (!%p363_p10), %v807_v31 }
  0x33   : > { %s419_s5 = scalar_select %p418_p11, %s936_s17, 3 }
  0x34   : > { %839 = vmatpush3.bf16.msra.mxu0 %v897_v22  ;;  %s799_s10 = sshll.u32 (%p1010_p6), %s936_s17, 2 }
  0x35   : > { %840 = vmatprep.subr.bf16.mxu0 %v898_v23  ;;  %s420_s8 = scalar_lea.vmem %s1091_s2, %s419_s5  ;;  %s607_s13 = scalar_lea.vmem (%p1010_p6), %s1093_s4, %s799_s10 }
  0x36   : > { %v783_v32 = vld [vmem:[%s420_s8] ss:$0 sm:$0xff] }
  0x38   : > { %841 = vmatpush3.bf16.msra.mxu0 %v898_v23 }
  0x39   : > { %842 = vmatprep.subr.bf16.mxu0 %v899_v24 }
  0x3c   : > { %843 = vmatpush3.bf16.msra.mxu0 %v899_v24 }
  0x3d   : > { %844 = vmatprep.subr.bf16.mxu0 %v900_v25 }
  0x40   : > { %845 = vmatpush3.bf16.msra.mxu0 %v900_v25 }
  0x41   : > { %846 = vmatprep.subr.bf16.mxu0 %v901_v26 }
  0x44   : > { %847 = vmatpush3.bf16.msra.mxu0 %v901_v26 }
  0x45   : > { %848 = vmatprep.subr.bf16.mxu0 %v902_v27 }
  0x48   : > { %849 = vmatpush3.bf16.msra.mxu0 %v902_v27 }
  0x49   : > { %850 = vmatprep.subr.bf16.mxu0 %v903_v28 }
  0x4c   : > { %851 = vmatpush3.bf16.msra.mxu0 %v903_v28 }
  0x4f   : > { %853 = vmatmul.mubr.bf16.vlgmr.msra.gmra.mrb[0].mxu0 %v905_v29 }
 0x122   : > { %v854_v34 = vpop.f32.mrb[0].mxu0 }
 0x123   : > { %v554_v36 = vadd.f32 %v854_v34, %v783_v32  ;;  %v545_v37 = vpop.f32.mrb[1].mxu0 }
 0x124   : > { %v546_v39 = vadd.f32 %v783_v32, %v545_v37  ;;  %v855_v40 = vpop.f32.mrb[2].mxu0 }
 0x125   : > { %v570_v42 = vadd.f32 %v812_v33, %v554_v36  ;;  %v557_v43 = vadd.f32 %v855_v40, %v783_v32  ;;  %v548_v44 = vpop.f32.mrb[3].mxu0 }
 0x126   : > { %v568_v45 = vadd.f32 %v808_v35, %v546_v39  ;;  %v549_v46 = vadd.f32 %v783_v32, %v548_v44 }
 0x127   : > { %v571_v47 = vadd.f32 %v813_v38, %v557_v43  ;;  %v574_v49 = vmax.f32 %v570_v42, 0.0 }
 0x128   : > { %v569_v48 = vadd.f32 %v809_v41, %v549_v46  ;;  %v572_v51 = vmax.f32 %v568_v45, 0.0  ;;  %602 = sbr.rel (!%p1010_p6) target bundleno = 312 (0x138), region = 122 }
 0x129   : > { %v575_v50 = vmax.f32 %v571_v47, 0.0 }
 0x12a   : > { %v573_v52 = vmax.f32 %v569_v48, 0.0 }
 0x12b   : > { %v822_v53 = vpack.c.bf16 %v575_v50, %v574_v49 }
 0x12c   : > { %v817_v54 = vpack.c.bf16 %v573_v52, %v572_v51 }
 0x12d   : > { %825 = vst [vmem:[%s411_s15 + $0x8] sm:$0xff] %v822_v53  }
 0x12e   : > { %818 = vst [vmem:[%s411_s15] sm:$0xff] %v817_v54  }
 0x134   : > { %v627_v57 = vld [vmem:[%s411_s15 + $0x8] sm:$0xf]  ;;  %v629_v58 = vld [vmem:[%s411_s15 + $0xc] sm:$0xf] }
 0x135   : > { %v623_v55 = vld [vmem:[%s411_s15] sm:$0xf]  ;;  %v625_v56 = vld [vmem:[%s411_s15 + $0x4] sm:$0xf]  ;;  %628 = vst [vmem:[%s607_s13 + $0x20] sm:$0xf] %v627_v57 }
 0x136   : > { %624 = vst [vmem:[%s607_s13] sm:$0xf] %v623_v55  ;;  %626 = vst [vmem:[%s607_s13 + $0x10] sm:$0xf] %v625_v56 }
 0x137   : > { %630 = vst [vmem:[%s607_s13 + $0x30] sm:$0xf] %v629_v58 }
 0x138 PF: > { %s14_s19 = sadd.s32 1, %s944_s19   ;;  %s1096_s15 = smov %s932_s16 }
 0x139   : > { %p11_p12 = scmp.ge.s32.totalorder %s14_s19, 6   ;;  %s1097_s16 = smov %s1015_s26 }
 0x13a   : > { %s1098_s17 = smov %s940_s18  ;;  %s1099_s18 = smov %s1101_s20 }
 0x13b   :  { %13 = sbr.rel (!%p11_p12) target bundleno = 3 (0x3), region = 208 }

// kernel: dino_forward.38
= control target key start
LH: loop header
LB: loop body
LE: loop exit
PB: predicated region body
PF: predicated region fallthrough
CT: control target
= control target key end

     0   :  { %s1632_s1 = inlined_call_operand.vmem [shape: bf16[1152,128], index: 1, kind: input, shape index: {}]   ;;  %s1633_s0 = inlined_call_operand.vmem [shape: bf16[32,1152], index: 0, kind: input, shape index: {}]   ;;  %s1634_s2 = inlined_call_operand.vmem [shape: f32[1,128], index: 2, kind: input, shape index: {}]   ;;  %s1635_s3 = inlined_call_operand.vmem [shape: bf16[32,128], index: 3, kind: output, shape index: {}]  }
   0x1   :  { %v1235_v0 = vld [vmem:[%s1632_s1 + $0x40] sm:$0xff]   ;;  %v1239_v4 = vld [vmem:[%s1632_s1 + $0x48] sm:$0xff]   ;;  %v1243_v8 = vld [vmem:[%s1632_s1 + $0x50] sm:$0xff]  }
   0x2   :  { %v1236_v1 = vld [vmem:[%s1632_s1] sm:$0xff]   ;;  %1093 = vmatprep.subr.bf16.mxu0 %v1235_v0  ;;  %v1240_v5 = vld [vmem:[%s1632_s1 + $0x8] sm:$0xff]   ;;  %v1244_v9 = vld [vmem:[%s1632_s1 + $0x10] sm:$0xff]  }
   0x3   :  { %v1237_v2 = vld [vmem:[%s1632_s1 + $0xc0] sm:$0xff]   ;;  %1094 = vmatpush3.bf16.msra.mxu0 %v1236_v1  ;;  %v1241_v6 = vld [vmem:[%s1632_s1 + $0xc8] sm:$0xff]   ;;  %v1245_v10 = vld [vmem:[%s1632_s1 + $0xd0] sm:$0xff]  }
   0x4   :  { %v1238_v3 = vld [vmem:[%s1632_s1 + $0x80] sm:$0xff]   ;;  %1121 = vmatprep.subr.bf16.mxu1 %v1237_v2  ;;  %1095 = vmatprep.subr.bf16.mxu0 %v1239_v4  ;;  %v1242_v7 = vld [vmem:[%s1632_s1 + $0x88] sm:$0xff]   ;;  %v1246_v11 = vld [vmem:[%s1632_s1 + $0x90] sm:$0xff]  }
   0x5   :  { %1122 = vmatpush3.bf16.msra.mxu1 %v1238_v3  ;;  %v1247_v12 = vld [vmem:[%s1632_s1 + $0x58] sm:$0xff]   ;;  %v1251_v16 = vld [vmem:[%s1632_s1 + $0x60] sm:$0xff]   ;;  %v1255_v20 = vld [vmem:[%s1632_s1 + $0x68] sm:$0xff]  }
   0x6   :  { %1123 = vmatprep.subr.bf16.mxu1 %v1241_v6  ;;  %v1248_v13 = vld [vmem:[%s1632_s1 + $0x18] sm:$0xff]   ;;  %v1252_v17 = vld [vmem:[%s1632_s1 + $0x20] sm:$0xff]   ;;  %v1256_v21 = vld [vmem:[%s1632_s1 + $0x28] sm:$0xff]  }
   0x7   :  { %1096 = vmatpush3.bf16.msra.mxu0 %v1240_v5  ;;  %v1249_v14 = vld [vmem:[%s1632_s1 + $0xd8] sm:$0xff]   ;;  %v1253_v18 = vld [vmem:[%s1632_s1 + $0xe0] sm:$0xff]   ;;  %v1257_v22 = vld [vmem:[%s1632_s1 + $0xe8] sm:$0xff]  }
   0x8   :  { %1097 = vmatprep.subr.bf16.mxu0 %v1243_v8  ;;  %v1250_v15 = vld [vmem:[%s1632_s1 + $0x98] sm:$0xff]   ;;  %v1254_v19 = vld [vmem:[%s1632_s1 + $0xa0] sm:$0xff]   ;;  %v1258_v23 = vld [vmem:[%s1632_s1 + $0xa8] sm:$0xff]  }
   0x9   :  { %1124 = vmatpush3.bf16.msra.mxu1 %v1242_v7  ;;  %v1259_v24 = vld [vmem:[%s1632_s1 + $0x70] sm:$0xff]   ;;  %v1263_v28 = vld [vmem:[%s1632_s1 + $0x78] sm:$0xff]   ;;  %v1266_v31 = vld [vmem:[%s1633_s0] ss:$36 sps:$4 sm:$0xff]  }
   0xa   :  { %1125 = vmatprep.subr.bf16.mxu1 %v1245_v10  ;;  %v1260_v25 = vld [vmem:[%s1632_s1 + $0x30] sm:$0xff]   ;;  %v1264_v29 = vld [vmem:[%s1632_s1 + $0x38] sm:$0xff]   ;;  %v1268_v32 = vld [vmem:[%s1633_s0 + $0x4] ss:$36 sps:$4 sm:$0xff]  }
   0xb   :  { %1098 = vmatpush3.bf16.msra.mxu0 %v1244_v9  ;;  %v1261_v26 = vld [vmem:[%s1632_s1 + $0xf0] sm:$0xff]   ;;  %v1265_v30 = vld [vmem:[%s1632_s1 + $0xf8] sm:$0xff]   ;;  %742 = vmatprep.mubr.bf16.mxu0 %v1268_v32  ;;  %v1270_v34 = vld [vmem:[%s1632_s1 + $0x140] sm:$0xff]  }
   0xc   :  { %1099 = vmatprep.subr.bf16.mxu0 %v1247_v12  ;;  %v1262_v27 = vld [vmem:[%s1632_s1 + $0xb0] sm:$0xff]   ;;  %v1269_v33 = vld [vmem:[%s1632_s1 + $0xb8] sm:$0xff]   ;;  %v1271_v35 = vld [vmem:[%s1633_s0 + $0x8] ss:$36 sps:$4 sm:$0xff]  }
   0xd   :  { %1126 = vmatpush3.bf16.msra.mxu1 %v1246_v11  ;;  %v1273_v36 = vld [vmem:[%s1633_s0 + $0xc] ss:$36 sps:$4 sm:$0xff]   ;;  %v1274_v37 = vld [vmem:[%s1632_s1 + $0x100] sm:$0xff]   ;;  %v1285_v48 = vld [vmem:[%s1632_s1 + $0x158] sm:$0xff]  }
   0xe   :  { %1127 = vmatprep.subr.bf16.mxu1 %v1249_v14  ;;  %791 = vmatprep.mubr.bf16.mxu1 %v1273_v36  ;;  %v1275_v38 = vld [vmem:[%s1632_s1 + $0x1c0] sm:$0xff]   ;;  %v1277_v40 = vld [vmem:[%s1632_s1 + $0x148] sm:$0xff]   ;;  %v1281_v44 = vld [vmem:[%s1632_s1 + $0x150] sm:$0xff]  }
   0xf   :  { %1100 = vmatpush3.bf16.msra.mxu0 %v1248_v13  ;;  %v1276_v39 = vld [vmem:[%s1632_s1 + $0x180] sm:$0xff]   ;;  %v1278_v41 = vld [vmem:[%s1632_s1 + $0x108] sm:$0xff]   ;;  %v1282_v45 = vld [vmem:[%s1632_s1 + $0x110] sm:$0xff]  }
  0x10   :  { %1101 = vmatprep.subr.bf16.mxu0 %v1251_v16  ;;  %v1279_v42 = vld [vmem:[%s1632_s1 + $0x1c8] sm:$0xff]   ;;  %v1283_v46 = vld [vmem:[%s1632_s1 + $0x1d0] sm:$0xff]   ;;  %v1286_v49 = vld [vmem:[%s1632_s1 + $0x118] sm:$0xff]  }
  0x11   :  { %1128 = vmatpush3.bf16.msra.mxu1 %v1250_v15  ;;  %v1280_v43 = vld [vmem:[%s1632_s1 + $0x188] sm:$0xff]   ;;  %v1284_v47 = vld [vmem:[%s1632_s1 + $0x190] sm:$0xff]   ;;  %v1287_v50 = vld [vmem:[%s1632_s1 + $0x1d8] sm:$0xff]  }
  0x12   :  { %1129 = vmatprep.subr.bf16.mxu1 %v1253_v18  ;;  %v1288_v51 = vld [vmem:[%s1632_s1 + $0x198] sm:$0xff]   ;;  %v1289_v52 = vld [vmem:[%s1632_s1 + $0x160] sm:$0xff]   ;;  %v1293_v56 = vld [vmem:[%s1632_s1 + $0x168] sm:$0xff]  }
  0x13   :  { %1102 = vmatpush3.bf16.msra.mxu0 %v1252_v17  ;;  %v1290_v53 = vld [vmem:[%s1632_s1 + $0x120] sm:$0xff]   ;;  %v1294_v57 = vld [vmem:[%s1633_s0 + $0x4c] ss:$36 sps:$4 sm:$0xff]   ;;  %v1299_v61 = vld [vmem:[%s1633_s0 + $0x54] ss:$36 sps:$4 sm:$0xff]  }
  0x14   :  { %1103 = vmatprep.subr.bf16.mxu0 %v1255_v20  ;;  %v1291_v54 = vld [vmem:[%s1632_s1 + $0x1e0] sm:$0xff]   ;;  %v1296_v58 = vld [vmem:[%s1632_s1 + $0x128] sm:$0xff]   ;;  %v1302_v63 = vld [vmem:[%s1633_s0 + $0x50] ss:$36 sps:$4 sm:$0xff]  }
  0x15   :  { %1130 = vmatpush3.bf16.msra.mxu1 %v1254_v19  ;;  %v1292_v55 = vld [vmem:[%s1632_s1 + $0x1a0] sm:$0xff]   ;;  %v1297_v59 = vld [vmem:[%s1633_s0 + $0x48] ss:$36 sps:$4 sm:$0xff]   ;;  %v1303_v0 = vld [vmem:[%s1632_s1 + $0x170] sm:$0xff]  }
  0x16   :  { %1131 = vmatprep.subr.bf16.mxu1 %v1257_v22  ;;  %v1298_v60 = vld [vmem:[%s1632_s1 + $0x1e8] sm:$0xff]   ;;  %v1304_v1 = vld [vmem:[%s1632_s1 + $0x130] sm:$0xff]   ;;  %v1307_v4 = vld [vmem:[%s1632_s1 + $0x178] sm:$0xff]  }
  0x17   :  { %1104 = vmatpush3.bf16.msra.mxu0 %v1256_v21  ;;  %v1301_v62 = vld [vmem:[%s1632_s1 + $0x1a8] sm:$0xff]   ;;  %v1305_v2 = vld [vmem:[%s1632_s1 + $0x1f0] sm:$0xff]   ;;  %v1308_v5 = vld [vmem:[%s1632_s1 + $0x138] sm:$0xff]  }
  0x18   :  { %1105 = vmatprep.subr.bf16.mxu0 %v1259_v24  ;;  %v1306_v3 = vld [vmem:[%s1632_s1 + $0x1b0] sm:$0xff]   ;;  %v1309_v6 = vld [vmem:[%s1632_s1 + $0x1f8] sm:$0xff]   ;;  %v1314_v10 = vld [vmem:[%s1632_s1 + $0x200] sm:$0xff]  }
  0x19   :  { %1132 = vmatpush3.bf16.msra.mxu1 %v1258_v23  ;;  %v1310_v7 = vld [vmem:[%s1633_s0 + $0x10] ss:$36 sps:$4 sm:$0xff]   ;;  %v1313_v9 = vld [vmem:[%s1632_s1 + $0x1b8] sm:$0xff]   ;;  %v1318_v13 = vld [vmem:[%s1632_s1 + $0x208] sm:$0xff]  }
  0x1a   :  { %1133 = vmatprep.subr.bf16.mxu1 %v1261_v26  ;;  %v1312_v8 = vld [vmem:[%s1633_s0 + $0x14] ss:$36 sps:$4 sm:$0xff]   ;;  %v1317_v12 = vld [vmem:[%s1633_s0 + $0x1c] ss:$36 sps:$4 sm:$0xff]   ;;  %v1323_v17 = vld [vmem:[%s1633_s0 + $0x64] ss:$36 sps:$4 sm:$0xff]  }
  0x1b   :  { %1106 = vmatpush3.bf16.msra.mxu0 %v1260_v25  ;;  %v1315_v11 = vld [vmem:[%s1633_s0 + $0x18] ss:$36 sps:$4 sm:$0xff]   ;;  %v1322_v16 = vld [vmem:[%s1632_s1 + $0x210] sm:$0xff]   ;;  %v1325_v18 = vld [vmem:[%s1633_s0 + $0x60] ss:$36 sps:$4 sm:$0xff]  }
  0x1c   :  { %1107 = vmatprep.subr.bf16.mxu0 %v1263_v28  ;;  %v1319_v14 = vld [vmem:[%s1633_s0 + $0x5c] ss:$36 sps:$4 sm:$0xff]   ;;  %v1328_v22 = vld [vmem:[%s1632_s1 + $0x228] sm:$0xff]   ;;  %v1329_v23 = vld [vmem:[%s1632_s1 + $0x230] sm:$0xff]  }
  0x1d   :  { %1134 = vmatpush3.bf16.msra.mxu1 %v1262_v27  ;;  %v1321_v15 = vld [vmem:[%s1633_s0 + $0x58] ss:$36 sps:$4 sm:$0xff]   ;;  %v1327_v20 = vld [vmem:[%s1632_s1 + $0x220] sm:$0xff]   ;;  %v1332_v25 = vld [vmem:[%s1633_s0 + $0x68] ss:$36 sps:$4 sm:$0xff]  }
  0x1e   :  { %1135 = vmatprep.subr.bf16.mxu1 %v1265_v30  ;;  %v1326_v19 = vld [vmem:[%s1632_s1 + $0x218] sm:$0xff]   ;;  %v1331_v21 = vld [vmem:[%s1633_s0 + $0x20] ss:$36 sps:$4 sm:$0xff]  }
  0x1f   :  { %1108 = vmatpush3.bf16.msra.mxu0 %v1264_v29  ;;  %v1330_v24 = vld [vmem:[%s1632_s1 + $0x238] sm:$0xff]   ;;  %v983_v27 = vld [vmem:[%s1634_s2] ss:$0 sm:$0xff] }
  0x20   :  { %1149 = vmatprep.subr.bf16.mxu0 %v1270_v34 }
  0x21   :  { %1136 = vmatpush3.bf16.msra.mxu1 %v1269_v33 }
  0x22   :  { %743 = vmatmul.mubr.bf16.vlgmr.msra.gmra.mrb[0].mxu0 %v1266_v31  ;;  %1177 = vmatprep.subr.bf16.mxu1 %v1275_v38 }
  0x23   :  { %1150 = vmatpush3.bf16.msra.mxu0 %v1274_v37  ;;  %750 = vmatprep.mubr.bf16.mxu0 %v1294_v57 }
  0x24   :  { %792 = vmatmul.mubr.bf16.vlgmr.msra.gmra.mrb[0].mxu1 %v1271_v35  ;;  %1151 = vmatprep.subr.bf16.mxu0 %v1277_v40 }
  0x25   :  { %1178 = vmatpush3.bf16.msra.mxu1 %v1276_v39  ;;  %799 = vmatprep.mubr.bf16.mxu1 %v1299_v61 }
  0x26   :  { %1179 = vmatprep.subr.bf16.mxu1 %v1279_v42 }
  0x27   :  { %1152 = vmatpush3.bf16.msra.mxu0 %v1278_v41 }
  0x28   :  { %1153 = vmatprep.subr.bf16.mxu0 %v1281_v44 }
  0x29   :  { %1180 = vmatpush3.bf16.msra.mxu1 %v1280_v43 }
  0x2a   :  { %1181 = vmatprep.subr.bf16.mxu1 %v1283_v46  ;;  %751 = vmatmul.mubr.bf16.gmra.mrb[4].mxu0 %v1297_v59 }
  0x2b   :  { %1154 = vmatpush3.bf16.msra.mxu0 %v1282_v45  ;;  %840 = vmatprep.mubr.bf16.mxu0 %v1312_v8 }
  0x2c   :  { %1155 = vmatprep.subr.bf16.mxu0 %v1285_v48  ;;  %800 = vmatmul.mubr.bf16.gmra.mrb[4].mxu1 %v1302_v63 }
  0x2d   :  { %1182 = vmatpush3.bf16.msra.mxu1 %v1284_v47  ;;  %889 = vmatprep.mubr.bf16.mxu1 %v1317_v12 }
  0x2e   :  { %1183 = vmatprep.subr.bf16.mxu1 %v1287_v50 }
  0x2f   :  { %1156 = vmatpush3.bf16.msra.mxu0 %v1286_v49 }
  0x30   :  { %1157 = vmatprep.subr.bf16.mxu0 %v1289_v52 }
  0x31   :  { %1184 = vmatpush3.bf16.msra.mxu1 %v1288_v51 }
  0x32   :  { %1185 = vmatprep.subr.bf16.mxu1 %v1291_v54 }
  0x33   :  { %1158 = vmatpush3.bf16.msra.mxu0 %v1290_v53 }
  0x34   :  { %1159 = vmatprep.subr.bf16.mxu0 %v1293_v56 }
  0x35   :  { %1186 = vmatpush3.bf16.msra.mxu1 %v1292_v55 }
  0x36   :  { %1187 = vmatprep.subr.bf16.mxu1 %v1298_v60 }
  0x37   :  { %1160 = vmatpush3.bf16.msra.mxu0 %v1296_v58 }
  0x38   :  { %1161 = vmatprep.subr.bf16.mxu0 %v1303_v0 }
  0x39   :  { %1188 = vmatpush3.bf16.msra.mxu1 %v1301_v62 }
  0x3a   :  { %1189 = vmatprep.subr.bf16.mxu1 %v1305_v2 }
  0x3b   :  { %1162 = vmatpush3.bf16.msra.mxu0 %v1304_v1 }
  0x3c   :  { %1163 = vmatprep.subr.bf16.mxu0 %v1307_v4 }
  0x3d   :  { %1190 = vmatpush3.bf16.msra.mxu1 %v1306_v3 }
  0x3e   :  { %1191 = vmatprep.subr.bf16.mxu1 %v1309_v6 }
  0x3f   :  { %1164 = vmatpush3.bf16.msra.mxu0 %v1308_v5 }
  0x40   :  { %1215 = vmatprep.subr.bf16.mxu0 %v1314_v10 }
  0x41   :  { %1192 = vmatpush3.bf16.msra.mxu1 %v1313_v9 }
  0x42   :  { %841 = vmatmul.mubr.bf16.vlgmr.msra.gmra.mrb[8].mxu0 %v1310_v7 }
  0x43   :  { %1216 = vmatpush3.bf16.msra.mxu0 %v1314_v10  ;;  %848 = vmatprep.mubr.bf16.mxu0 %v1319_v14 }
  0x44   :  { %890 = vmatmul.mubr.bf16.vlgmr.msra.gmra.mrb[8].mxu1 %v1315_v11  ;;  %1217 = vmatprep.subr.bf16.mxu0 %v1318_v13 }
  0x45   :  { %897 = vmatprep.mubr.bf16.mxu1 %v1323_v17 }
  0x47   :  { %1218 = vmatpush3.bf16.msra.mxu0 %v1318_v13 }
  0x48   :  { %1219 = vmatprep.subr.bf16.mxu0 %v1322_v16 }
  0x4a   :  { %849 = vmatmul.mubr.bf16.gmra.mrb[12].mxu0 %v1321_v15 }
  0x4b   :  { %1220 = vmatpush3.bf16.msra.mxu0 %v1322_v16  ;;  %1231 = vmatprep.mubr.bf16.mxu0 %v1331_v21 }
  0x4c   :  { %898 = vmatmul.mubr.bf16.gmra.mrb[12].mxu1 %v1325_v18  ;;  %1221 = vmatprep.subr.bf16.mxu0 %v1326_v19 }
  0x4f   :  { %1222 = vmatpush3.bf16.msra.mxu0 %v1326_v19 }
  0x50   :  { %1223 = vmatprep.subr.bf16.mxu0 %v1327_v20 }
  0x53   :  { %1224 = vmatpush3.bf16.msra.mxu0 %v1327_v20 }
  0x54   :  { %1225 = vmatprep.subr.bf16.mxu0 %v1328_v22 }
  0x57   :  { %1226 = vmatpush3.bf16.msra.mxu0 %v1328_v22 }
  0x58   :  { %1227 = vmatprep.subr.bf16.mxu0 %v1329_v23 }
  0x5b   :  { %1228 = vmatpush3.bf16.msra.mxu0 %v1329_v23 }
  0x5c   :  { %1229 = vmatprep.subr.bf16.mxu0 %v1330_v24 }
  0x5f   :  { %1230 = vmatpush3.bf16.msra.mxu0 %v1330_v24 }
  0x62   :  { %1232 = vmatmul.mubr.bf16.vlgmr.msra.gmra.mrb[16].mxu0 %v1332_v25 }
  0xf5   :  { %v1109_v26 = vpop.f32.mrb[0].mxu0 }
  0xf6   :  { %v1110_v28 = vpop.f32.mrb[1].mxu0 }
  0xf7   :  { %v1111_v29 = vadd.f32 %v1110_v28, %v1109_v26  ;;  %v1112_v30 = vpop.f32.mrb[2].mxu0  ;;  %v1137_v31 = vpop.f32.mrb[0].mxu1 }
  0xf8   :  { %v1113_v32 = vpop.f32.mrb[3].mxu0  ;;  %v1138_v35 = vpop.f32.mrb[1].mxu1 }
  0xf9   :  { %v745_v33 = vadd.f32 %v1111_v29, %v983_v27  ;;  %v1114_v34 = vadd.f32 %v1113_v32, %v1112_v30  ;;  %v1139_v36 = vadd.f32 %v1138_v35, %v1137_v31  ;;  %v1140_v37 = vpop.f32.mrb[2].mxu1 }
  0xfa   :  { %v1141_v39 = vpop.f32.mrb[3].mxu1 }
  0xfb   :  { %v748_v38 = vadd.f32 %v1114_v34, %v983_v27  ;;  %v794_v40 = vadd.f32 %v1139_v36, %v745_v33  ;;  %v1142_v41 = vadd.f32 %v1141_v39, %v1140_v37 }
  0xfd   :  { %v797_v42 = vadd.f32 %v1142_v41, %v748_v38  ;;  %v1115_v43 = vpop.f32.mrb[4].mxu0 }
  0xfe   :  { %v1116_v44 = vpop.f32.mrb[5].mxu0 }
  0xff   :  { %v1117_v45 = vadd.f32 %v1116_v44, %v1115_v43  ;;  %v1118_v46 = vpop.f32.mrb[6].mxu0  ;;  %v1143_v47 = vpop.f32.mrb[4].mxu1 }
 0x100   :  { %v1119_v48 = vpop.f32.mrb[7].mxu0  ;;  %v1144_v51 = vpop.f32.mrb[5].mxu1 }
 0x101   :  { %v753_v49 = vadd.f32 %v1117_v45, %v983_v27  ;;  %v1120_v50 = vadd.f32 %v1119_v48, %v1118_v46  ;;  %v1145_v52 = vadd.f32 %v1144_v51, %v1143_v47  ;;  %v1146_v53 = vpop.f32.mrb[6].mxu1 }
 0x102   :  { %v1147_v55 = vpop.f32.mrb[7].mxu1 }
 0x103   :  { %v756_v54 = vadd.f32 %v1120_v50, %v983_v27  ;;  %v802_v56 = vadd.f32 %v1145_v52, %v753_v49  ;;  %v1148_v57 = vadd.f32 %v1147_v55, %v1146_v53 }
 0x105   :  { %v805_v58 = vadd.f32 %v1148_v57, %v756_v54 }
 0x115   :  { %v1165_v59 = vpop.f32.mrb[8].mxu0 }
 0x116   :  { %v1166_v60 = vpop.f32.mrb[9].mxu0 }
 0x117   :  { %v1167_v61 = vadd.f32 %v1166_v60, %v1165_v59  ;;  %v1168_v62 = vpop.f32.mrb[10].mxu0  ;;  %v1193_v63 = vpop.f32.mrb[8].mxu1 }
 0x118   :  { %v1169_v0 = vpop.f32.mrb[11].mxu0  ;;  %v1194_v3 = vpop.f32.mrb[9].mxu1 }
 0x119   :  { %v843_v1 = vadd.f32 %v1167_v61, %v794_v40  ;;  %v1170_v2 = vadd.f32 %v1169_v0, %v1168_v62  ;;  %v1195_v4 = vadd.f32 %v1194_v3, %v1193_v63  ;;  %v1196_v5 = vpop.f32.mrb[10].mxu1 }
 0x11a   :  { %v1197_v7 = vpop.f32.mrb[11].mxu1 }
 0x11b   :  { %v846_v6 = vadd.f32 %v1170_v2, %v797_v42  ;;  %v1198_v8 = vadd.f32 %v1197_v7, %v1196_v5  ;;  %v892_v9 = vadd.f32 %v1195_v4, %v843_v1 }
 0x11d   :  { %v1171_v10 = vpop.f32.mrb[12].mxu0  ;;  %v895_v12 = vadd.f32 %v1198_v8, %v846_v6 }
 0x11e   :  { %v1172_v11 = vpop.f32.mrb[13].mxu0 }
 0x11f   :  { %v1173_v13 = vadd.f32 %v1172_v11, %v1171_v10  ;;  %v1174_v14 = vpop.f32.mrb[14].mxu0  ;;  %v1199_v15 = vpop.f32.mrb[12].mxu1 }
 0x120   :  { %v1175_v16 = vpop.f32.mrb[15].mxu0  ;;  %v1200_v19 = vpop.f32.mrb[13].mxu1 }
 0x121   :  { %v851_v17 = vadd.f32 %v1173_v13, %v802_v56  ;;  %v1176_v18 = vadd.f32 %v1175_v16, %v1174_v14  ;;  %v1201_v20 = vadd.f32 %v1200_v19, %v1199_v15  ;;  %v1202_v21 = vpop.f32.mrb[14].mxu1 }
 0x122   :  { %v1203_v23 = vpop.f32.mrb[15].mxu1 }
 0x123   :  { %v854_v22 = vadd.f32 %v1176_v18, %v805_v58  ;;  %v1204_v24 = vadd.f32 %v1203_v23, %v1202_v21  ;;  %v900_v25 = vadd.f32 %v1201_v20, %v851_v17 }
 0x125   :  { %v903_v26 = vadd.f32 %v1204_v24, %v854_v22 }
 0x135   :  { %v1233_v27 = vpop.f32.mrb[16].mxu0 }
 0x136   :  { %v949_v28 = vadd.f32 %v1233_v27, %v900_v25  ;;  %v940_v29 = vpop.f32.mrb[17].mxu0 }
 0x137   :  { %v941_v30 = vadd.f32 %v940_v29, %v892_v9  ;;  %v1234_v31 = vpop.f32.mrb[18].mxu0 }
 0x138   :  { %v952_v32 = vadd.f32 %v1234_v31, %v903_v26  ;;  %v943_v33 = vpop.f32.mrb[19].mxu0  ;;  %v957_v35 = vmax.f32 %v949_v28, 0.0 }
 0x139   :  { %v944_v34 = vadd.f32 %v943_v33, %v895_v12  ;;  %v955_v37 = vmax.f32 %v941_v30, 0.0 }
 0x13a   :  { %v958_v36 = vmax.f32 %v952_v32, 0.0 }
 0x13b   :  { %v956_v38 = vmax.f32 %v944_v34, 0.0 }
 0x13c   :  { %v1090_v39 = vpack.c.bf16 %v958_v36, %v957_v35 }
 0x13d   :  { %v1085_v40 = vpack.c.bf16 %v956_v38, %v955_v37 }
 0x13e   :  { %1092 = vst [vmem:[%s1635_s3 + $0x8] sm:$0xff] %v1090_v39  }
 0x13f   :  { %1086 = vst [vmem:[%s1635_s3] sm:$0xff] %v1085_v40  }

// kernel: dino_forward.41
= control target key start
LH: loop header
LB: loop body
LE: loop exit
PB: predicated region body
PF: predicated region fallthrough
CT: control target
= control target key end

     0   :  { %s761_s1 = inlined_call_operand.vmem [shape: bf16[512,128], index: 1, kind: input, shape index: {}]   ;;  %s762_s0 = inlined_call_operand.vmem [shape: bf16[32,512], index: 0, kind: input, shape index: {}]   ;;  %s763_s2 = inlined_call_operand.vmem [shape: f32[1,128], index: 2, kind: input, shape index: {}]   ;;  %s764_s3 = inlined_call_operand.vmem [shape: bf16[32,128], index: 3, kind: output, shape index: {}]  }
   0x1   :  { %v568_v0 = vld [vmem:[%s761_s1 + $0x40] sm:$0xff]   ;;  %v572_v4 = vld [vmem:[%s761_s1 + $0x48] sm:$0xff]   ;;  %v576_v8 = vld [vmem:[%s761_s1 + $0x50] sm:$0xff]  }
   0x2   :  { %v569_v1 = vld [vmem:[%s761_s1 + $0xc0] sm:$0xff]   ;;  %512 = vmatprep.subr.bf16.mxu0 %v568_v0  ;;  %v573_v5 = vld [vmem:[%s761_s1 + $0xc8] sm:$0xff]   ;;  %v577_v9 = vld [vmem:[%s761_s1 + $0xd0] sm:$0xff]  }
   0x3   :  { %v570_v2 = vld [vmem:[%s761_s1] sm:$0xff]   ;;  %540 = vmatprep.subr.bf16.mxu1 %v569_v1  ;;  %v574_v6 = vld [vmem:[%s761_s1 + $0x8] sm:$0xff]   ;;  %v578_v10 = vld [vmem:[%s761_s1 + $0x10] sm:$0xff]  }
   0x4   :  { %v571_v3 = vld [vmem:[%s761_s1 + $0x80] sm:$0xff]   ;;  %513 = vmatpush3.bf16.msra.mxu0 %v570_v2  ;;  %v575_v7 = vld [vmem:[%s761_s1 + $0x88] sm:$0xff]   ;;  %v579_v11 = vld [vmem:[%s761_s1 + $0x90] sm:$0xff]  }
   0x5   :  { %541 = vmatpush3.bf16.msra.mxu1 %v571_v3  ;;  %514 = vmatprep.subr.bf16.mxu0 %v572_v4  ;;  %v580_v12 = vld [vmem:[%s761_s1 + $0x58] sm:$0xff]   ;;  %v584_v16 = vld [vmem:[%s761_s1 + $0x60] sm:$0xff]   ;;  %v588_v20 = vld [vmem:[%s761_s1 + $0x68] sm:$0xff]  }
   0x6   :  { %542 = vmatprep.subr.bf16.mxu1 %v573_v5  ;;  %v581_v13 = vld [vmem:[%s761_s1 + $0xd8] sm:$0xff]   ;;  %v585_v17 = vld [vmem:[%s761_s1 + $0xe0] sm:$0xff]   ;;  %v589_v21 = vld [vmem:[%s761_s1 + $0xe8] sm:$0xff]  }
   0x7   :  { %v582_v14 = vld [vmem:[%s761_s1 + $0x18] sm:$0xff]   ;;  %v586_v18 = vld [vmem:[%s761_s1 + $0x20] sm:$0xff]   ;;  %v590_v22 = vld [vmem:[%s761_s1 + $0x28] sm:$0xff]  }
   0x8   :  { %515 = vmatpush3.bf16.msra.mxu0 %v574_v6  ;;  %v583_v15 = vld [vmem:[%s761_s1 + $0x98] sm:$0xff]   ;;  %v587_v19 = vld [vmem:[%s761_s1 + $0xa0] sm:$0xff]   ;;  %v591_v23 = vld [vmem:[%s761_s1 + $0xa8] sm:$0xff]  }
   0x9   :  { %543 = vmatpush3.bf16.msra.mxu1 %v575_v7  ;;  %516 = vmatprep.subr.bf16.mxu0 %v576_v8  ;;  %v592_v24 = vld [vmem:[%s761_s1 + $0x70] sm:$0xff]   ;;  %v596_v28 = vld [vmem:[%s761_s1 + $0x78] sm:$0xff]   ;;  %v452_v42 = vld [vmem:[%s763_s2] ss:$0 sm:$0xff] }
   0xa   :  { %544 = vmatprep.subr.bf16.mxu1 %v577_v9  ;;  %v593_v25 = vld [vmem:[%s761_s1 + $0xf0] sm:$0xff]   ;;  %v597_v29 = vld [vmem:[%s761_s1 + $0xf8] sm:$0xff]  }
   0xb   :  { %v594_v26 = vld [vmem:[%s761_s1 + $0x30] sm:$0xff]   ;;  %v598_v30 = vld [vmem:[%s761_s1 + $0x38] sm:$0xff]  }
   0xc   :  { %517 = vmatpush3.bf16.msra.mxu0 %v578_v10  ;;  %v595_v27 = vld [vmem:[%s761_s1 + $0xb0] sm:$0xff]   ;;  %v599_v31 = vld [vmem:[%s761_s1 + $0xb8] sm:$0xff]  }
   0xd   :  { %545 = vmatpush3.bf16.msra.mxu1 %v579_v11  ;;  %518 = vmatprep.subr.bf16.mxu0 %v580_v12  ;;  %v600_v32 = vld [vmem:[%s762_s0] ss:$16 sps:$4 sm:$0xff]   ;;  %v602_v33 = vld [vmem:[%s762_s0 + $0x4] ss:$16 sps:$4 sm:$0xff]   ;;  %v603_v34 = vld [vmem:[%s762_s0 + $0x8] ss:$16 sps:$4 sm:$0xff]  }
   0xe   :  { %546 = vmatprep.subr.bf16.mxu1 %v581_v13  ;;  %v605_v35 = vld [vmem:[%s762_s0 + $0xc] ss:$16 sps:$4 sm:$0xff]   ;;  %358 = vmatprep.mubr.bf16.mxu0 %v602_v33  ;;  %v606_v36 = vld [vmem:[%s762_s0 + $0x24] ss:$16 sps:$4 sm:$0xff]   ;;  %v610_v38 = vld [vmem:[%s762_s0 + $0x20] ss:$16 sps:$4 sm:$0xff]  }
   0xf   :  { %407 = vmatprep.mubr.bf16.mxu1 %v605_v35  ;;  %v608_v37 = vld [vmem:[%s762_s0 + $0x2c] ss:$16 sps:$4 sm:$0xff]   ;;  %v611_v39 = vld [vmem:[%s762_s0 + $0x28] ss:$16 sps:$4 sm:$0xff]  }
  0x10   :  { %519 = vmatpush3.bf16.msra.mxu0 %v582_v14 }
  0x11   :  { %547 = vmatpush3.bf16.msra.mxu1 %v583_v15  ;;  %520 = vmatprep.subr.bf16.mxu0 %v584_v16 }
  0x12   :  { %548 = vmatprep.subr.bf16.mxu1 %v585_v17 }
  0x14   :  { %521 = vmatpush3.bf16.msra.mxu0 %v586_v18 }
  0x15   :  { %549 = vmatpush3.bf16.msra.mxu1 %v587_v19  ;;  %522 = vmatprep.subr.bf16.mxu0 %v588_v20 }
  0x16   :  { %550 = vmatprep.subr.bf16.mxu1 %v589_v21 }
  0x18   :  { %523 = vmatpush3.bf16.msra.mxu0 %v590_v22 }
  0x19   :  { %551 = vmatpush3.bf16.msra.mxu1 %v591_v23  ;;  %524 = vmatprep.subr.bf16.mxu0 %v592_v24 }
  0x1a   :  { %552 = vmatprep.subr.bf16.mxu1 %v593_v25 }
  0x1c   :  { %525 = vmatpush3.bf16.msra.mxu0 %v594_v26 }
  0x1d   :  { %553 = vmatpush3.bf16.msra.mxu1 %v595_v27  ;;  %526 = vmatprep.subr.bf16.mxu0 %v596_v28 }
  0x1e   :  { %554 = vmatprep.subr.bf16.mxu1 %v597_v29 }
  0x20   :  { %527 = vmatpush3.bf16.msra.mxu0 %v598_v30 }
  0x21   :  { %555 = vmatpush3.bf16.msra.mxu1 %v599_v31 }
  0x23   :  { %359 = vmatmul.mubr.bf16.vlgmr.msra.gmra.mrb[0].mxu0 %v600_v32 }
  0x24   :  { %408 = vmatmul.mubr.bf16.vlgmr.msra.gmra.mrb[0].mxu1 %v603_v34  ;;  %366 = vmatprep.mubr.bf16.mxu0 %v606_v36 }
  0x25   :  { %415 = vmatprep.mubr.bf16.mxu1 %v608_v37 }
  0x2b   :  { %367 = vmatmul.mubr.bf16.gmra.mrb[4].mxu0 %v610_v38 }
  0x2c   :  { %416 = vmatmul.mubr.bf16.gmra.mrb[4].mxu1 %v611_v39 }
  0xf6   :  { %v528_v40 = vpop.f32.mrb[0].mxu0 }
  0xf7   :  { %v556_v41 = vpop.f32.mrb[0].mxu1  ;;  %v529_v43 = vpop.f32.mrb[1].mxu0 }
  0xf8   :  { %v530_v44 = vadd.f32 %v529_v43, %v528_v40  ;;  %v557_v45 = vpop.f32.mrb[1].mxu1  ;;  %v531_v46 = vpop.f32.mrb[2].mxu0 }
  0xf9   :  { %v558_v47 = vadd.f32 %v557_v45, %v556_v41  ;;  %v559_v48 = vpop.f32.mrb[2].mxu1  ;;  %v532_v49 = vpop.f32.mrb[3].mxu0 }
  0xfa   :  { %v361_v50 = vadd.f32 %v530_v44, %v452_v42  ;;  %v533_v51 = vadd.f32 %v532_v49, %v531_v46  ;;  %v560_v52 = vpop.f32.mrb[3].mxu1 }
  0xfb   :  { %v561_v53 = vadd.f32 %v560_v52, %v559_v48 }
  0xfc   :  { %v410_v54 = vadd.f32 %v558_v47, %v361_v50  ;;  %v364_v55 = vadd.f32 %v533_v51, %v452_v42 }
  0xfe   :  { %v413_v56 = vadd.f32 %v561_v53, %v364_v55  ;;  %v534_v57 = vpop.f32.mrb[4].mxu0  ;;  %v424_v60 = vmax.f32 %v410_v54, 0.0 }
  0xff   :  { %v562_v58 = vpop.f32.mrb[4].mxu1  ;;  %v535_v59 = vpop.f32.mrb[5].mxu0 }
 0x100   :  { %v425_v61 = vmax.f32 %v413_v56, 0.0  ;;  %v536_v62 = vadd.f32 %v535_v59, %v534_v57  ;;  %v563_v63 = vpop.f32.mrb[5].mxu1  ;;  %v537_v0 = vpop.f32.mrb[6].mxu0 }
 0x101   :  { %v564_v1 = vadd.f32 %v563_v63, %v562_v58  ;;  %v565_v2 = vpop.f32.mrb[6].mxu1  ;;  %v538_v3 = vpop.f32.mrb[7].mxu0 }
 0x102   :  { %v504_v4 = vpack.c.bf16 %v425_v61, %v424_v60  ;;  %v369_v5 = vadd.f32 %v536_v62, %v452_v42  ;;  %v539_v6 = vadd.f32 %v538_v3, %v537_v0  ;;  %v566_v7 = vpop.f32.mrb[7].mxu1 }
 0x103   :  { %v567_v8 = vadd.f32 %v566_v7, %v565_v2 }
 0x104   :  { %505 = vst [vmem:[%s764_s3] sm:$0xff] %v504_v4   ;;  %v418_v9 = vadd.f32 %v564_v1, %v369_v5  ;;  %v372_v10 = vadd.f32 %v539_v6, %v452_v42 }
 0x106   :  { %v421_v11 = vadd.f32 %v567_v8, %v372_v10  ;;  %v426_v12 = vmax.f32 %v418_v9, 0.0 }
 0x108   :  { %v427_v13 = vmax.f32 %v421_v11, 0.0 }
 0x10a   :  { %v509_v14 = vpack.c.bf16 %v427_v13, %v426_v12 }
 0x10c   :  { %511 = vst [vmem:[%s764_s3 + $0x8] sm:$0xff] %v509_v14  }

</bundles_post_ra>
